<compile_context>
chip_gen: v7x
topology: tpu7x:2x2x1
jax: 0.10.0
libtpu: 0.0.40
codegen_flags: <defaults>
</compile_context>

<pallas_src>
import jax
import jax.numpy as jnp
from jax.experimental import pallas as pl
from jax.experimental.pallas import tpu as pltpu

EPS = 1e-5


def _make_agg_kernel(H, W, Cin, C, k, TH):
    """Builds the fused kernel for static shapes (H, W, Cin, C, kernel k, row tile TH)."""
    p = k // 2
    THp = TH + 2 * p          # row-tile plus depthwise H halo (recomputed per tile)

    def kernel(x_ref, w1_ref, ss1_ref, dw_ref, pv_ref, bn2_ref, o_ref, y_buf, tr_buf):
        # x_ref  : (1, H+2p+2, W+2, Cin)  full zero-padded image (resident across h steps)
        # w1_ref : (9*Cin, C) bf16        flattened 3x3 conv weights (im2col order)
        # ss1_ref: (2, C)                 [BN1 scale, BN1 shift (+conv bias folded)]
        # dw_ref : (4, k, C)              depthwise taps [wl_1xk, wl_kx1, wr_kx1, wr_1xk]
        # pv_ref : (2, C)                 [bl1, br1]   (bl2/br2 folded into BN2 shift)
        # bn2_ref: (2, W*C)               W-tiled [BN2 scale, BN2 shift] for the lane-dense epilogue
        # o_ref  : (1, TH, W*C)
        # y_buf  : (THp, W+2p, C) scratch (layer1 tile, W halo zeros)
        # tr_buf : (TH,  W+2p, C) scratch (branch-R intermediate, W halo zeros)
        h = pl.program_id(1)

        # Zero only the W-halo columns; the interiors are fully overwritten below.
        y_buf[:, :p, :] = jnp.zeros((THp, p, C), jnp.float32)
        y_buf[:, p + W:, :] = jnp.zeros((THp, p, C), jnp.float32)
        tr_buf[:, :p, :] = jnp.zeros((TH, p, C), jnp.float32)
        tr_buf[:, p + W:, :] = jnp.zeros((TH, p, C), jnp.float32)

        # ---- layer1: 3x3 conv as ONE im2col matmul (K = 9*Cin), bf16 MXU / f32 acc ----
        # The tile computes TH + 2p rows so the depthwise H taps never leave VMEM.
        row0 = pl.multiple_of(h * TH, TH)
        cols = []
        for dh in range(3):
            for dw in range(3):
                cols.append(
                    x_ref[0, pl.ds(row0 + dh, THp), dw:dw + W, :].reshape(THp * W, Cin))
        pat = jnp.concatenate(cols, axis=-1).astype(jnp.bfloat16)      # (THp*W, 9*Cin)
        acc = jnp.dot(pat, w1_ref[...], preferred_element_type=jnp.float32)

        # BN1 (conv bias folded) + ReLU.
        ss = ss1_ref[...]
        y1 = jnp.maximum(acc * ss[0][None, :] + ss[1][None, :], 0.0)
        y1 = y1.reshape(THp, W, C)

        # Rows outside the image must be exactly zero: the depthwise convs zero-pad the
        # layer1 output (they never see conv-of-zero-rows values).
        grow = h * TH - p + jax.lax.broadcasted_iota(jnp.int32, (THp, 1, 1), 0)
        inimg = jnp.logical_and(grow >= 0, grow < H)
        y1 = jnp.where(inimg, y1, 0.0)
        y_buf[:, p:p + W, :] = y1

        # Depthwise taps / biases loaded once per step.
        dw_w = dw_ref[...]            # (4, k, C)
        pv = pv_ref[...]              # (2, C)

        # ---- fsconvl: depthwise (1,k) along W, then (k,1) along H ----
        tl = jnp.zeros((THp, W, C), jnp.float32)
        for j in range(k):
            tl = tl + y_buf[:, j:j + W, :] * dw_w[0, j][None, None, :]
        # + bias bl1, then re-zero the out-of-image halo rows (zero H-padding of the
        # intermediate, exactly as the PyTorch module's second conv sees it).
        tl = jnp.where(inimg, tl + pv[0][None, None, :], 0.0)
        xl = jnp.zeros((TH, W, C), jnp.float32)
        for i in range(k):
            xl = xl + tl[i:i + TH] * dw_w[1, i][None, None, :]

        # ---- fsconvr: depthwise (k,1) along H, then (1,k) along W ----
        tr = jnp.zeros((TH, W, C), jnp.float32)
        for i in range(k):
            tr = tr + y_buf[i:i + TH, p:p + W, :] * dw_w[2, i][None, None, :]
        tr_buf[:, p:p + W, :] = tr + pv[1][None, None, :]
        xr = jnp.zeros((TH, W, C), jnp.float32)
        for j in range(k):
            xr = xr + tr_buf[:, j:j + W, :] * dw_w[3, j][None, None, :]

        # ---- layer2: BN (bl2/br2 folded into the shift) + ReLU, lane-dense store ----
        s = xl + xr                                                    # (TH, W, C)
        # Flatten W into the lane dim so the epilogue + HBM store run on full 128-lane
        # vregs (unmasked vst).  At production channel counts (C >= 128) this step is a
        # no-op win; here it fixes the Cout=32 masked-store path.
        s_flat = jnp.concatenate([s[:, w, :] for w in range(W)], axis=-1)   # (TH, W*C)
        bn = bn2_ref[...]
        y = jnp.maximum(s_flat * bn[0][None, :] + bn[1][None, :], 0.0)
        o_ref[0] = y.astype(o_ref.dtype)

    return kernel


def aggregation_module_forward(x_nhwc, prm, *, row_tile=8):
    N, H, W, Cin = x_nhwc.shape
    Cout = prm['w3'].shape[-1]
    k = prm['dw_w'].shape[1]
    p = k // 2

    TH = row_tile if H % row_tile == 0 else H
    THp = TH + 2 * p
    nH = H // TH
    Hp = H + 2 * (p + 1)          # input rows incl. 3x3 halo + depthwise H halo
    Wp2 = W + 2                   # input cols incl. 3x3 halo

    # layer1: fold conv bias + BN1 (eval mode) into per-channel scale/shift.
    scale1 = prm['g1'] / jnp.sqrt(prm['v1'] + EPS)
    shift1 = prm['be1'] - prm['m1'] * scale1
    ss1 = jnp.stack([scale1, prm['b3'] * scale1 + shift1])                    # (2, C)
    # 3x3 weights flattened to (9*Cin, Cout) in (dh, dw, cin) order, bf16 for the MXU.
    w1 = prm['w3'].reshape(9 * Cin, Cout).astype(jnp.bfloat16)
    # layer2: fold second depthwise biases into the BN2 shift; tile by W for the
    # lane-dense epilogue.
    scale2 = prm['g2'] / jnp.sqrt(prm['v2'] + EPS)
    shift2 = prm['be2'] - prm['m2'] * scale2 + (prm['bl2'] + prm['br2']) * scale2
    bn2 = jnp.stack([jnp.tile(scale2, W), jnp.tile(shift2, W)])               # (2, W*C)
    pv = jnp.stack([prm['bl1'], prm['br1']])                                  # (2, C)

    # Single small pad of the Cin-channel input (3x3 halo of 1 + depthwise H halo of p).
    x_pad = jnp.pad(x_nhwc, ((0, 0), (p + 1, p + 1), (1, 1), (0, 0)))

    kernel = _make_agg_kernel(H, W, Cin, Cout, k, TH)

    # Advisory cost estimate (whole call): im2col matmul + 4 depthwise tap passes.
    steps = N * nH
    conv_flops = 2 * THp * W * (9 * Cin) * Cout * steps
    dw_flops = 2 * (THp + 3 * TH) * W * k * Cout * steps
    epi_flops = 4 * TH * W * Cout * steps
    bytes_accessed = (N * Hp * Wp2 * Cin * 4            # input image (once per n)
                      + N * H * W * Cout * x_nhwc.dtype.itemsize   # output
                      + steps * (9 * Cin * Cout * 2 + (4 * k + 6) * Cout * 4
                                 + 2 * W * Cout * 4))    # small params per step
    cost = pl.CostEstimate(flops=int(conv_flops + dw_flops + epi_flops),
                           transcendentals=0,
                           bytes_accessed=int(bytes_accessed))

    out = pl.pallas_call(
        kernel,
        out_shape=jax.ShapeDtypeStruct((N, H, W * Cout), x_nhwc.dtype),
        grid=(N, nH),
        in_specs=[
            # full padded image: fetched once per n, reused across all h tiles
            pl.BlockSpec((1, Hp, Wp2, Cin), lambda n, h: (n, 0, 0, 0)),
            pl.BlockSpec((9 * Cin, Cout), lambda n, h: (0, 0)),
            pl.BlockSpec((2, Cout), lambda n, h: (0, 0)),
            pl.BlockSpec((4, k, Cout), lambda n, h: (0, 0, 0)),
            pl.BlockSpec((2, Cout), lambda n, h: (0, 0)),
            pl.BlockSpec((2, W * Cout), lambda n, h: (0, 0)),
        ],
        out_specs=pl.BlockSpec((1, TH, W * Cout), lambda n, h: (n, h, 0)),
        scratch_shapes=[
            pltpu.VMEM((THp, W + 2 * p, Cout), jnp.float32),   # layer1 tile (+W halo)
            pltpu.VMEM((TH, W + 2 * p, Cout), jnp.float32),    # fsconvr intermediate
        ],
        compiler_params=pltpu.CompilerParams(
            dimension_semantics=("parallel", "parallel")),
        cost_estimate=cost,
    )(x_pad, w1, ss1, prm['dw_w'], pv, bn2)

    return out.reshape(N, H, W, Cout)


def init_params(key, in_channels, out_channels, kernel_size):
    keys = jax.random.split(key, 4)
    w3 = jax.random.normal(keys[0], (3, 3, in_channels, out_channels), jnp.float32) * 0.1
    b3 = jax.random.normal(keys[1], (out_channels,), jnp.float32) * 0.05
    # depthwise taps; rows: [fsconvl (1,k), fsconvl (k,1), fsconvr (k,1), fsconvr (1,k)]
    dw_w = jax.random.normal(keys[2], (4, kernel_size, out_channels), jnp.float32) * 0.2
    bl1, bl2, br1, br2 = jax.random.normal(keys[3], (4, out_channels), jnp.float32) * 0.05
    c = jnp.arange(out_channels, dtype=jnp.float32)
    return dict(
        w3=w3, b3=b3, dw_w=dw_w, bl1=bl1, bl2=bl2, br1=br1, br2=br2,
        # BatchNorm (eval mode): gamma, beta, running_mean, running_var
        g1=1.0 + 0.10 * c, be1=0.05 * c, m1=0.01 * c, v1=1.0 + 0.02 * c,
        g2=1.0 - 0.01 * c, be2=-0.02 * c, m2=0.03 * c, v2=1.0 + 0.05 * c,
    )


def reference_forward(x_nhwc, prm):
    """Pure-JAX reference mirroring the PyTorch module.

    The 3x3 conv operands are rounded to bf16 (f32 accumulation) to mirror the
    MXU path used by the kernel; everything else is f32.
    """
    dn = ('NHWC', 'HWIO', 'NHWC')
    C = prm['w3'].shape[-1]
    hp = jax.lax.Precision.HIGHEST
    xq = x_nhwc.astype(jnp.bfloat16).astype(jnp.float32)
    wq = prm['w3'].astype(jnp.bfloat16).astype(jnp.float32)
    y = jax.lax.conv_general_dilated(xq, wq, (1, 1), ((1, 1), (1, 1)),
                                     dimension_numbers=dn, precision=hp) + prm['b3']
    y = (y - prm['m1']) / jnp.sqrt(prm['v1'] + EPS) * prm['g1'] + prm['be1']
    y = jnp.maximum(y, 0.0)
    k = prm['dw_w'].shape[1]
    p = k // 2

    def dw_h(t, w_kc, b):   # depthwise (1, k) along W
        return jax.lax.conv_general_dilated(
            t, w_kc[None, :, None, :], (1, 1), ((0, 0), (p, p)),
            dimension_numbers=dn, feature_group_count=C, precision=hp) + b

    def dw_v(t, w_kc, b):   # depthwise (k, 1) along H
        return jax.lax.conv_general_dilated(
            t, w_kc[:, None, None, :], (1, 1), ((p, p), (0, 0)),
            dimension_numbers=dn, feature_group_count=C, precision=hp) + b

    xl = dw_v(dw_h(y, prm['dw_w'][0], prm['bl1']), prm['dw_w'][1], prm['bl2'])
    xr = dw_h(dw_v(y, prm['dw_w'][2], prm['br1']), prm['dw_w'][3], prm['br2'])
    s = xl + xr
    s = (s - prm['m2']) / jnp.sqrt(prm['v2'] + EPS) * prm['g2'] + prm['be2']
    return jnp.maximum(s, 0.0)


if __name__ == "__main__":
    key = jax.random.PRNGKey(0)
    kx, kp = jax.random.split(key)

    # Small shapes consistent with the module: AggregationModule(8, 32, kernel_size=5)
    N, Cin, H, W = 2, 8, 16, 16
    Cout, K = 32, 5

    x_nchw = jax.random.normal(kx, (N, Cin, H, W), jnp.float32)   # PyTorch-style input
    x_nhwc = jnp.transpose(x_nchw, (0, 2, 3, 1))                  # kernel layout
    prm = init_params(kp, Cin, Cout, K)

    y = aggregation_module_forward(x_nhwc, prm)
    y = jax.block_until_ready(y)

    y_ref = reference_forward(x_nhwc, prm)
    assert y.shape == (N, H, W, Cout)
    assert bool(jnp.allclose(y, y_ref, atol=2e-3, rtol=2e-3)), "mismatch vs JAX reference"

    print("KERNEL_OK")
</pallas_src>

<mosaic_0001>
module attributes {stable_mosaic.version = 11 : i64} {
  func.func @kernel(%arg0: i32, %arg1: i32, %arg2: memref<1x22x18x8xf32, #tpu.memory_space<vmem>>, %arg3: memref<72x32xbf16, #tpu.memory_space<vmem>>, %arg4: memref<2x32xf32, #tpu.memory_space<vmem>>, %arg5: memref<4x5x32xf32, #tpu.memory_space<vmem>>, %arg6: memref<2x32xf32, #tpu.memory_space<vmem>>, %arg7: memref<2x512xf32, #tpu.memory_space<vmem>>, %arg8: memref<1x8x512xf32, #tpu.memory_space<vmem>>, %arg9: memref<12x20x32xf32, #tpu.memory_space<vmem>>, %arg10: memref<8x20x32xf32, #tpu.memory_space<vmem>>) attributes {dimension_semantics = [#tpu.dimension_semantics<parallel>, #tpu.dimension_semantics<parallel>], iteration_bounds = array<i64: 2, 2>, scalar_prefetch = 0 : i64, scratch_operands = 2 : i64, tpu.core_type = #tpu.core_type<tc>, window_params = [{transform_indices = @transform_0, window_bounds = array<i64: 1, 22, 18, 8>}, {pipeline_mode = #tpu.pipeline_mode<synchronous>, transform_indices = @transform_1, window_bounds = array<i64: 72, 32>}, {pipeline_mode = #tpu.pipeline_mode<synchronous>, transform_indices = @transform_2, window_bounds = array<i64: 2, 32>}, {pipeline_mode = #tpu.pipeline_mode<synchronous>, transform_indices = @transform_3, window_bounds = array<i64: 4, 5, 32>}, {pipeline_mode = #tpu.pipeline_mode<synchronous>, transform_indices = @transform_4, window_bounds = array<i64: 2, 32>}, {pipeline_mode = #tpu.pipeline_mode<synchronous>, transform_indices = @transform_5, window_bounds = array<i64: 2, 512>}, {transform_indices = @transform_6, window_bounds = array<i64: 1, 8, 512>}]} {
    %cst = arith.constant 0.000000e+00 : f32
    %0 = vector.broadcast %cst : f32 to vector<12x2x32xf32>
    %c0 = arith.constant 0 : index
    %c0_0 = arith.constant 0 : index
    %c0_1 = arith.constant 0 : index
    %1 = vector.load %arg9[%c0, %c0_0, %c0_1] : memref<12x20x32xf32, #tpu.memory_space<vmem>>, vector<12x2x32xf32>
    tpu.vector_store %arg9[%c0, %c0_0, %c0_1], %0 {strides = array<i32>} : memref<12x20x32xf32, #tpu.memory_space<vmem>>, vector<12x2x32xf32>,
    %cst_2 = arith.constant 0.000000e+00 : f32
    %2 = vector.broadcast %cst_2 : f32 to vector<12x2x32xf32>
    %c0_3 = arith.constant 0 : index
    %c18 = arith.constant 18 : index
    %c0_4 = arith.constant 0 : index
    %3 = vector.load %arg9[%c0_3, %c18, %c0_4] : memref<12x20x32xf32, #tpu.memory_space<vmem>>, vector<12x2x32xf32>
    tpu.vector_store %arg9[%c0_3, %c18, %c0_4], %2 {strides = array<i32>} : memref<12x20x32xf32, #tpu.memory_space<vmem>>, vector<12x2x32xf32>,
    %cst_5 = arith.constant 0.000000e+00 : f32
    %4 = vector.broadcast %cst_5 : f32 to vector<8x2x32xf32>
    %c0_6 = arith.constant 0 : index
    %c0_7 = arith.constant 0 : index
    %c0_8 = arith.constant 0 : index
    %5 = vector.load %arg10[%c0_6, %c0_7, %c0_8] : memref<8x20x32xf32, #tpu.memory_space<vmem>>, vector<8x2x32xf32>
    tpu.vector_store %arg10[%c0_6, %c0_7, %c0_8], %4 {strides = array<i32>} : memref<8x20x32xf32, #tpu.memory_space<vmem>>, vector<8x2x32xf32>,
    %cst_9 = arith.constant 0.000000e+00 : f32
    %6 = vector.broadcast %cst_9 : f32 to vector<8x2x32xf32>
    %c0_10 = arith.constant 0 : index
    %c18_11 = arith.constant 18 : index
    %c0_12 = arith.constant 0 : index
    %7 = vector.load %arg10[%c0_10, %c18_11, %c0_12] : memref<8x20x32xf32, #tpu.memory_space<vmem>>, vector<8x2x32xf32>
    tpu.vector_store %arg10[%c0_10, %c18_11, %c0_12], %6 {strides = array<i32>} : memref<8x20x32xf32, #tpu.memory_space<vmem>>, vector<8x2x32xf32>,
    %c8_i32 = arith.constant 8 : i32
    %8 = arith.muli %arg1, %c8_i32 : i32
    %9 = tpu.assume_multiple %8, 8 : i32
    %c0_i32 = arith.constant 0 : i32
    %10 = arith.addi %9, %c0_i32 : i32
    %c0_13 = arith.constant 0 : index
    %11 = arith.index_cast %10 : i32 to index
    %c0_14 = arith.constant 0 : index
    %c0_15 = arith.constant 0 : index
    %12 = vector.load %arg2[%c0_13, %11, %c0_14, %c0_15] : memref<1x22x18x8xf32, #tpu.memory_space<vmem>>, vector<1x12x16x8xf32>
    %13 = vector.shape_cast %12 : vector<1x12x16x8xf32> to vector<12x16x8xf32>
    %14 = vector.shape_cast %13 : vector<12x16x8xf32> to vector<192x8xf32>
    %c0_i32_16 = arith.constant 0 : i32
    %15 = arith.addi %9, %c0_i32_16 : i32
    %c0_17 = arith.constant 0 : index
    %16 = arith.index_cast %15 : i32 to index
    %c1 = arith.constant 1 : index
    %c0_18 = arith.constant 0 : index
    %17 = vector.load %arg2[%c0_17, %16, %c1, %c0_18] : memref<1x22x18x8xf32, #tpu.memory_space<vmem>>, vector<1x12x16x8xf32>
    %18 = vector.shape_cast %17 : vector<1x12x16x8xf32> to vector<12x16x8xf32>
    %19 = vector.shape_cast %18 : vector<12x16x8xf32> to vector<192x8xf32>
    %c0_i32_19 = arith.constant 0 : i32
    %20 = arith.addi %9, %c0_i32_19 : i32
    %c0_20 = arith.constant 0 : index
    %21 = arith.index_cast %20 : i32 to index
    %c2 = arith.constant 2 : index
    %c0_21 = arith.constant 0 : index
    %22 = vector.load %arg2[%c0_20, %21, %c2, %c0_21] : memref<1x22x18x8xf32, #tpu.memory_space<vmem>>, vector<1x12x16x8xf32>
    %23 = vector.shape_cast %22 : vector<1x12x16x8xf32> to vector<12x16x8xf32>
    %24 = vector.shape_cast %23 : vector<12x16x8xf32> to vector<192x8xf32>
    %c1_i32 = arith.constant 1 : i32
    %25 = arith.addi %9, %c1_i32 : i32
    %c0_22 = arith.constant 0 : index
    %26 = arith.index_cast %25 : i32 to index
    %c0_23 = arith.constant 0 : index
    %c0_24 = arith.constant 0 : index
    %27 = vector.load %arg2[%c0_22, %26, %c0_23, %c0_24] : memref<1x22x18x8xf32, #tpu.memory_space<vmem>>, vector<1x12x16x8xf32>
    %28 = vector.shape_cast %27 : vector<1x12x16x8xf32> to vector<12x16x8xf32>
    %29 = vector.shape_cast %28 : vector<12x16x8xf32> to vector<192x8xf32>
    %c1_i32_25 = arith.constant 1 : i32
    %30 = arith.addi %9, %c1_i32_25 : i32
    %c0_26 = arith.constant 0 : index
    %31 = arith.index_cast %30 : i32 to index
    %c1_27 = arith.constant 1 : index
    %c0_28 = arith.constant 0 : index
    %32 = vector.load %arg2[%c0_26, %31, %c1_27, %c0_28] : memref<1x22x18x8xf32, #tpu.memory_space<vmem>>, vector<1x12x16x8xf32>
    %33 = vector.shape_cast %32 : vector<1x12x16x8xf32> to vector<12x16x8xf32>
    %34 = vector.shape_cast %33 : vector<12x16x8xf32> to vector<192x8xf32>
    %c1_i32_29 = arith.constant 1 : i32
    %35 = arith.addi %9, %c1_i32_29 : i32
    %c0_30 = arith.constant 0 : index
    %36 = arith.index_cast %35 : i32 to index
    %c2_31 = arith.constant 2 : index
    %c0_32 = arith.constant 0 : index
    %37 = vector.load %arg2[%c0_30, %36, %c2_31, %c0_32] : memref<1x22x18x8xf32, #tpu.memory_space<vmem>>, vector<1x12x16x8xf32>
    %38 = vector.shape_cast %37 : vector<1x12x16x8xf32> to vector<12x16x8xf32>
    %39 = vector.shape_cast %38 : vector<12x16x8xf32> to vector<192x8xf32>
    %c2_i32 = arith.constant 2 : i32
    %40 = arith.addi %9, %c2_i32 : i32
    %c0_33 = arith.constant 0 : index
    %41 = arith.index_cast %40 : i32 to index
    %c0_34 = arith.constant 0 : index
    %c0_35 = arith.constant 0 : index
    %42 = vector.load %arg2[%c0_33, %41, %c0_34, %c0_35] : memref<1x22x18x8xf32, #tpu.memory_space<vmem>>, vector<1x12x16x8xf32>
    %43 = vector.shape_cast %42 : vector<1x12x16x8xf32> to vector<12x16x8xf32>
    %44 = vector.shape_cast %43 : vector<12x16x8xf32> to vector<192x8xf32>
    %c2_i32_36 = arith.constant 2 : i32
    %45 = arith.addi %9, %c2_i32_36 : i32
    %c0_37 = arith.constant 0 : index
    %46 = arith.index_cast %45 : i32 to index
    %c1_38 = arith.constant 1 : index
    %c0_39 = arith.constant 0 : index
    %47 = vector.load %arg2[%c0_37, %46, %c1_38, %c0_39] : memref<1x22x18x8xf32, #tpu.memory_space<vmem>>, vector<1x12x16x8xf32>
    %48 = vector.shape_cast %47 : vector<1x12x16x8xf32> to vector<12x16x8xf32>
    %49 = vector.shape_cast %48 : vector<12x16x8xf32> to vector<192x8xf32>
    %c2_i32_40 = arith.constant 2 : i32
    %50 = arith.addi %9, %c2_i32_40 : i32
    %c0_41 = arith.constant 0 : index
    %51 = arith.index_cast %50 : i32 to index
    %c2_42 = arith.constant 2 : index
    %c0_43 = arith.constant 0 : index
    %52 = vector.load %arg2[%c0_41, %51, %c2_42, %c0_43] : memref<1x22x18x8xf32, #tpu.memory_space<vmem>>, vector<1x12x16x8xf32>
    %53 = vector.shape_cast %52 : vector<1x12x16x8xf32> to vector<12x16x8xf32>
    %54 = vector.shape_cast %53 : vector<12x16x8xf32> to vector<192x8xf32>
    %55 = tpu.concatenate %14, %19, %24, %29, %34, %39, %44, %49, %54 in 1 : vector<192x8xf32>, vector<192x8xf32>, vector<192x8xf32>, vector<192x8xf32>, vector<192x8xf32>, vector<192x8xf32>, vector<192x8xf32>, vector<192x8xf32>, vector<192x8xf32> -> vector<192x72xf32>
    %56 = arith.truncf %55 : vector<192x72xf32> to vector<192x72xbf16>
    %c0_44 = arith.constant 0 : index
    %c0_45 = arith.constant 0 : index
    %57 = vector.load %arg3[%c0_44, %c0_45] : memref<72x32xbf16, #tpu.memory_space<vmem>>, vector<72x32xbf16>
    %cst_46 = arith.constant dense<0.000000e+00> : vector<192x32xf32>
    %58 = tpu.matmul %56, %57, %cst_46 {dimension_numbers = #tpu.dot_dimension_numbers<[1], [0], [0], [1], [0, 0, 1, 1], [], []>} : vector<192x72xbf16>, vector<72x32xbf16>, vector<192x32xf32> -> vector<192x32xf32>
    %c0_47 = arith.constant 0 : index
    %c0_48 = arith.constant 0 : index
    %59 = vector.load %arg4[%c0_47, %c0_48] : memref<2x32xf32, #tpu.memory_space<vmem>>, vector<2x32xf32>
    %60 = vector.extract_strided_slice %59 {offsets = [0, 0], sizes = [1, 32], strides = [1, 1]} : vector<2x32xf32> to vector<1x32xf32>
    %61 = vector.shape_cast %60 : vector<1x32xf32> to vector<32xf32>
    %62 = vector.shape_cast %61 : vector<32xf32> to vector<1x32xf32>
    %63 = vector.broadcast %62 : vector<1x32xf32> to vector<192x32xf32>
    %64 = arith.mulf %58, %63 : vector<192x32xf32>
    %65 = vector.extract_strided_slice %59 {offsets = [1, 0], sizes = [1, 32], strides = [1, 1]} : vector<2x32xf32> to vector<1x32xf32>
    %66 = vector.shape_cast %65 : vector<1x32xf32> to vector<32xf32>
    %67 = vector.shape_cast %66 : vector<32xf32> to vector<1x32xf32>
    %68 = vector.broadcast %67 : vector<1x32xf32> to vector<192x32xf32>
    %69 = arith.addf %64, %68 : vector<192x32xf32>
    %cst_49 = arith.constant 0.000000e+00 : f32
    %70 = vector.broadcast %cst_49 : f32 to vector<192x32xf32>
    %71 = arith.maximumf %69, %70 : vector<192x32xf32>
    %72 = vector.shape_cast %71 : vector<192x32xf32> to vector<12x16x32xf32>
    %c8_i32_50 = arith.constant 8 : i32
    %73 = arith.muli %arg1, %c8_i32_50 : i32
    %c2_i32_51 = arith.constant 2 : i32
    %74 = arith.subi %73, %c2_i32_51 : i32
    %75 = tpu.iota {dimensions = array<i32: 0>} : vector<12x1x1xi32>
    %76 = vector.broadcast %74 : i32 to vector<12x1x1xi32>
    %77 = arith.addi %76, %75 : vector<12x1x1xi32>
    %c0_i32_52 = arith.constant 0 : i32
    %78 = vector.broadcast %c0_i32_52 : i32 to vector<12x1x1xi32>
    %79 = arith.cmpi sge, %77, %78 : vector<12x1x1xi32>
    %c16_i32 = arith.constant 16 : i32
    %80 = vector.broadcast %c16_i32 : i32 to vector<12x1x1xi32>
    %81 = arith.cmpi slt, %77, %80 : vector<12x1x1xi32>
    %82 = arith.andi %79, %81 : vector<12x1x1xi1>
    %cst_53 = arith.constant 0.000000e+00 : f32
    %83 = vector.shape_cast %82 : vector<12x1x1xi1> to vector<12x1x1xi1>
    %84 = vector.broadcast %83 : vector<12x1x1xi1> to vector<12x16x32xi1>
    %85 = vector.broadcast %cst_53 : f32 to vector<12x16x32xf32>
    %86 = arith.select %84, %72, %85 : vector<12x16x32xi1>, vector<12x16x32xf32>
    %c0_54 = arith.constant 0 : index
    %c2_55 = arith.constant 2 : index
    %c0_56 = arith.constant 0 : index
    %87 = vector.load %arg9[%c0_54, %c2_55, %c0_56] : memref<12x20x32xf32, #tpu.memory_space<vmem>>, vector<12x16x32xf32>
    tpu.vector_store %arg9[%c0_54, %c2_55, %c0_56], %86 {strides = array<i32>} : memref<12x20x32xf32, #tpu.memory_space<vmem>>, vector<12x16x32xf32>,
    %c0_57 = arith.constant 0 : index
    %c0_58 = arith.constant 0 : index
    %c0_59 = arith.constant 0 : index
    %88 = vector.load %arg5[%c0_57, %c0_58, %c0_59] : memref<4x5x32xf32, #tpu.memory_space<vmem>>, vector<4x5x32xf32>
    %c0_60 = arith.constant 0 : index
    %c0_61 = arith.constant 0 : index
    %89 = vector.load %arg6[%c0_60, %c0_61] : memref<2x32xf32, #tpu.memory_space<vmem>>, vector<2x32xf32>
    %cst_62 = arith.constant 0.000000e+00 : f32
    %90 = vector.broadcast %cst_62 : f32 to vector<12x16x32xf32>
    %c0_63 = arith.constant 0 : index
    %c0_64 = arith.constant 0 : index
    %c0_65 = arith.constant 0 : index
    %91 = vector.load %arg9[%c0_63, %c0_64, %c0_65] : memref<12x20x32xf32, #tpu.memory_space<vmem>>, vector<12x16x32xf32>
    %92 = vector.extract_strided_slice %88 {offsets = [0, 0, 0], sizes = [1, 1, 32], strides = [1, 1, 1]} : vector<4x5x32xf32> to vector<1x1x32xf32>
    %93 = vector.shape_cast %92 : vector<1x1x32xf32> to vector<32xf32>
    %94 = vector.shape_cast %93 : vector<32xf32> to vector<1x1x32xf32>
    %95 = vector.broadcast %94 : vector<1x1x32xf32> to vector<12x16x32xf32>
    %96 = arith.mulf %91, %95 : vector<12x16x32xf32>
    %97 = arith.addf %90, %96 : vector<12x16x32xf32>
    %c0_66 = arith.constant 0 : index
    %c1_67 = arith.constant 1 : index
    %c0_68 = arith.constant 0 : index
    %98 = vector.load %arg9[%c0_66, %c1_67, %c0_68] : memref<12x20x32xf32, #tpu.memory_space<vmem>>, vector<12x16x32xf32>
    %99 = vector.extract_strided_slice %88 {offsets = [0, 1, 0], sizes = [1, 1, 32], strides = [1, 1, 1]} : vector<4x5x32xf32> to vector<1x1x32xf32>
    %100 = vector.shape_cast %99 : vector<1x1x32xf32> to vector<32xf32>
    %101 = vector.shape_cast %100 : vector<32xf32> to vector<1x1x32xf32>
    %102 = vector.broadcast %101 : vector<1x1x32xf32> to vector<12x16x32xf32>
    %103 = arith.mulf %98, %102 : vector<12x16x32xf32>
    %104 = arith.addf %97, %103 : vector<12x16x32xf32>
    %c0_69 = arith.constant 0 : index
    %c2_70 = arith.constant 2 : index
    %c0_71 = arith.constant 0 : index
    %105 = vector.load %arg9[%c0_69, %c2_70, %c0_71] : memref<12x20x32xf32, #tpu.memory_space<vmem>>, vector<12x16x32xf32>
    %106 = vector.extract_strided_slice %88 {offsets = [0, 2, 0], sizes = [1, 1, 32], strides = [1, 1, 1]} : vector<4x5x32xf32> to vector<1x1x32xf32>
    %107 = vector.shape_cast %106 : vector<1x1x32xf32> to vector<32xf32>
    %108 = vector.shape_cast %107 : vector<32xf32> to vector<1x1x32xf32>
    %109 = vector.broadcast %108 : vector<1x1x32xf32> to vector<12x16x32xf32>
    %110 = arith.mulf %105, %109 : vector<12x16x32xf32>
    %111 = arith.addf %104, %110 : vector<12x16x32xf32>
    %c0_72 = arith.constant 0 : index
    %c3 = arith.constant 3 : index
    %c0_73 = arith.constant 0 : index
    %112 = vector.load %arg9[%c0_72, %c3, %c0_73] : memref<12x20x32xf32, #tpu.memory_space<vmem>>, vector<12x16x32xf32>
    %113 = vector.extract_strided_slice %88 {offsets = [0, 3, 0], sizes = [1, 1, 32], strides = [1, 1, 1]} : vector<4x5x32xf32> to vector<1x1x32xf32>
    %114 = vector.shape_cast %113 : vector<1x1x32xf32> to vector<32xf32>
    %115 = vector.shape_cast %114 : vector<32xf32> to vector<1x1x32xf32>
    %116 = vector.broadcast %115 : vector<1x1x32xf32> to vector<12x16x32xf32>
    %117 = arith.mulf %112, %116 : vector<12x16x32xf32>
    %118 = arith.addf %111, %117 : vector<12x16x32xf32>
    %c0_74 = arith.constant 0 : index
    %c4 = arith.constant 4 : index
    %c0_75 = arith.constant 0 : index
    %119 = vector.load %arg9[%c0_74, %c4, %c0_75] : memref<12x20x32xf32, #tpu.memory_space<vmem>>, vector<12x16x32xf32>
    %120 = vector.extract_strided_slice %88 {offsets = [0, 4, 0], sizes = [1, 1, 32], strides = [1, 1, 1]} : vector<4x5x32xf32> to vector<1x1x32xf32>
    %121 = vector.shape_cast %120 : vector<1x1x32xf32> to vector<32xf32>
    %122 = vector.shape_cast %121 : vector<32xf32> to vector<1x1x32xf32>
    %123 = vector.broadcast %122 : vector<1x1x32xf32> to vector<12x16x32xf32>
    %124 = arith.mulf %119, %123 : vector<12x16x32xf32>
    %125 = arith.addf %118, %124 : vector<12x16x32xf32>
    %126 = vector.extract_strided_slice %89 {offsets = [0, 0], sizes = [1, 32], strides = [1, 1]} : vector<2x32xf32> to vector<1x32xf32>
    %127 = vector.shape_cast %126 : vector<1x32xf32> to vector<32xf32>
    %128 = vector.shape_cast %127 : vector<32xf32> to vector<1x1x32xf32>
    %129 = vector.broadcast %128 : vector<1x1x32xf32> to vector<12x16x32xf32>
    %130 = arith.addf %125, %129 : vector<12x16x32xf32>
    %cst_76 = arith.constant 0.000000e+00 : f32
    %131 = vector.shape_cast %82 : vector<12x1x1xi1> to vector<12x1x1xi1>
    %132 = vector.broadcast %131 : vector<12x1x1xi1> to vector<12x16x32xi1>
    %133 = vector.broadcast %cst_76 : f32 to vector<12x16x32xf32>
    %134 = arith.select %132, %130, %133 : vector<12x16x32xi1>, vector<12x16x32xf32>
    %cst_77 = arith.constant 0.000000e+00 : f32
    %135 = vector.broadcast %cst_77 : f32 to vector<8x16x32xf32>
    %136 = vector.extract_strided_slice %134 {offsets = [0, 0, 0], sizes = [8, 16, 32], strides = [1, 1, 1]} : vector<12x16x32xf32> to vector<8x16x32xf32>
    %137 = vector.extract_strided_slice %88 {offsets = [1, 0, 0], sizes = [1, 1, 32], strides = [1, 1, 1]} : vector<4x5x32xf32> to vector<1x1x32xf32>
    %138 = vector.shape_cast %137 : vector<1x1x32xf32> to vector<32xf32>
    %139 = vector.shape_cast %138 : vector<32xf32> to vector<1x1x32xf32>
    %140 = vector.broadcast %139 : vector<1x1x32xf32> to vector<8x16x32xf32>
    %141 = arith.mulf %136, %140 : vector<8x16x32xf32>
    %142 = arith.addf %135, %141 : vector<8x16x32xf32>
    %143 = vector.extract_strided_slice %134 {offsets = [1, 0, 0], sizes = [8, 16, 32], strides = [1, 1, 1]} : vector<12x16x32xf32> to vector<8x16x32xf32>
    %144 = vector.extract_strided_slice %88 {offsets = [1, 1, 0], sizes = [1, 1, 32], strides = [1, 1, 1]} : vector<4x5x32xf32> to vector<1x1x32xf32>
    %145 = vector.shape_cast %144 : vector<1x1x32xf32> to vector<32xf32>
    %146 = vector.shape_cast %145 : vector<32xf32> to vector<1x1x32xf32>
    %147 = vector.broadcast %146 : vector<1x1x32xf32> to vector<8x16x32xf32>
    %148 = arith.mulf %143, %147 : vector<8x16x32xf32>
    %149 = arith.addf %142, %148 : vector<8x16x32xf32>
    %150 = vector.extract_strided_slice %134 {offsets = [2, 0, 0], sizes = [8, 16, 32], strides = [1, 1, 1]} : vector<12x16x32xf32> to vector<8x16x32xf32>
    %151 = vector.extract_strided_slice %88 {offsets = [1, 2, 0], sizes = [1, 1, 32], strides = [1, 1, 1]} : vector<4x5x32xf32> to vector<1x1x32xf32>
    %152 = vector.shape_cast %151 : vector<1x1x32xf32> to vector<32xf32>
    %153 = vector.shape_cast %152 : vector<32xf32> to vector<1x1x32xf32>
    %154 = vector.broadcast %153 : vector<1x1x32xf32> to vector<8x16x32xf32>
    %155 = arith.mulf %150, %154 : vector<8x16x32xf32>
    %156 = arith.addf %149, %155 : vector<8x16x32xf32>
    %157 = vector.extract_strided_slice %134 {offsets = [3, 0, 0], sizes = [8, 16, 32], strides = [1, 1, 1]} : vector<12x16x32xf32> to vector<8x16x32xf32>
    %158 = vector.extract_strided_slice %88 {offsets = [1, 3, 0], sizes = [1, 1, 32], strides = [1, 1, 1]} : vector<4x5x32xf32> to vector<1x1x32xf32>
    %159 = vector.shape_cast %158 : vector<1x1x32xf32> to vector<32xf32>
    %160 = vector.shape_cast %159 : vector<32xf32> to vector<1x1x32xf32>
    %161 = vector.broadcast %160 : vector<1x1x32xf32> to vector<8x16x32xf32>
    %162 = arith.mulf %157, %161 : vector<8x16x32xf32>
    %163 = arith.addf %156, %162 : vector<8x16x32xf32>
    %164 = vector.extract_strided_slice %134 {offsets = [4, 0, 0], sizes = [8, 16, 32], strides = [1, 1, 1]} : vector<12x16x32xf32> to vector<8x16x32xf32>
    %165 = vector.extract_strided_slice %88 {offsets = [1, 4, 0], sizes = [1, 1, 32], strides = [1, 1, 1]} : vector<4x5x32xf32> to vector<1x1x32xf32>
    %166 = vector.shape_cast %165 : vector<1x1x32xf32> to vector<32xf32>
    %167 = vector.shape_cast %166 : vector<32xf32> to vector<1x1x32xf32>
    %168 = vector.broadcast %167 : vector<1x1x32xf32> to vector<8x16x32xf32>
    %169 = arith.mulf %164, %168 : vector<8x16x32xf32>
    %170 = arith.addf %163, %169 : vector<8x16x32xf32>
    %cst_78 = arith.constant 0.000000e+00 : f32
    %171 = vector.broadcast %cst_78 : f32 to vector<8x16x32xf32>
    %c0_79 = arith.constant 0 : index
    %c2_80 = arith.constant 2 : index
    %c0_81 = arith.constant 0 : index
    %172 = vector.load %arg9[%c0_79, %c2_80, %c0_81] : memref<12x20x32xf32, #tpu.memory_space<vmem>>, vector<8x16x32xf32>
    %173 = vector.extract_strided_slice %88 {offsets = [2, 0, 0], sizes = [1, 1, 32], strides = [1, 1, 1]} : vector<4x5x32xf32> to vector<1x1x32xf32>
    %174 = vector.shape_cast %173 : vector<1x1x32xf32> to vector<32xf32>
    %175 = vector.shape_cast %174 : vector<32xf32> to vector<1x1x32xf32>
    %176 = vector.broadcast %175 : vector<1x1x32xf32> to vector<8x16x32xf32>
    %177 = arith.mulf %172, %176 : vector<8x16x32xf32>
    %178 = arith.addf %171, %177 : vector<8x16x32xf32>
    %c1_82 = arith.constant 1 : index
    %c2_83 = arith.constant 2 : index
    %c0_84 = arith.constant 0 : index
    %179 = vector.load %arg9[%c1_82, %c2_83, %c0_84] : memref<12x20x32xf32, #tpu.memory_space<vmem>>, vector<8x16x32xf32>
    %180 = vector.extract_strided_slice %88 {offsets = [2, 1, 0], sizes = [1, 1, 32], strides = [1, 1, 1]} : vector<4x5x32xf32> to vector<1x1x32xf32>
    %181 = vector.shape_cast %180 : vector<1x1x32xf32> to vector<32xf32>
    %182 = vector.shape_cast %181 : vector<32xf32> to vector<1x1x32xf32>
    %183 = vector.broadcast %182 : vector<1x1x32xf32> to vector<8x16x32xf32>
    %184 = arith.mulf %179, %183 : vector<8x16x32xf32>
    %185 = arith.addf %178, %184 : vector<8x16x32xf32>
    %c2_85 = arith.constant 2 : index
    %c2_86 = arith.constant 2 : index
    %c0_87 = arith.constant 0 : index
    %186 = vector.load %arg9[%c2_85, %c2_86, %c0_87] : memref<12x20x32xf32, #tpu.memory_space<vmem>>, vector<8x16x32xf32>
    %187 = vector.extract_strided_slice %88 {offsets = [2, 2, 0], sizes = [1, 1, 32], strides = [1, 1, 1]} : vector<4x5x32xf32> to vector<1x1x32xf32>
    %188 = vector.shape_cast %187 : vector<1x1x32xf32> to vector<32xf32>
    %189 = vector.shape_cast %188 : vector<32xf32> to vector<1x1x32xf32>
    %190 = vector.broadcast %189 : vector<1x1x32xf32> to vector<8x16x32xf32>
    %191 = arith.mulf %186, %190 : vector<8x16x32xf32>
    %192 = arith.addf %185, %191 : vector<8x16x32xf32>
    %c3_88 = arith.constant 3 : index
    %c2_89 = arith.constant 2 : index
    %c0_90 = arith.constant 0 : index
    %193 = vector.load %arg9[%c3_88, %c2_89, %c0_90] : memref<12x20x32xf32, #tpu.memory_space<vmem>>, vector<8x16x32xf32>
    %194 = vector.extract_strided_slice %88 {offsets = [2, 3, 0], sizes = [1, 1, 32], strides = [1, 1, 1]} : vector<4x5x32xf32> to vector<1x1x32xf32>
    %195 = vector.shape_cast %194 : vector<1x1x32xf32> to vector<32xf32>
    %196 = vector.shape_cast %195 : vector<32xf32> to vector<1x1x32xf32>
    %197 = vector.broadcast %196 : vector<1x1x32xf32> to vector<8x16x32xf32>
    %198 = arith.mulf %193, %197 : vector<8x16x32xf32>
    %199 = arith.addf %192, %198 : vector<8x16x32xf32>
    %c4_91 = arith.constant 4 : index
    %c2_92 = arith.constant 2 : index
    %c0_93 = arith.constant 0 : index
    %200 = vector.load %arg9[%c4_91, %c2_92, %c0_93] : memref<12x20x32xf32, #tpu.memory_space<vmem>>, vector<8x16x32xf32>
    %201 = vector.extract_strided_slice %88 {offsets = [2, 4, 0], sizes = [1, 1, 32], strides = [1, 1, 1]} : vector<4x5x32xf32> to vector<1x1x32xf32>
    %202 = vector.shape_cast %201 : vector<1x1x32xf32> to vector<32xf32>
    %203 = vector.shape_cast %202 : vector<32xf32> to vector<1x1x32xf32>
    %204 = vector.broadcast %203 : vector<1x1x32xf32> to vector<8x16x32xf32>
    %205 = arith.mulf %200, %204 : vector<8x16x32xf32>
    %206 = arith.addf %199, %205 : vector<8x16x32xf32>
    %207 = vector.extract_strided_slice %89 {offsets = [1, 0], sizes = [1, 32], strides = [1, 1]} : vector<2x32xf32> to vector<1x32xf32>
    %208 = vector.shape_cast %207 : vector<1x32xf32> to vector<32xf32>
    %209 = vector.shape_cast %208 : vector<32xf32> to vector<1x1x32xf32>
    %210 = vector.broadcast %209 : vector<1x1x32xf32> to vector<8x16x32xf32>
    %211 = arith.addf %206, %210 : vector<8x16x32xf32>
    %c0_94 = arith.constant 0 : index
    %c2_95 = arith.constant 2 : index
    %c0_96 = arith.constant 0 : index
    %212 = vector.load %arg10[%c0_94, %c2_95, %c0_96] : memref<8x20x32xf32, #tpu.memory_space<vmem>>, vector<8x16x32xf32>
    tpu.vector_store %arg10[%c0_94, %c2_95, %c0_96], %211 {strides = array<i32>} : memref<8x20x32xf32, #tpu.memory_space<vmem>>, vector<8x16x32xf32>,
    %cst_97 = arith.constant 0.000000e+00 : f32
    %213 = vector.broadcast %cst_97 : f32 to vector<8x16x32xf32>
    %c0_98 = arith.constant 0 : index
    %c0_99 = arith.constant 0 : index
    %c0_100 = arith.constant 0 : index
    %214 = vector.load %arg10[%c0_98, %c0_99, %c0_100] : memref<8x20x32xf32, #tpu.memory_space<vmem>>, vector<8x16x32xf32>
    %215 = vector.extract_strided_slice %88 {offsets = [3, 0, 0], sizes = [1, 1, 32], strides = [1, 1, 1]} : vector<4x5x32xf32> to vector<1x1x32xf32>
    %216 = vector.shape_cast %215 : vector<1x1x32xf32> to vector<32xf32>
    %217 = vector.shape_cast %216 : vector<32xf32> to vector<1x1x32xf32>
    %218 = vector.broadcast %217 : vector<1x1x32xf32> to vector<8x16x32xf32>
    %219 = arith.mulf %214, %218 : vector<8x16x32xf32>
    %220 = arith.addf %213, %219 : vector<8x16x32xf32>
    %c0_101 = arith.constant 0 : index
    %c1_102 = arith.constant 1 : index
    %c0_103 = arith.constant 0 : index
    %221 = vector.load %arg10[%c0_101, %c1_102, %c0_103] : memref<8x20x32xf32, #tpu.memory_space<vmem>>, vector<8x16x32xf32>
    %222 = vector.extract_strided_slice %88 {offsets = [3, 1, 0], sizes = [1, 1, 32], strides = [1, 1, 1]} : vector<4x5x32xf32> to vector<1x1x32xf32>
    %223 = vector.shape_cast %222 : vector<1x1x32xf32> to vector<32xf32>
    %224 = vector.shape_cast %223 : vector<32xf32> to vector<1x1x32xf32>
    %225 = vector.broadcast %224 : vector<1x1x32xf32> to vector<8x16x32xf32>
    %226 = arith.mulf %221, %225 : vector<8x16x32xf32>
    %227 = arith.addf %220, %226 : vector<8x16x32xf32>
    %c0_104 = arith.constant 0 : index
    %c2_105 = arith.constant 2 : index
    %c0_106 = arith.constant 0 : index
    %228 = vector.load %arg10[%c0_104, %c2_105, %c0_106] : memref<8x20x32xf32, #tpu.memory_space<vmem>>, vector<8x16x32xf32>
    %229 = vector.extract_strided_slice %88 {offsets = [3, 2, 0], sizes = [1, 1, 32], strides = [1, 1, 1]} : vector<4x5x32xf32> to vector<1x1x32xf32>
    %230 = vector.shape_cast %229 : vector<1x1x32xf32> to vector<32xf32>
    %231 = vector.shape_cast %230 : vector<32xf32> to vector<1x1x32xf32>
    %232 = vector.broadcast %231 : vector<1x1x32xf32> to vector<8x16x32xf32>
    %233 = arith.mulf %228, %232 : vector<8x16x32xf32>
    %234 = arith.addf %227, %233 : vector<8x16x32xf32>
    %c0_107 = arith.constant 0 : index
    %c3_108 = arith.constant 3 : index
    %c0_109 = arith.constant 0 : index
    %235 = vector.load %arg10[%c0_107, %c3_108, %c0_109] : memref<8x20x32xf32, #tpu.memory_space<vmem>>, vector<8x16x32xf32>
    %236 = vector.extract_strided_slice %88 {offsets = [3, 3, 0], sizes = [1, 1, 32], strides = [1, 1, 1]} : vector<4x5x32xf32> to vector<1x1x32xf32>
    %237 = vector.shape_cast %236 : vector<1x1x32xf32> to vector<32xf32>
    %238 = vector.shape_cast %237 : vector<32xf32> to vector<1x1x32xf32>
    %239 = vector.broadcast %238 : vector<1x1x32xf32> to vector<8x16x32xf32>
    %240 = arith.mulf %235, %239 : vector<8x16x32xf32>
    %241 = arith.addf %234, %240 : vector<8x16x32xf32>
    %c0_110 = arith.constant 0 : index
    %c4_111 = arith.constant 4 : index
    %c0_112 = arith.constant 0 : index
    %242 = vector.load %arg10[%c0_110, %c4_111, %c0_112] : memref<8x20x32xf32, #tpu.memory_space<vmem>>, vector<8x16x32xf32>
    %243 = vector.extract_strided_slice %88 {offsets = [3, 4, 0], sizes = [1, 1, 32], strides = [1, 1, 1]} : vector<4x5x32xf32> to vector<1x1x32xf32>
    %244 = vector.shape_cast %243 : vector<1x1x32xf32> to vector<32xf32>
    %245 = vector.shape_cast %244 : vector<32xf32> to vector<1x1x32xf32>
    %246 = vector.broadcast %245 : vector<1x1x32xf32> to vector<8x16x32xf32>
    %247 = arith.mulf %242, %246 : vector<8x16x32xf32>
    %248 = arith.addf %241, %247 : vector<8x16x32xf32>
    %249 = arith.addf %170, %248 : vector<8x16x32xf32>
    %250 = vector.extract_strided_slice %249 {offsets = [0, 0, 0], sizes = [8, 1, 32], strides = [1, 1, 1]} : vector<8x16x32xf32> to vector<8x1x32xf32>
    %251 = vector.shape_cast %250 : vector<8x1x32xf32> to vector<8x32xf32>
    %252 = vector.extract_strided_slice %249 {offsets = [0, 1, 0], sizes = [8, 1, 32], strides = [1, 1, 1]} : vector<8x16x32xf32> to vector<8x1x32xf32>
    %253 = vector.shape_cast %252 : vector<8x1x32xf32> to vector<8x32xf32>
    %254 = vector.extract_strided_slice %249 {offsets = [0, 2, 0], sizes = [8, 1, 32], strides = [1, 1, 1]} : vector<8x16x32xf32> to vector<8x1x32xf32>
    %255 = vector.shape_cast %254 : vector<8x1x32xf32> to vector<8x32xf32>
    %256 = vector.extract_strided_slice %249 {offsets = [0, 3, 0], sizes = [8, 1, 32], strides = [1, 1, 1]} : vector<8x16x32xf32> to vector<8x1x32xf32>
    %257 = vector.shape_cast %256 : vector<8x1x32xf32> to vector<8x32xf32>
    %258 = vector.extract_strided_slice %249 {offsets = [0, 4, 0], sizes = [8, 1, 32], strides = [1, 1, 1]} : vector<8x16x32xf32> to vector<8x1x32xf32>
    %259 = vector.shape_cast %258 : vector<8x1x32xf32> to vector<8x32xf32>
    %260 = vector.extract_strided_slice %249 {offsets = [0, 5, 0], sizes = [8, 1, 32], strides = [1, 1, 1]} : vector<8x16x32xf32> to vector<8x1x32xf32>
    %261 = vector.shape_cast %260 : vector<8x1x32xf32> to vector<8x32xf32>
    %262 = vector.extract_strided_slice %249 {offsets = [0, 6, 0], sizes = [8, 1, 32], strides = [1, 1, 1]} : vector<8x16x32xf32> to vector<8x1x32xf32>
    %263 = vector.shape_cast %262 : vector<8x1x32xf32> to vector<8x32xf32>
    %264 = vector.extract_strided_slice %249 {offsets = [0, 7, 0], sizes = [8, 1, 32], strides = [1, 1, 1]} : vector<8x16x32xf32> to vector<8x1x32xf32>
    %265 = vector.shape_cast %264 : vector<8x1x32xf32> to vector<8x32xf32>
    %266 = vector.extract_strided_slice %249 {offsets = [0, 8, 0], sizes = [8, 1, 32], strides = [1, 1, 1]} : vector<8x16x32xf32> to vector<8x1x32xf32>
    %267 = vector.shape_cast %266 : vector<8x1x32xf32> to vector<8x32xf32>
    %268 = vector.extract_strided_slice %249 {offsets = [0, 9, 0], sizes = [8, 1, 32], strides = [1, 1, 1]} : vector<8x16x32xf32> to vector<8x1x32xf32>
    %269 = vector.shape_cast %268 : vector<8x1x32xf32> to vector<8x32xf32>
    %270 = vector.extract_strided_slice %249 {offsets = [0, 10, 0], sizes = [8, 1, 32], strides = [1, 1, 1]} : vector<8x16x32xf32> to vector<8x1x32xf32>
    %271 = vector.shape_cast %270 : vector<8x1x32xf32> to vector<8x32xf32>
    %272 = vector.extract_strided_slice %249 {offsets = [0, 11, 0], sizes = [8, 1, 32], strides = [1, 1, 1]} : vector<8x16x32xf32> to vector<8x1x32xf32>
    %273 = vector.shape_cast %272 : vector<8x1x32xf32> to vector<8x32xf32>
    %274 = vector.extract_strided_slice %249 {offsets = [0, 12, 0], sizes = [8, 1, 32], strides = [1, 1, 1]} : vector<8x16x32xf32> to vector<8x1x32xf32>
    %275 = vector.shape_cast %274 : vector<8x1x32xf32> to vector<8x32xf32>
    %276 = vector.extract_strided_slice %249 {offsets = [0, 13, 0], sizes = [8, 1, 32], strides = [1, 1, 1]} : vector<8x16x32xf32> to vector<8x1x32xf32>
    %277 = vector.shape_cast %276 : vector<8x1x32xf32> to vector<8x32xf32>
    %278 = vector.extract_strided_slice %249 {offsets = [0, 14, 0], sizes = [8, 1, 32], strides = [1, 1, 1]} : vector<8x16x32xf32> to vector<8x1x32xf32>
    %279 = vector.shape_cast %278 : vector<8x1x32xf32> to vector<8x32xf32>
    %280 = vector.extract_strided_slice %249 {offsets = [0, 15, 0], sizes = [8, 1, 32], strides = [1, 1, 1]} : vector<8x16x32xf32> to vector<8x1x32xf32>
    %281 = vector.shape_cast %280 : vector<8x1x32xf32> to vector<8x32xf32>
    %282 = tpu.concatenate %251, %253, %255, %257, %259, %261, %263, %265, %267, %269, %271, %273, %275, %277, %279, %281 in 1 : vector<8x32xf32>, vector<8x32xf32>, vector<8x32xf32>, vector<8x32xf32>, vector<8x32xf32>, vector<8x32xf32>, vector<8x32xf32>, vector<8x32xf32>, vector<8x32xf32>, vector<8x32xf32>, vector<8x32xf32>, vector<8x32xf32>, vector<8x32xf32>, vector<8x32xf32>, vector<8x32xf32>, vector<8x32xf32> -> vector<8x512xf32>
    %c0_113 = arith.constant 0 : index
    %c0_114 = arith.constant 0 : index
    %283 = vector.load %arg7[%c0_113, %c0_114] : memref<2x512xf32, #tpu.memory_space<vmem>>, vector<2x512xf32>
    %284 = vector.extract_strided_slice %283 {offsets = [0, 0], sizes = [1, 512], strides = [1, 1]} : vector<2x512xf32> to vector<1x512xf32>
    %285 = vector.shape_cast %284 : vector<1x512xf32> to vector<512xf32>
    %286 = vector.shape_cast %285 : vector<512xf32> to vector<1x512xf32>
    %287 = vector.broadcast %286 : vector<1x512xf32> to vector<8x512xf32>
    %288 = arith.mulf %282, %287 : vector<8x512xf32>
    %289 = vector.extract_strided_slice %283 {offsets = [1, 0], sizes = [1, 512], strides = [1, 1]} : vector<2x512xf32> to vector<1x512xf32>
    %290 = vector.shape_cast %289 : vector<1x512xf32> to vector<512xf32>
    %291 = vector.shape_cast %290 : vector<512xf32> to vector<1x512xf32>
    %292 = vector.broadcast %291 : vector<1x512xf32> to vector<8x512xf32>
    %293 = arith.addf %288, %292 : vector<8x512xf32>
    %cst_115 = arith.constant 0.000000e+00 : f32
    %294 = vector.broadcast %cst_115 : f32 to vector<8x512xf32>
    %295 = arith.maximumf %293, %294 : vector<8x512xf32>
    %c0_116 = arith.constant 0 : index
    %c0_117 = arith.constant 0 : index
    %c0_118 = arith.constant 0 : index
    %296 = vector.load %arg8[%c0_116, %c0_117, %c0_118] : memref<1x8x512xf32, #tpu.memory_space<vmem>>, vector<1x8x512xf32>
    %297 = vector.shape_cast %296 : vector<1x8x512xf32> to vector<8x512xf32>
    %298 = vector.shape_cast %295 : vector<8x512xf32> to vector<1x8x512xf32>
    tpu.vector_store %arg8[%c0_116, %c0_117, %c0_118], %298 {strides = array<i32>} : memref<1x8x512xf32, #tpu.memory_space<vmem>>, vector<1x8x512xf32>,
    return
  }
  func.func @transform_0(%arg0: i32, %arg1: i32) -> (i32, i32, i32, i32) {
    %c0_i32 = arith.constant 0 : i32
    %c0_i32_0 = arith.constant 0 : i32
    %c0_i32_1 = arith.constant 0 : i32
    %c0_i32_2 = arith.constant 0 : i32
    return %arg0, %c0_i32, %c0_i32_0, %c0_i32_1 : i32, i32, i32, i32
  }
  func.func @transform_1(%arg0: i32, %arg1: i32) -> (i32, i32) {
    %c0_i32 = arith.constant 0 : i32
    %c0_i32_0 = arith.constant 0 : i32
    %c0_i32_1 = arith.constant 0 : i32
    return %c0_i32, %c0_i32_0 : i32, i32
  }
  func.func @transform_2(%arg0: i32, %arg1: i32) -> (i32, i32) {
    %c0_i32 = arith.constant 0 : i32
    %c0_i32_0 = arith.constant 0 : i32
    %c0_i32_1 = arith.constant 0 : i32
    return %c0_i32, %c0_i32_0 : i32, i32
  }
  func.func @transform_3(%arg0: i32, %arg1: i32) -> (i32, i32, i32) {
    %c0_i32 = arith.constant 0 : i32
    %c0_i32_0 = arith.constant 0 : i32
    %c0_i32_1 = arith.constant 0 : i32
    %c0_i32_2 = arith.constant 0 : i32
    return %c0_i32, %c0_i32_0, %c0_i32_1 : i32, i32, i32
  }
  func.func @transform_4(%arg0: i32, %arg1: i32) -> (i32, i32) {
    %c0_i32 = arith.constant 0 : i32
    %c0_i32_0 = arith.constant 0 : i32
    %c0_i32_1 = arith.constant 0 : i32
    return %c0_i32, %c0_i32_0 : i32, i32
  }
  func.func @transform_5(%arg0: i32, %arg1: i32) -> (i32, i32) {
    %c0_i32 = arith.constant 0 : i32
    %c0_i32_0 = arith.constant 0 : i32
    %c0_i32_1 = arith.constant 0 : i32
    return %c0_i32, %c0_i32_0 : i32, i32
  }
  func.func @transform_6(%arg0: i32, %arg1: i32) -> (i32, i32, i32) {
    %c0_i32 = arith.constant 0 : i32
    %c0_i32_0 = arith.constant 0 : i32
    return %arg0, %arg1, %c0_i32 : i32, i32, i32
  }
}

</mosaic_0001>

<bundles_post_ra>
// kernel: tpu_custom_call.1
= control target key start
LH: loop header
LB: loop body
LE: loop exit
PB: predicated region body
PF: predicated region fallthrough
CT: control target
= control target key end

     0   :  { %11 = vsyncpa [#allocation5], 0  ;;  %s7165_s0 = inlined_call_operand.vmem [shape: f32[2,22,18,8], index: 0, kind: input, shape index: {}]   ;;  %s7166_s1 = inlined_call_operand.vmem [shape: bf16[72,32], index: 1, kind: input, shape index: {}]   ;;  %s7167_s2 = inlined_call_operand.vmem [shape: f32[2,32], index: 2, kind: input, shape index: {}]   ;;  %s7168_s3 = inlined_call_operand.vmem [shape: f32[4,5,32], index: 3, kind: input, shape index: {}]   ;;  %s7169_s4 = inlined_call_operand.vmem [shape: f32[2,32], index: 4, kind: input, shape index: {}]   ;;  %s7170_s5 = inlined_call_operand.vmem [shape: f32[2,512], index: 5, kind: input, shape index: {}]   ;;  %s7171_s6 = inlined_call_operand.hbm [shape: f32[2,16,512], index: 6, kind: output, shape index: {}]  }
   0x1   :  { %13 = vsyncpa [#allocation5 + $0x1], 0  ;;  %s4541_s21 = smov 0   ;;  %s4543_s22 = smov 0  }
   0x2   :  { %s4545_s23 = smov 0   ;;  %s4547_s24 = smov 0  }
   0x3   :  { %s4549_s25 = smov 0   ;;  %s4551_s26 = smov 0  }
   0x4   :  { %s4553_s27 = smov 0   ;;  %s4555_s28 = smov 0  }
   0x5 LB: > { %s3586_s29 = sadd.s32 4294967295, %s4493_s28   ;;  %s3587_s30 = sadd.s32 4294967294, %s4493_s28   ;;  %s4493_s28 = sphi %s4555_s28, %s19_s28   ;;  %s4489_s27 = sphi %s4553_s27, %s7393_s27   ;;  %s4485_s26 = sphi %s4551_s26, %s7392_s26   ;;  %s4481_s25 = sphi %s4549_s25, %s7391_s25   ;;  %s4477_s24 = sphi %s4547_s24, %s7390_s24   ;;  %s4473_s23 = sphi %s4545_s23, %s7389_s23   ;;  %s4469_s22 = sphi %s4543_s22, %s7388_s22   ;;  %s4465_s21 = sphi %s4541_s21, %s7387_s21  }
   0x6   : > { %s28_s7 = sadd.s32 1, %s4485_s26  ;;  %s31_s8 = sadd.s32 1, %s4489_s27 }
   0x7   : > { %p29_p0 = scmp.ge.s32.totalorder %s28_s7, 2  ;;  %p181_p1 = scmp.ne.s32.totalorder %s4473_s23, %s4469_s22 }
   0x8   : > { %p182_p2 = scmp.eq.s32.totalorder %s3586_s29, 3  ;;  %p187_p5 = scmp.ne.s32.totalorder %s4469_s22, %s4465_s21 }
   0x9   : > { %s7395_s7 = smov (%p29_p0, %s28_s7), 0  ;;  %s7397_s8 = smov (!%p29_p0, %s31_s8), %s4489_s27 }
   0xa   : > { %s167_s9 = ssub.s32 %s4485_s26, %s7395_s7  ;;  %p4592_p3 = por %p182_p2, %p181_p1 }
   0xb   : > { %p33_p4 = scmp.ge.s32.totalorder %s7397_s8, 2  ;;  %p188_p6 = scmp.eq.s32.totalorder %s3587_s30, 3 }
   0xc   : > { %p3590_p7 = scmp.ge.s32.totalorder %s4493_s28, 1  ;;  %p229_p9 = scmp.lt.s32.totalorder %s4493_s28, 5 }
   0xd   : > { %s7399_s8 = smov (%p33_p4, %s7397_s8), 0  ;;  %p4601_p8 = por %p188_p6, %p187_p5 }
   0xe   : > { %s166_s12 = ssub.s32 %s4489_s27, %s7399_s8  ;;  %s171_s13 = sadd.s32 1, %s4473_s23 }
   0xf   : > { %s168_s14 = sor.u32 %s167_s9, %s166_s12  ;;  %p230_p10 = pnand %p3590_p7, %p229_p9 }
  0x10   : > { %p169_p11 = scmp.eq.s32.totalorder %s168_s14, 0 }
  0x11   : > { %233 = sbr.rel (%p230_p10) target bundleno = 853 (0x355), region = 44 }
  0x12   : > { %s4610_s15 = scalar_select %p169_p11, %s4473_s23, %s171_s13  }
  0x18   : > { %p259_p12 = scmp.lt.s32.totalorder %s4481_s25, 1  ;;  %s3594_s17 = smul.u32 192, %s4477_s24  ;;  %v4392_v29 = vld [vmem:[%s7166_s1] sm:$0xff]   ;;  %v4393_v30 = vld [vmem:[%s7166_s1 + $0x8] sm:$0xff]   ;;  %v4394_v32 = vld [vmem:[%s7166_s1 + $0x10] sm:$0xff]   ;;  %vm1584_vm0 = vcmask 1043456  }
  0x19   : > { %s4495_s9 = smov 16   ;;  %s4496_s12 = smov 8   ;;  %3784 = vmatprep.subr.bf16.mxu0 %v4392_v29  ;;  %3818 = vmatprep.subr.bf16.mxu1 %v4392_v29  ;;  %v4395_v37 = vld [vmem:[%s7166_s1 + $0x18] sm:$0xff]   ;;  %v4396_v42 = vld [vmem:[%s7166_s1 + $0x20] ss:$0 sps:$4 sm:$0xff]   ;;  %vm1299_vm1 = vcmask 64512  }
  0x1a   : > { %s260_s16 = scalar_select %p259_p12, %s4481_s25, 1  ;;  %3785 = vmatpush3.bf16.msra.mxu0 %v4392_v29  ;;  %3823 = vmatpush3.bf16.msra.mxu1 %v4392_v29  ;;  %v1586_v46 = vsel %vm1584_vm0, %v4396_v42, 0  ;;  %vm1324_vm2 = vcmask 130048   ;;  %vm1349_vm3 = vcmask 195584   ;;  %vm1374_vm4 = vcmask 261120  }
  0x1b   : > { %s4497_s13 = smov 24   ;;  %s4498_s14 = smov 32   ;;  %3786 = vmatprep.subr.bf16.mxu0 %v4393_v30  ;;  %3819 = vmatprep.subr.bf16.mxu1 %v4393_v30  ;;  %vm1399_vm5 = vcmask 326656   ;;  %vm1424_vm6 = vcmask 392192   ;;  %vm1449_vm7 = vcmask 457728   ;;  %vm1474_vm8 = vcmask 523264  }
  0x1c   : > { %s3830_s18 = smul.u32 528, %s260_s16  ;;  %s4499_s16 = smov 40   ;;  %vm1547_vm9 = vcmask 588800   ;;  %vm265_vm10 = vcmask 254976  }
  0x1d   : > { %s4501_s19 = smov 56  }
  0x1e   : > { %s263_s29 = scalar_lea.vmem %s7165_s0, %s3830_s18  ;;  %3787 = vmatpush3.bf16.msra.mxu0 %v4393_v30  ;;  %3824 = vmatpush3.bf16.msra.mxu1 %v4393_v30  ;;  %s4502_s18 = smov 64  }
  0x1f   : > { %s4618_s30 = scalar_lea.vmem %s263_s29, %s3594_s17  ;;  %s4500_s29 = smov 48   ;;  %3788 = vmatprep.subr.bf16.mxu0 %v4394_v32  ;;  %3820 = vmatprep.subr.bf16.mxu1 %v4394_v32 }
  0x20   : > { %v357_v0 = vld [vmem:[%s4618_s30 + $0x2] sm:$0xff]  ;;  %v358_v1 = vld [vmem:[%s4618_s30 + $0xa] sm:$0xff]  ;;  %v359_v5 = vld [vmem:[%s4618_s30 + $0x1a] sm:$0xff] }
  0x21   : > { %v333_v2 = vld [vmem:[%s4618_s30 + $0x1] sm:$0xff]  ;;  %v3922_v3 = vpack.i.bf16 %v358_v1, %v357_v0  ;;  %v334_v4 = vld [vmem:[%s4618_s30 + $0x9] sm:$0xff]  ;;  %v335_v8 = vld [vmem:[%s4618_s30 + $0x19] sm:$0xff] }
  0x22   : > { %v360_v6 = vld [vmem:[%s4618_s30 + $0x22] sm:$0xff]  ;;  %v3912_v7 = vpack.i.bf16 %v334_v4, %v333_v2  ;;  %v4631_v12 = vld [vmem:[%s4618_s30 + $0x30] sm:$0xff]  ;;  %v4634_v13 = vld [vmem:[%s4618_s30 + $0x38] sm:$0xff]  ;;  %3789 = vmatpush3.bf16.msra.mxu0 %v4394_v32  ;;  %3825 = vmatpush3.bf16.msra.mxu1 %v4394_v32 }
  0x23   : > { %v336_v9 = vld [vmem:[%s4618_s30 + $0x21] sm:$0xff]  ;;  %3923 = vrot.lane.b32.xlu1 %v3922_v3, %s4495_s9  ;;  %v3927_v10 = vpack.i.bf16 %v360_v6, %v359_v5  ;;  %v4637_v14 = vld [vmem:[%s4618_s30 + $0x18] sm:$0xff]  ;;  %v3937_v16 = vpack.i.bf16 %v4634_v13, %v4631_v12  ;;  %v4662_v25 = vld [vmem:[%s4618_s30 + $0x50] sm:$0xff]  ;;  %3790 = vmatprep.subr.bf16.mxu0 %v4395_v37 }
  0x24   : > { %3913 = vrot.lane.b32.xlu0 %v3912_v7, %s4496_s12  ;;  %v3917_v11 = vpack.i.bf16 %v336_v9, %v335_v8  ;;  %v4640_v15 = vld [vmem:[%s4618_s30 + $0x20] sm:$0xff]  ;;  %v3623_v18 = vld [vmem:[%s4618_s30 + $0x31] sm:$0xff]  ;;  %v4659_v24 = vld [vmem:[%s4618_s30 + $0x48] sm:$0xff]  ;;  %3821 = vmatprep.subr.bf16.mxu1 %v4395_v37 }
  0x25   : > { %v3932_v17 = vpack.i.bf16 %v4640_v15, %v4637_v14  ;;  %v3624_v19 = vld [vmem:[%s4618_s30 + $0x39] sm:$0xff]  ;;  %v4668_v26 = vpack.i.bf16 %v4662_v25, %v4659_v24  ;;  %v3697_v27 = vld [vmem:[%s4618_s30 + $0x49] sm:$0xff]  ;;  %v3698_v28 = vld [vmem:[%s4618_s30 + $0x51] sm:$0xff] }
  0x26   : > { %v3947_v20 = vpack.i.bf16 %v3624_v19, %v3623_v18  ;;  %v3647_v21 = vld [vmem:[%s4618_s30 + $0x32] sm:$0xff]  ;;  %v3648_v22 = vld [vmem:[%s4618_s30 + $0x3a] sm:$0xff]  ;;  %v4681_v31 = vpack.i.bf16 %v3698_v28, %v3697_v27  ;;  %v3721_v33 = vld [vmem:[%s4618_s30 + $0x4a] sm:$0xff]  ;;  %3791 = vmatpush3.bf16.msra.mxu0 %v4395_v37  ;;  %3826 = vmatpush3.bf16.msra.mxu1 %v4395_v37 }
  0x27   : > { %3928 = vrot.lane.b32.xlu1 %v3927_v10, %s4495_s9  ;;  %v4655_v23 = vpack.i.bf16 %v3648_v22, %v3647_v21  ;;  %v3722_v34 = vld [vmem:[%s4618_s30 + $0x52] sm:$0xff]  ;;  %v347_v40 = vld [vmem:[%s4618_s30 + $0xa9] sm:$0xff]  ;;  %v370_v45 = vld [vmem:[%s4618_s30 + $0x9a] sm:$0xff]  ;;  %3828 = vmatprep.subr.msk.bf16.mxu0 %vm1584_vm0, %v4396_v42 }
  0x28   : > { %3918 = vrot.lane.b32.xlu0 %v3917_v11, %s4496_s12  ;;  %v345_v35 = vld [vmem:[%s4618_s30 + $0x91] sm:$0xff]  ;;  %v346_v36 = vld [vmem:[%s4618_s30 + $0x99] sm:$0xff]  ;;  %v4698_v38 = vpack.i.bf16 %v3722_v34, %v3721_v33  ;;  %3829 = vmatprep.subr.msk.bf16.mxu1 %vm1584_vm0, %v4396_v42  ;;  %v4732_v51 = vld [vmem:[%s4618_s30 + $0xa8] sm:$0xff] }
  0x29   : > { %v4702_v39 = vpack.i.bf16 %v346_v36, %v345_v35  ;;  %v348_v41 = vld [vmem:[%s4618_s30 + $0xb1] sm:$0xff]  ;;  %v3611_v54 = vld [vmem:[%s4618_s30 + $0xc0] sm:$0xff]  ;;  %v3612_v55 = vld [vmem:[%s4618_s30 + $0xc8] sm:$0xff] }
  0x2a   : > { %v4711_v43 = vpack.i.bf16 %v348_v41, %v347_v40  ;;  %v369_v44 = vld [vmem:[%s4618_s30 + $0x92] sm:$0xff]  ;;  %v371_v48 = vld [vmem:[%s4618_s30 + $0xaa] sm:$0xff]  ;;  %3793 = vmatpush3.bf16.msra.mxu0 %v1586_v46  ;;  %3827 = vmatpush3.bf16.msra.mxu1 %v1586_v46  ;;  %v3603_v56 = vld [vmem:[%s4618_s30 + $0x60] sm:$0xff]  ;;  %v4047_v58 = vpack.i.bf16 %v3612_v55, %v3611_v54 }
  0x2b   : > { %3938 = vrot.lane.b32.xlu1 %v3937_v16, %s4497_s13  ;;  %v4719_v47 = vpack.i.bf16 %v370_v45, %v369_v44  ;;  %v372_v49 = vld [vmem:[%s4618_s30 + $0xb2] sm:$0xff]  ;;  %v3604_v57 = vld [vmem:[%s4618_s30 + $0x68] sm:$0xff]  ;;  %v3686_v9 = vld [vmem:[%s4618_s30 + $0xe0] sm:$0xff] }
  0x2c   : > { %3933 = vrot.lane.b32.xlu0 %v3932_v17, %s4497_s13  ;;  %v4727_v50 = vpack.i.bf16 %v372_v49, %v371_v48  ;;  %v4735_v52 = vld [vmem:[%s4618_s30 + $0xb0] sm:$0xff]  ;;  %v4042_v59 = vpack.i.bf16 %v3604_v57, %v3603_v56  ;;  %v3635_v60 = vld [vmem:[%s4618_s30 + $0xc1] sm:$0xff]  ;;  %v3685_v8 = vld [vmem:[%s4618_s30 + $0xd8] sm:$0xff] }
  0x2d   : > { %v4741_v53 = vpack.i.bf16 %v4735_v52, %v4732_v51  ;;  %v3636_v61 = vld [vmem:[%s4618_s30 + $0xc9] sm:$0xff]  ;;  %v3627_v62 = vld [vmem:[%s4618_s30 + $0x61] sm:$0xff]  ;;  %v3709_v18 = vld [vmem:[%s4618_s30 + $0xd9] sm:$0xff] }
  0x2e   : > { %v3628_v63 = vld [vmem:[%s4618_s30 + $0x69] sm:$0xff]  ;;  %v4067_v0 = vpack.i.bf16 %v3636_v61, %v3635_v60  ;;  %v3710_v19 = vld [vmem:[%s4618_s30 + $0xe1] sm:$0xff]  ;;  %v3616_v33 = vld [vmem:[%s4618_s30 + $0xf8] sm:$0xff] }
  0x2f   : > { %3948 = vrot.lane.b32.xlu1 %v3947_v20, %s4498_s14  ;;  %v4062_v1 = vpack.i.bf16 %v3628_v63, %v3627_v62  ;;  %v3659_v2 = vld [vmem:[%s4618_s30 + $0xc2] sm:$0xff]  ;;  %v3660_v3 = vld [vmem:[%s4618_s30 + $0xca] sm:$0xff]  ;;  %v4127_v22 = vpack.i.bf16 %v3710_v19, %v3709_v18  ;;  %v3725_v28 = vld [vmem:[%s4618_s30 + $0x7a] sm:$0xff] }
  0x30   : > { %3943 = vrot.lane.b32.xlu0 %v3917_v11, %s4498_s14  ;;  %v3651_v4 = vld [vmem:[%s4618_s30 + $0x62] sm:$0xff]  ;;  %v3652_v5 = vld [vmem:[%s4618_s30 + $0x6a] sm:$0xff]  ;;  %v4087_v6 = vpack.i.bf16 %v3660_v3, %v3659_v2  ;;  %v4813_v35 = vld [vmem:[%s4618_s30 + $0x98] sm:$0xff] }
  0x31   : > { %v4082_v7 = vpack.i.bf16 %v3652_v5, %v3651_v4  ;;  %v3678_v11 = vld [vmem:[%s4618_s30 + $0x80] sm:$0xff]  ;;  %v3615_v32 = vld [vmem:[%s4618_s30 + $0xf0] sm:$0xff]  ;;  %v3689_v3 = vld [vmem:[%s4618_s30 + $0x108] sm:$0xff] }
  0x32   : > { %v3702_v21 = vld [vmem:[%s4618_s30 + $0x81] sm:$0xff]  ;;  %v4810_v34 = vld [vmem:[%s4618_s30 + $0x90] sm:$0xff]  ;;  %v4207_v36 = vpack.i.bf16 %v3616_v33, %v3615_v32  ;;  %v3640_v42 = vld [vmem:[%s4618_s30 + $0xf9] sm:$0xff] }
  0x33   : > { %3958 = vrot.lane.b32.xlu1 %v4655_v23, %s4499_s16  ;;  %v3734_v27 = vld [vmem:[%s4618_s30 + $0xe2] sm:$0xff]  ;;  %v4819_v37 = vpack.i.bf16 %v4813_v35, %v4810_v34  ;;  %v3639_v41 = vld [vmem:[%s4618_s30 + $0xf1] sm:$0xff]  ;;  %v3664_v55 = vld [vmem:[%s4618_s30 + $0xfa] sm:$0xff] }
  0x34   : > { %3953 = vrot.lane.b32.xlu0 %v3927_v10, %s4499_s16  ;;  %v3677_v10 = vld [vmem:[%s4618_s30 + $0x78] sm:$0xff]  ;;  %v3726_v29 = vld [vmem:[%s4618_s30 + $0x82] sm:$0xff]  ;;  %v4831_v46 = vpack.i.bf16 %v3640_v42, %v3639_v41  ;;  %v3690_v4 = vld [vmem:[%s4618_s30 + $0x110] sm:$0xff] }
  0x35   : > { %v4102_v17 = vpack.i.bf16 %v3678_v11, %v3677_v10  ;;  %v3663_v54 = vld [vmem:[%s4618_s30 + $0xf2] sm:$0xff]  ;;  %v309_v61 = vld [vmem:[%s4618_s30] sm:$0xff] }
  0x36   : > { %v3714_v10 = vld [vmem:[%s4618_s30 + $0x111] sm:$0xff] }
  0x37   : > { %3968 = vrot.lane.b32.xlu1 %v4668_v26, %s4500_s29 }
  0x38   : > { %3963 = vrot.lane.b32.xlu0 %v3937_v16, %s4500_s29  ;;  %v4107_v16 = vpack.i.bf16 %v3686_v9, %v3685_v8  ;;  %v3713_v9 = vld [vmem:[%s4618_s30 + $0x109] sm:$0xff] }
  0x3b   : > { %3978 = vrot.lane.b32.xlu1 %v4681_v31, %s4501_s19 }
  0x3c   : > { %3973 = vrot.lane.b32.xlu0 %v3947_v20, %s4501_s19 }
  0x3f   : > { %3988 = vrot.lane.b32.xlu1 %v3947_v20, %s4496_s12  ;;  %v3701_v20 = vld [vmem:[%s4618_s30 + $0x79] sm:$0xff] }
  0x40   : > { %3983 = vrot.lane.b32.xlu0 %v4655_v23, %s4502_s18 }
  0x43   : > { %3998 = vrot.lane.b32.xlu1 %v4698_v38, %s4502_s18 }
  0x44   : > { %3993 = vrot.lane.b32.xlu0 %v4702_v39, %s4496_s12 }
  0x47   : > { %4008 = vrot.lane.b32.xlu1 %v4711_v43, %s4496_s12 }
  0x48   : > { %4003 = vrot.lane.b32.xlu0 %v4681_v31, %s4496_s12 }
  0x4b   : > { %4018 = vrot.lane.b32.xlu1 %v4719_v47, %s4495_s9 }
  0x4c   : > { %4013 = vrot.lane.b32.xlu0 %v4655_v23, %s4495_s9  ;;  %v4122_v23 = vpack.i.bf16 %v3702_v21, %v3701_v20 }
  0x4f   : > { %4028 = vrot.lane.b32.xlu1 %v4727_v50, %s4495_s9 }
  0x50   : > { %4023 = vrot.lane.b32.xlu0 %v4698_v38, %s4495_s9 }
  0x53   : > { %4038 = vrot.lane.b32.xlu1 %v4741_v53, %s4497_s13 }
  0x54   : > { %4033 = vrot.lane.b32.xlu0 %v4668_v26, %s4497_s13  ;;  %v3733_v26 = vld [vmem:[%s4618_s30 + $0xda] sm:$0xff] }
  0x55   : > { %v4157_v30 = vpack.i.bf16 %v3734_v27, %v3733_v26 }
  0x57   : > { %4048 = vrot.lane.b32.xlu1 %v4047_v58, %s4497_s13 }
  0x58   : > { %4043 = vrot.lane.b32.xlu0 %v4042_v59, %s4497_s13 }
  0x5b   : > { %4058 = vrot.lane.b32.xlu1 %v4711_v43, %s4498_s14 }
  0x5c   : > { %4053 = vrot.lane.b32.xlu0 %v4681_v31, %s4498_s14  ;;  %v4152_v31 = vpack.i.bf16 %v3726_v29, %v3725_v28  ;;  %v4884_v28 = vpack.i.bf16 %v3714_v10, %v3713_v9 }
  0x5f   : > { %4068 = vrot.lane.b32.xlu1 %v4067_v0, %s4498_s14 }
  0x60   : > { %4063 = vrot.lane.b32.xlu0 %v4062_v1, %s4498_s14 }
  0x63   : > { %4078 = vrot.lane.b32.xlu1 %v4727_v50, %s4499_s16 }
  0x64   : > { %4073 = vrot.lane.b32.xlu0 %v4698_v38, %s4499_s16 }
  0x67   : > { %4088 = vrot.lane.b32.xlu1 %v4087_v6, %s4499_s16 }
  0x68   : > { %4083 = vrot.lane.b32.xlu0 %v4082_v7, %s4499_s16 }
  0x6b   : > { %4098 = vrot.lane.b32.xlu1 %v4047_v58, %s4500_s29  ;;  %v4849_v58 = vpack.i.bf16 %v3664_v55, %v3663_v54 }
  0x6c   : > { %4093 = vrot.lane.b32.xlu0 %v4042_v59, %s4500_s29 }
  0x6f   : > { %4108 = vrot.lane.b32.xlu1 %v4107_v16, %s4500_s29 }
  0x70   : > { %4103 = vrot.lane.b32.xlu0 %v4102_v17, %s4500_s29 }
  0x73   : > { %4118 = vrot.lane.b32.xlu1 %v4067_v0, %s4501_s19 }
  0x74   : > { %4113 = vrot.lane.b32.xlu0 %v4062_v1, %s4501_s19 }
  0x77   : > { %4128 = vrot.lane.b32.xlu1 %v4127_v22, %s4501_s19 }
  0x78   : > { %4123 = vrot.lane.b32.xlu0 %v4122_v23, %s4501_s19 }
  0x7b   : > { %4138 = vrot.lane.b32.xlu1 %v4087_v6, %s4502_s18 }
  0x7c   : > { %4133 = vrot.lane.b32.xlu0 %v4082_v7, %s4502_s18 }
  0x7f   : > { %4148 = vrot.lane.b32.xlu1 %v4067_v0, %s4496_s12  ;;  %v310_v0 = vld [vmem:[%s4618_s30 + $0x8] sm:$0xff] }
  0x80   : > { %4143 = vrot.lane.b32.xlu0 %v4062_v1, %s4496_s12 }
  0x83   : > { %4158 = vrot.lane.b32.xlu1 %v4157_v30, %s4502_s18 }
  0x84   : > { %4153 = vrot.lane.b32.xlu0 %v4152_v31, %s4502_s18 }
  0x87   : > { %4168 = vrot.lane.b32.xlu1 %v4127_v22, %s4496_s12 }
  0x88   : > { %4163 = vrot.lane.b32.xlu0 %v4122_v23, %s4496_s12 }
  0x8b   : > { %4178 = vrot.lane.b32.xlu1 %v4087_v6, %s4495_s9 }
  0x8c   : > { %4173 = vrot.lane.b32.xlu0 %v4082_v7, %s4495_s9 }
  0x8f   : > { %4188 = vrot.lane.b32.xlu1 %v4157_v30, %s4495_s9 }
  0x90   : > { %4183 = vrot.lane.b32.xlu0 %v4152_v31, %s4495_s9 }
  0x93   : > { %4198 = vrot.lane.b32.xlu1 %v4107_v16, %s4497_s13 }
  0x94   : > { %4193 = vrot.lane.b32.xlu0 %v4102_v17, %s4497_s13 }
  0x95   : > { %v4821_v38 = vpop.permute.xlu1 %3923 }
  0x96   : > { %v3914_v40 = vpop.permute.xlu0 %3913  ;;  %v3926_v5 = vunpack.i.h.bf16 %v4821_v38  ;;  %v3925_v6 = vunpack.i.l.bf16 %v4821_v38 }
  0x97   : > { %4208 = vrot.lane.b32.xlu1 %v4207_v36, %s4497_s13  ;;  %v3915_v59 = vunpack.i.l.bf16 %v3914_v40  ;;  %v3916_v60 = vunpack.i.h.bf16 %v3914_v40 }
  0x98   : > { %4203 = vrot.lane.b32.xlu0 %v4819_v37, %s4497_s13 }
  0x99   : > { %v4828_v44 = vpop.permute.xlu1 %3928  ;;  %v1300_v7 = vsel %vm1299_vm1, %v309_v61, %v3915_v59  ;;  %v1301_v11 = vsel %vm1299_vm1, %v310_v0, %v3916_v60 }
  0x9a   : > { %v3919_v45 = vpop.permute.xlu0 %3918  ;;  %v3930_v8 = vunpack.i.l.bf16 %v4828_v44  ;;  %v3931_v16 = vunpack.i.h.bf16 %v4828_v44 }
  0x9b   : > { %4218 = vrot.lane.b32.xlu1 %v4127_v22, %s4498_s14  ;;  %v3920_v62 = vunpack.i.l.bf16 %v3919_v45  ;;  %v3921_v1 = vunpack.i.h.bf16 %v3919_v45 }
  0x9c   : > { %4213 = vrot.lane.b32.xlu0 %v4122_v23, %s4498_s14  ;;  %v4878_v23 = vpack.i.bf16 %v3690_v4, %v3689_v3 }
  0x9d   : > { %v4834_v48 = vpop.permute.xlu1 %3938  ;;  %v1302_v17 = vsel %vm1299_vm1, %v4637_v14, %v3920_v62  ;;  %v1303_v20 = vsel %vm1299_vm1, %v4640_v15, %v3921_v1  ;;  %v1325_v15 = vsel %vm1324_vm2, %v1300_v7, %v3925_v6 }
  0x9e   : > { %v4836_v49 = vpop.permute.xlu0 %3933  ;;  %v3940_v18 = vunpack.i.l.bf16 %v4834_v48  ;;  %v3941_v26 = vunpack.i.h.bf16 %v4834_v48  ;;  %v1327_v29 = vsel %vm1324_vm2, %v1302_v17, %v3930_v8  ;;  %v1328_v32 = vsel %vm1324_vm2, %v1303_v20, %v3931_v16 }
  0x9f   : > { %4228 = vrot.lane.b32.xlu1 %v4831_v46, %s4498_s14  ;;  %v3935_v21 = vunpack.i.l.bf16 %v4836_v49  ;;  %v3936_v27 = vunpack.i.h.bf16 %v4836_v49 }
  0xa0   : > { %4223 = vrot.lane.b32.xlu0 %v4702_v39, %s4498_s14  ;;  %v1352_v33 = vsel %vm1349_vm3, %v1327_v29, %v3940_v18  ;;  %v1353_v49 = vsel %vm1349_vm3, %v1328_v32, %v3941_v26 }
  0xa1   : > { %v4844_v56 = vpop.permute.xlu1 %3948  ;;  %v1350_v41 = vsel %vm1349_vm3, %v1325_v15, %v3935_v21 }
  0xa2   : > { %v4846_v57 = vpop.permute.xlu0 %3943  ;;  %v3950_v42 = vunpack.i.l.bf16 %v4844_v56 }
  0xa3   : > { %4238 = vrot.lane.b32.xlu1 %v4157_v30, %s4499_s16  ;;  %v3945_v14 = vunpack.i.l.bf16 %v4846_v57  ;;  %v1326_v30 = vsel %vm1324_vm2, %v1301_v11, %v3926_v5 }
  0xa4   : > { %4233 = vrot.lane.b32.xlu0 %v4152_v31, %s4499_s16  ;;  %v3946_v31 = vunpack.i.h.bf16 %v4846_v57  ;;  %v1351_v54 = vsel %vm1349_vm3, %v1326_v30, %v3936_v27  ;;  %v1377_v3 = vsel %vm1374_vm4, %v1352_v33, %v3950_v42 }
  0xa5   : > { %v4853_v63 = vpop.permute.xlu1 %3958  ;;  %v1375_v55 = vsel %vm1374_vm4, %v1350_v41, %v3945_v14  ;;  %v3738_v41 = vld [vmem:[%s4618_s30 + $0x112] sm:$0xff] }
  0xa6   : > { %v3954_v2 = vpop.permute.xlu0 %3953  ;;  %v1376_v57 = vsel %vm1374_vm4, %v1351_v54, %v3946_v31  ;;  %v3960_v59 = vunpack.i.l.bf16 %v4853_v63  ;;  %v3961_v62 = vunpack.i.h.bf16 %v4853_v63 }
  0xa7   : > { %4248 = vrot.lane.b32.xlu1 %v4849_v58, %s4499_s16  ;;  %v3956_v38 = vunpack.i.h.bf16 %v3954_v2  ;;  %v3955_v40 = vunpack.i.l.bf16 %v3954_v2 }
  0xa8   : > { %4243 = vrot.lane.b32.xlu0 %v4719_v47, %s4499_s16  ;;  %v1402_v11 = vsel %vm1399_vm5, %v1377_v3, %v3960_v59  ;;  %v3694_v3 = vld [vmem:[%s4618_s30 + $0x140] sm:$0xff] }
  0xa9   : > { %v4873_v19 = vpop.permute.xlu1 %3968  ;;  %v1400_v0 = vsel %vm1399_vm5, %v1375_v55, %v3955_v40  ;;  %v3644_v55 = vld [vmem:[%s4618_s30 + $0x129] sm:$0xff] }
  0xaa   : > { %v3964_v22 = vpop.permute.xlu0 %3963  ;;  %v3970_v1 = vunpack.i.l.bf16 %v4873_v19  ;;  %v3971_v4 = vunpack.i.h.bf16 %v4873_v19 }
  0xab   : > { %4258 = vrot.lane.b32.xlu1 %v4207_v36, %s4500_s29  ;;  %v3966_v44 = vunpack.i.h.bf16 %v3964_v22  ;;  %v3965_v45 = vunpack.i.l.bf16 %v3964_v22 }
  0xac   : > { %4253 = vrot.lane.b32.xlu0 %v4819_v37, %s4500_s29  ;;  %v3951_v37 = vunpack.i.h.bf16 %v4844_v56  ;;  %v1401_v56 = vsel %vm1399_vm5, %v1376_v57, %v3956_v38  ;;  %v1427_v19 = vsel %vm1424_vm6, %v1402_v11, %v3970_v1  ;;  %v3693_v1 = vld [vmem:[%s4618_s30 + $0x138] sm:$0xff] }
  0xad   : > { %v3979_v36 = vpop.permute.xlu1 %3978  ;;  %v1425_v5 = vsel %vm1424_vm6, %v1400_v0, %v3965_v45  ;;  %v1426_v6 = vsel %vm1424_vm6, %v1401_v56, %v3966_v44 }
  0xae   : > { %v3974_v48 = vpop.permute.xlu0 %3973  ;;  %v3980_v8 = vunpack.i.l.bf16 %v3979_v36  ;;  %v1378_v10 = vsel %vm1374_vm4, %v1353_v49, %v3951_v37  ;;  %v3620_v49 = vld [vmem:[%s4618_s30 + $0x128] sm:$0xff] }
  0xaf   : > { %4268 = vrot.lane.b32.xlu1 %v4878_v23, %s4500_s29  ;;  %v3976_v60 = vunpack.i.h.bf16 %v3974_v48  ;;  %v3975_v61 = vunpack.i.l.bf16 %v3974_v48  ;;  %v1403_v18 = vsel %vm1399_vm5, %v1378_v10, %v3961_v62  ;;  %v3643_v37 = vld [vmem:[%s4618_s30 + $0x121] sm:$0xff]  ;;  %v3668_v62 = vld [vmem:[%s4618_s30 + $0x12a] sm:$0xff] }
  0xb0   : > { %4263 = vrot.lane.b32.xlu0 %v4741_v53, %s4500_s29  ;;  %v3981_v53 = vunpack.i.h.bf16 %v3979_v36  ;;  %v1428_v26 = vsel %vm1424_vm6, %v1403_v18, %v3971_v4  ;;  %v1452_v15 = vsel %vm1449_vm7, %v1427_v19, %v3980_v8  ;;  %v5025_v10 = vld [vmem:[%s4618_s30 + $0x142] sm:$0xff] }
  0xb1   : > { %v4910_v2 = vpop.permute.xlu1 %3988  ;;  %v1450_v16 = vsel %vm1449_vm7, %v1425_v5, %v3975_v61  ;;  %v1451_v17 = vsel %vm1449_vm7, %v1426_v6, %v3976_v60  ;;  %v4982_v60 = vpack.i.bf16 %v3644_v55, %v3643_v37  ;;  %v3667_v61 = vld [vmem:[%s4618_s30 + $0x122] sm:$0xff]  ;;  %v4367_v5 = vpack.i.bf16 %v3694_v3, %v3693_v1  ;;  %v5008_v6 = vld [vmem:[%s4618_s30 + $0x139] sm:$0xff] }
  0xb2   : > { %v3984_v7 = vpop.permute.xlu0 %3983  ;;  %v1453_v30 = vsel %vm1449_vm7, %v1428_v26, %v3981_v53  ;;  %v4994_v56 = vpack.i.bf16 %v3668_v62, %v3667_v61  ;;  %v3990_v8 = vunpack.i.l.bf16 %v4910_v2  ;;  %v3991_v11 = vunpack.i.h.bf16 %v4910_v2 }
  0xb3   : > { %v3986_v63 = vunpack.i.h.bf16 %v3984_v7  ;;  %v3985_v9 = vunpack.i.l.bf16 %v3984_v7  ;;  %4278 = vrot.lane.b32.xlu1 %v4831_v46, %s4501_s19  ;;  %v5011_v7 = vld [vmem:[%s4618_s30 + $0x141] sm:$0xff] }
  0xb4   : > { %4273 = vrot.lane.b32.xlu0 %v4702_v39, %s4501_s19 }
  0xb5   : > { %v3999_v20 = vpop.permute.xlu1 %3998  ;;  %v1475_v21 = vsel %vm1474_vm8, %v1450_v16, %v3985_v9  ;;  %v1476_v22 = vsel %vm1474_vm8, %v1451_v17, %v3986_v63  ;;  %v4377_v63 = vpack.i.bf16 %v5011_v7, %v5008_v6  ;;  %v5022_v9 = vld [vmem:[%s4618_s30 + $0x13a] sm:$0xff] }
  0xb6   : > { %v4001_v27 = vunpack.i.h.bf16 %v3999_v20  ;;  %v4000_v14 = vunpack.i.l.bf16 %v3999_v20  ;;  %v4929_v29 = vpop.permute.xlu0 %3993  ;;  %v1499_v39 = vpack.c.bf16 %v1476_v22, %v1475_v21  ;;  %v4387_v2 = vpack.i.bf16 %v5025_v10, %v5022_v9 }
  0xb7   : > { %4288 = vrot.lane.b32.xlu1 %v4884_v28, %s4501_s19  ;;  %v3996_v16 = vunpack.i.h.bf16 %v4929_v29  ;;  %v3995_v17 = vunpack.i.l.bf16 %v4929_v29 }
  0xb8   : > { %v1477_v31 = vsel %vm1474_vm8, %v1452_v15, %v4000_v14  ;;  %v1478_v32 = vsel %vm1474_vm8, %v1453_v30, %v4001_v27  ;;  %4283 = vrot.lane.b32.xlu0 %v4711_v43, %s4501_s19  ;;  %3794 = vmatprep.mubr.msk.bf16.mxu0 %vm1547_vm9, %v1499_v39  ;;  %v3737_v43 = vld [vmem:[%s4618_s30 + $0x10a] sm:$0xff]  ;;  %v4503_v27 = vmov 0.0   ;;  %v1304_v14 = vsel %vm1299_vm1, %v4631_v12, %v3990_v8 }
  0xb9   : > { %v1500_v33 = vpack.c.bf16 %v1478_v32, %v1477_v31  ;;  %v4940_v38 = vpop.permute.xlu1 %4008  ;;  %v4312_v44 = vpack.i.bf16 %v3738_v41, %v3737_v43  ;;  %267 = vst.msk [vmem:[#allocation2 + $0x18] sm:$0x3] %vm265_vm10, %v4503_v27  ;;  %266 = vst.msk [vmem:[#allocation2] sm:$0x3] %vm265_vm10, %v4503_v27  ;;  %v1305_v30 = vsel %vm1299_vm1, %v4634_v13, %v3991_v11 }
  0xba   : > { %v4942_v40 = vpop.permute.xlu0 %4003  ;;  %v4011_v18 = vunpack.i.h.bf16 %v4940_v38  ;;  %v4010_v19 = vunpack.i.l.bf16 %v4940_v38  ;;  %268 = vst.msk [vmem:[#allocation2 + $0x30] sm:$0x3] %vm265_vm10, %v4503_v27  ;;  %269 = vst.msk [vmem:[#allocation2 + $0x48] sm:$0x3] %vm265_vm10, %v4503_v27  ;;  %v1312_v31 = vsel %vm1299_vm1, %v4810_v34, %v3995_v17  ;;  %v1313_v32 = vsel %vm1299_vm1, %v4813_v35, %v3996_v16 }
  0xbb   : > { %4298 = vrot.lane.b32.xlu1 %v4849_v58, %s4502_s18  ;;  %3795 = vmatmul.mubr.msk.bf16.vlgmr.msra.gmra.mrb[0].mxu0 %vm1547_vm9, %v1500_v33  ;;  %v4005_v20 = vunpack.i.l.bf16 %v4942_v40  ;;  %v4006_v22 = vunpack.i.h.bf16 %v4942_v40  ;;  %270 = vst.msk [vmem:[#allocation2 + $0x60] sm:$0x3] %vm265_vm10, %v4503_v27  ;;  %271 = vst.msk [vmem:[#allocation2 + $0x78] sm:$0x3] %vm265_vm10, %v4503_v27 }
  0xbc   : > { %4293 = vrot.lane.b32.xlu0 %v4719_v47, %s4502_s18  ;;  %v3619_v47 = vld [vmem:[%s4618_s30 + $0x120] sm:$0xff]  ;;  %272 = vst.msk [vmem:[#allocation2 + $0x90] sm:$0x3] %vm265_vm10, %v4503_v27  ;;  %273 = vst.msk [vmem:[#allocation2 + $0xa8] sm:$0x3] %vm265_vm10, %v4503_v27  ;;  %v1314_v12 = vsel %vm1299_vm1, %v4732_v51, %v4010_v19  ;;  %v1315_v38 = vsel %vm1299_vm1, %v4735_v52, %v4011_v18 }
  0xbd   : > { %v4949_v36 = vpop.permute.xlu1 %4018  ;;  %274 = vst.msk [vmem:[#allocation2 + $0xc0] sm:$0x3] %vm265_vm10, %v4503_v27  ;;  %275 = vst.msk [vmem:[#allocation2 + $0xd8] sm:$0x3] %vm265_vm10, %v4503_v27  ;;  %v1306_v13 = vsel %vm1299_vm1, %v4659_v24, %v4005_v20  ;;  %v1307_v35 = vsel %vm1299_vm1, %v4662_v25, %v4006_v22 }
  0xbe   : > { %v4953_v42 = vpop.permute.xlu0 %4013  ;;  %276 = vst.msk [vmem:[#allocation2 + $0xf0] sm:$0x3] %vm265_vm10, %v4503_v27  ;;  %277 = vst.msk [vmem:[#allocation2 + $0x108] sm:$0x3] %vm265_vm10, %v4503_v27  ;;  %v4021_v29 = vunpack.i.h.bf16 %v4949_v36  ;;  %v4020_v39 = vunpack.i.l.bf16 %v4949_v36 }
  0xbf   : > { %4308 = vrot.lane.b32.xlu1 %v4727_v50, %s4502_s18  ;;  %278 = vst.msk [vmem:[#allocation2 + $0x12] sm:$0x3] %vm265_vm10, %v4503_v27  ;;  %279 = vst.msk [vmem:[#allocation2 + $0x2a] sm:$0x3] %vm265_vm10, %v4503_v27  ;;  %v4015_v15 = vunpack.i.l.bf16 %v4953_v42  ;;  %v4016_v33 = vunpack.i.h.bf16 %v4953_v42 }
  0xc0   : > { %4303 = vrot.lane.b32.xlu0 %v4831_v46, %s4496_s12  ;;  %v4337_v46 = vpack.i.bf16 %v3620_v49, %v3619_v47  ;;  %280 = vst.msk [vmem:[#allocation2 + $0x42] sm:$0x3] %vm265_vm10, %v4503_v27  ;;  %281 = vst.msk [vmem:[#allocation2 + $0x5a] sm:$0x3] %vm265_vm10, %v4503_v27  ;;  %v1337_v52 = vsel %vm1324_vm2, %v1312_v31, %v4020_v39  ;;  %v1338_v42 = vsel %vm1324_vm2, %v1313_v32, %v4021_v29 }
  0xc1   : > { %v4959_v45 = vpop.permute.xlu1 %4028  ;;  %282 = vst.msk [vmem:[#allocation2 + $0x72] sm:$0x3] %vm265_vm10, %v4503_v27  ;;  %283 = vst.msk [vmem:[#allocation2 + $0x8a] sm:$0x3] %vm265_vm10, %v4503_v27  ;;  %v1329_v24 = vsel %vm1324_vm2, %v1304_v14, %v4015_v15  ;;  %v1330_v25 = vsel %vm1324_vm2, %v1305_v30, %v4016_v33 }
  0xc2   : > { %v4961_v48 = vpop.permute.xlu0 %4023  ;;  %284 = vst.msk [vmem:[#allocation2 + $0xa2] sm:$0x3] %vm265_vm10, %v4503_v27  ;;  %285 = vst.msk [vmem:[#allocation2 + $0xba] sm:$0x3] %vm265_vm10, %v4503_v27  ;;  %v4030_v40 = vunpack.i.l.bf16 %v4959_v45  ;;  %v4031_v36 = vunpack.i.h.bf16 %v4959_v45 }
  0xc3   : > { %4318 = vrot.lane.b32.xlu1 %v4884_v28, %s4496_s12  ;;  %286 = vst.msk [vmem:[#allocation2 + $0xd2] sm:$0x3] %vm265_vm10, %v4503_v27  ;;  %287 = vst.msk [vmem:[#allocation2 + $0xea] sm:$0x3] %vm265_vm10, %v4503_v27  ;;  %v4026_v43 = vunpack.i.h.bf16 %v4961_v48  ;;  %v4025_v41 = vunpack.i.l.bf16 %v4961_v48 }
  0xc4   : > { %4313 = vrot.lane.b32.xlu0 %v4312_v44, %s4502_s18  ;;  %288 = vst.msk [vmem:[#allocation2 + $0x102] sm:$0x3] %vm265_vm10, %v4503_v27  ;;  %289 = vst.msk [vmem:[#allocation2 + $0x11a] sm:$0x3] %vm265_vm10, %v4503_v27  ;;  %v1339_v49 = vsel %vm1324_vm2, %v1314_v12, %v4030_v40  ;;  %v1340_v61 = vsel %vm1324_vm2, %v1315_v38, %v4031_v36 }
  0xc5   : > { %v4968_v54 = vpop.permute.xlu1 %4038  ;;  %290 = vst.msk [vmem:[#allocation3] sm:$0x3] %vm265_vm10, %v4503_v27  ;;  %291 = vst.msk [vmem:[#allocation3 + $0x18] sm:$0x3] %vm265_vm10, %v4503_v27  ;;  %v1332_v62 = vsel %vm1324_vm2, %v1307_v35, %v4026_v43 }
  0xc6   : > { %v4970_v50 = vpop.permute.xlu0 %4033  ;;  %292 = vst.msk [vmem:[#allocation3 + $0x30] sm:$0x3] %vm265_vm10, %v4503_v27  ;;  %293 = vst.msk [vmem:[#allocation3 + $0x48] sm:$0x3] %vm265_vm10, %v4503_v27  ;;  %v4041_v45 = vunpack.i.h.bf16 %v4968_v54 }
  0xc7   : > { %4328 = vrot.lane.b32.xlu1 %v4312_v44, %s4495_s9  ;;  %294 = vst.msk [vmem:[#allocation3 + $0x60] sm:$0x3] %vm265_vm10, %v4503_v27  ;;  %295 = vst.msk [vmem:[#allocation3 + $0x78] sm:$0x3] %vm265_vm10, %v4503_v27  ;;  %v4036_v48 = vunpack.i.h.bf16 %v4970_v50  ;;  %v4035_v47 = vunpack.i.l.bf16 %v4970_v50 }
  0xc8   : > { %4323 = vrot.lane.b32.xlu0 %v4849_v58, %s4495_s9  ;;  %296 = vst.msk [vmem:[#allocation3 + $0x90] sm:$0x3] %vm265_vm10, %v4503_v27  ;;  %297 = vst.msk [vmem:[#allocation3 + $0xa8] sm:$0x3] %vm265_vm10, %v4503_v27  ;;  %v1363_v6 = vsel %vm1349_vm3, %v1338_v42, %v4041_v45 }
  0xc9   : > { %v4977_v57 = vpop.permute.xlu1 %4048  ;;  %298 = vst.msk [vmem:[#allocation3 + $0x12] sm:$0x3] %vm265_vm10, %v4503_v27  ;;  %299 = vst.msk [vmem:[#allocation3 + $0x2a] sm:$0x3] %vm265_vm10, %v4503_v27  ;;  %v1354_v7 = vsel %vm1349_vm3, %v1329_v24, %v4035_v47  ;;  %v1355_v8 = vsel %vm1349_vm3, %v1330_v25, %v4036_v48 }
  0xca   : > { %v4979_v59 = vpop.permute.xlu0 %4043  ;;  %300 = vst.msk [vmem:[#allocation3 + $0x42] sm:$0x3] %vm265_vm10, %v4503_v27  ;;  %301 = vst.msk [vmem:[#allocation3 + $0x5a] sm:$0x3] %vm265_vm10, %v4503_v27  ;;  %v4050_v37 = vunpack.i.l.bf16 %v4977_v57 }
  0xcb   : > { %4338 = vrot.lane.b32.xlu1 %v4337_v46, %s4497_s13  ;;  %302 = vst.msk [vmem:[#allocation3 + $0x72] sm:$0x3] %vm265_vm10, %v4503_v27  ;;  %303 = vst.msk [vmem:[#allocation3 + $0x8a] sm:$0x3] %vm265_vm10, %v4503_v27  ;;  %v4045_v55 = vunpack.i.l.bf16 %v4979_v59  ;;  %v4046_v50 = vunpack.i.h.bf16 %v4979_v59 }
  0xcc   : > { %4333 = vrot.lane.b32.xlu0 %v4878_v23, %s4497_s13  ;;  %304 = vst.msk [vmem:[#allocation3 + $0xa2] sm:$0x3] %vm265_vm10, %v4503_v27  ;;  %305 = vst.msk [vmem:[#allocation3 + $0xba] sm:$0x3] %vm265_vm10, %v4503_v27  ;;  %v1364_v59 = vsel %vm1349_vm3, %v1339_v49, %v4050_v37 }
  0xcd   : > { %v4988_v0 = vpop.permute.xlu1 %4058  ;;  %v1357_v16 = vsel %vm1349_vm3, %v1332_v62, %v4046_v50 }
  0xce   : > { %v4990_v58 = vpop.permute.xlu0 %4053  ;;  %v4061_v3 = vunpack.i.h.bf16 %v4988_v0 }
  0xcf   : > { %4348 = vrot.lane.b32.xlu1 %v4982_v60, %s4498_s14 }
  0xd0   : > { %4343 = vrot.lane.b32.xlu0 %v4884_v28, %s4498_s14  ;;  %v1388_v22 = vsel %vm1374_vm4, %v1363_v6, %v4061_v3 }
  0xd1   : > { %v5000_v23 = vpop.permute.xlu1 %4068 }
  0xd2   : > { %v5002_v4 = vpop.permute.xlu0 %4063  ;;  %v4070_v11 = vunpack.i.l.bf16 %v5000_v23  ;;  %v4071_v29 = vunpack.i.h.bf16 %v5000_v23 }
  0xd3   : > { %4358 = vrot.lane.b32.xlu1 %v4994_v56, %s4499_s16  ;;  %v4066_v39 = vunpack.i.h.bf16 %v5002_v4  ;;  %v4065_v15 = vunpack.i.l.bf16 %v5002_v4 }
  0xd4   : > { %4353 = vrot.lane.b32.xlu0 %v4312_v44, %s4499_s16  ;;  %v4040_v44 = vunpack.i.l.bf16 %v4968_v54  ;;  %v1331_v54 = vsel %vm1324_vm2, %v1306_v13, %v4025_v41 }
  0xd5   : > { %v5013_v53 = vpop.permute.xlu1 %4078  ;;  %v5149_v10 = vsel %vm1349_vm3, %v1331_v54, %v4045_v55 }
  0xd6   : > { %v5015_v28 = vpop.permute.xlu0 %4073  ;;  %v4081_v17 = vunpack.i.h.bf16 %v5013_v53  ;;  %v4080_v18 = vunpack.i.l.bf16 %v5013_v53  ;;  %v1389_v53 = vsel %vm1374_vm4, %v1364_v59, %v4070_v11 }
  0xd7   : > { %4368 = vrot.lane.b32.xlu1 %v4367_v5, %s4500_s29  ;;  %v4055_v5 = vunpack.i.l.bf16 %v4990_v58  ;;  %v4075_v19 = vunpack.i.l.bf16 %v5015_v28  ;;  %v4076_v27 = vunpack.i.h.bf16 %v5015_v28 }
  0xd8   : > { %4363 = vrot.lane.b32.xlu0 %v4337_v46, %s4500_s29  ;;  %v4051_v46 = vunpack.i.h.bf16 %v4977_v57  ;;  %v4060_v57 = vunpack.i.l.bf16 %v4988_v0  ;;  %v1413_v12 = vsel %vm1399_vm5, %v1388_v22, %v4081_v17  ;;  %s4504_s29 = smov 96  }
  0xd9   : > { %v5034_v21 = vpop.permute.xlu1 %4088 }
  0xda   : > { %v5037_v26 = vpop.permute.xlu0 %4083  ;;  %v1365_v9 = vsel %vm1349_vm3, %v1340_v61, %v4051_v46  ;;  %v4091_v40 = vunpack.i.h.bf16 %v5034_v21  ;;  %v4090_v36 = vunpack.i.l.bf16 %v5034_v21 }
  0xdb   : > { %4378 = vrot.lane.b32.xlu1 %v4377_v63, %s4501_s19  ;;  %v4056_v63 = vunpack.i.h.bf16 %v4990_v58  ;;  %v4086_v43 = vunpack.i.h.bf16 %v5037_v26  ;;  %v4085_v42 = vunpack.i.l.bf16 %v5037_v26 }
  0xdc   : > { %4373 = vrot.lane.b32.xlu0 %v4982_v60, %s4501_s19  ;;  %s256_s19 = sand.u32 1, %s4469_s22  }
  0xdd   : > { %v5103_v34 = vpop.permute.xlu1 %4098  ;;  %v1380_v14 = vsel %vm1374_vm4, %v1355_v8, %v4056_v63  ;;  %s3591_s20 = sshll.u32 %s256_s19, 5 }
  0xde   : > { %v5110_v51 = vpop.permute.xlu0 %4093  ;;  %v4101_v30 = vunpack.i.h.bf16 %v5103_v34  ;;  %v4100_v31 = vunpack.i.l.bf16 %v5103_v34  ;;  %v1405_v4 = vsel %vm1399_vm5, %v1380_v14, %v4076_v27  ;;  %s7078_s17 = scalar_lea.vmem [#allocation4], %s3591_s20  ;;  %s4505_s20 = smov [#allocation4]  }
  0xdf   : > { %4388 = vrot.lane.b32.xlu1 %v4387_v2, %s4502_s18  ;;  %v1379_v2 = vsel %vm1374_vm4, %v1354_v7, %v4055_v5  ;;  %v4095_v32 = vunpack.i.l.bf16 %v5110_v51  ;;  %v4096_v38 = vunpack.i.h.bf16 %v5110_v51  ;;  %v1390_v7 = vsel %vm1374_vm4, %v1365_v9, %v4071_v29 }
  0xe0   : > { %4383 = vrot.lane.b32.xlu0 %v4994_v56, %s4502_s18  ;;  %v1362_v56 = vsel %vm1349_vm3, %v1337_v52, %v4040_v44  ;;  %v1404_v23 = vsel %vm1399_vm5, %v1379_v2, %v4075_v19  ;;  %v1438_v51 = vsel %vm1424_vm6, %v1413_v12, %v4101_v30  ;;  %v1414_v9 = vsel %vm1399_vm5, %v1389_v53, %v4090_v36 }
  0xe1   : > { %v5130_v60 = vpop.permute.xlu1 %4108  ;;  %v1387_v58 = vsel %vm1374_vm4, %v1362_v56, %v4060_v57  ;;  %v1429_v44 = vsel %vm1424_vm6, %v1404_v23, %v4095_v32  ;;  %v1430_v45 = vsel %vm1424_vm6, %v1405_v4, %v4096_v38  ;;  %v1415_v19 = vsel %vm1399_vm5, %v1390_v7, %v4091_v40 }
  0xe2   : > { %v5136_v1 = vpop.permute.xlu0 %4103  ;;  %v1412_v28 = vsel %vm1399_vm5, %v1387_v58, %v4080_v18  ;;  %v4111_v48 = vunpack.i.h.bf16 %v5130_v60  ;;  %v4110_v56 = vunpack.i.l.bf16 %v5130_v60  ;;  %v1382_v60 = vsel %vm1374_vm4, %v1357_v16, %v4066_v39 }
  0xe3   : > { %v1437_v24 = vsel %vm1424_vm6, %v1412_v28, %v4100_v31  ;;  %v4106_v8 = vunpack.i.h.bf16 %v5136_v1  ;;  %v4105_v63 = vunpack.i.l.bf16 %v5136_v1  ;;  %v1407_v16 = vsel %vm1399_vm5, %v1382_v60, %v4086_v43 }
  0xe4   : > { %v1439_v58 = vsel %vm1424_vm6, %v1414_v9, %v4110_v56  ;;  %v1440_v22 = vsel %vm1424_vm6, %v1415_v19, %v4111_v48 }
  0xe5   : > { %v4119_v0 = vpop.permute.xlu1 %4118  ;;  %v1432_v14 = vsel %vm1424_vm6, %v1407_v16, %v4106_v8 }
  0xe6   : > { %v4114_v20 = vpop.permute.xlu0 %4113  ;;  %v4121_v35 = vunpack.i.h.bf16 %v4119_v0  ;;  %v4120_v34 = vunpack.i.l.bf16 %v4119_v0  ;;  %v1381_v0 = vsel %vm1374_vm4, %v5149_v10, %v4065_v15 }
  0xe7   : > { %v4116_v41 = vunpack.i.h.bf16 %v4114_v20  ;;  %v4115_v52 = vunpack.i.l.bf16 %v4114_v20  ;;  %v1406_v10 = vsel %vm1399_vm5, %v1381_v0, %v4085_v42 }
  0xe8   : > { %v1462_v55 = vsel %vm1449_vm7, %v1437_v24, %v4120_v34  ;;  %v1463_v26 = vsel %vm1449_vm7, %v1438_v51, %v4121_v35  ;;  %v1431_v27 = vsel %vm1424_vm6, %v1406_v10, %v4105_v63  ;;  %v319_v63 = vld [vmem:[%s4618_s30 + $0x78] sm:$0xff] }
  0xe9   : > { %v5168_v33 = vpop.permute.xlu1 %4128  ;;  %v1454_v61 = vsel %vm1449_vm7, %v1429_v44, %v4115_v52  ;;  %v1455_v54 = vsel %vm1449_vm7, %v1430_v45, %v4116_v41 }
  0xea   : > { %v5174_v13 = vpop.permute.xlu0 %4123  ;;  %v4131_v17 = vunpack.i.h.bf16 %v5168_v33  ;;  %v4130_v18 = vunpack.i.l.bf16 %v5168_v33 }
  0xeb   : > { %v4126_v1 = vunpack.i.h.bf16 %v5174_v13  ;;  %v4125_v20 = vunpack.i.l.bf16 %v5174_v13 }
  0xec   : > { %v1464_v53 = vsel %vm1449_vm7, %v1439_v58, %v4130_v18  ;;  %v1465_v30 = vsel %vm1449_vm7, %v1440_v22, %v4131_v17 }
  0xed   : > { %v4139_v25 = vpop.permute.xlu1 %4138  ;;  %v1456_v33 = vsel %vm1449_vm7, %v1431_v27, %v4125_v20  ;;  %v1457_v28 = vsel %vm1449_vm7, %v1432_v14, %v4126_v1 }
  0xee   : > { %v4141_v47 = vunpack.i.h.bf16 %v4139_v25  ;;  %v4140_v49 = vunpack.i.l.bf16 %v4139_v25  ;;  %v4134_v21 = vpop.permute.xlu0 %4133 }
  0xef   : > { %v4136_v46 = vunpack.i.h.bf16 %v4134_v21  ;;  %v4135_v37 = vunpack.i.l.bf16 %v4134_v21 }
  0xf0   : > { %v1487_v62 = vsel %vm1474_vm8, %v1462_v55, %v4140_v49  ;;  %v1488_v50 = vsel %vm1474_vm8, %v1463_v26, %v4141_v47  ;;  %v325_v55 = vld [vmem:[%s4618_s30 + $0xc0] sm:$0xff]  ;;  %v326_v26 = vld [vmem:[%s4618_s30 + $0xc8] sm:$0xff] }
  0xf1   : > { %v1479_v3 = vsel %vm1474_vm8, %v1454_v61, %v4135_v37  ;;  %v1480_v57 = vsel %vm1474_vm8, %v1455_v54, %v4136_v46  ;;  %v5195_v5 = vpop.permute.xlu1 %4148  ;;  %v1505_v6 = vpack.c.bf16 %v1488_v50, %v1487_v62  ;;  %v317_v62 = vld [vmem:[%s4618_s30 + $0x60] sm:$0xff] }
  0xf2   : > { %v1501_v59 = vpack.c.bf16 %v1480_v57, %v1479_v3  ;;  %v5200_v11 = vpop.permute.xlu0 %4143  ;;  %v4151_v21 = vunpack.i.h.bf16 %v5195_v5  ;;  %v4150_v46 = vunpack.i.l.bf16 %v5195_v5  ;;  %v318_v3 = vld [vmem:[%s4618_s30 + $0x68] sm:$0xff]  ;;  %v327_v57 = vld [vmem:[%s4618_s30 + $0xd8] sm:$0xff] }
  0xf3   : > { %3806 = vmatprep.mubr.msk.bf16.mxu1 %vm1547_vm9, %v1505_v6  ;;  %v4146_v61 = vunpack.i.h.bf16 %v5200_v11  ;;  %v4145_v54 = vunpack.i.l.bf16 %v5200_v11  ;;  %v328_v6 = vld [vmem:[%s4618_s30 + $0xe0] sm:$0xff] }
  0xf4   : > { %3798 = vmatprep.mubr.msk.bf16.mxu0 %vm1547_vm9, %v1501_v59  ;;  %v320_v59 = vld [vmem:[%s4618_s30 + $0x80] sm:$0xff]  ;;  %v1316_v17 = vsel %vm1299_vm1, %v325_v55, %v4150_v46  ;;  %v1317_v18 = vsel %vm1299_vm1, %v326_v26, %v4151_v21 }
  0xf5   : > { %v4159_v2 = vpop.permute.xlu1 %4158  ;;  %v1308_v1 = vsel %vm1299_vm1, %v317_v62, %v4145_v54  ;;  %v1309_v20 = vsel %vm1299_vm1, %v318_v3, %v4146_v61 }
  0xf6   : > { %v4161_v29 = vunpack.i.h.bf16 %v4159_v2  ;;  %v4160_v39 = vunpack.i.l.bf16 %v4159_v2  ;;  %v4154_v15 = vpop.permute.xlu0 %4153 }
  0xf7   : > { %v4156_v31 = vunpack.i.h.bf16 %v4154_v15  ;;  %v4155_v32 = vunpack.i.l.bf16 %v4154_v15 }
  0xf8   : > { %v1489_v12 = vsel %vm1474_vm8, %v1464_v53, %v4160_v39  ;;  %v1490_v23 = vsel %vm1474_vm8, %v1465_v30, %v4161_v29 }
  0xf9   : > { %v1506_v38 = vpack.c.bf16 %v1490_v23, %v1489_v12  ;;  %v1481_v13 = vsel %vm1474_vm8, %v1456_v33, %v4155_v32  ;;  %v1482_v4 = vsel %vm1474_vm8, %v1457_v28, %v4156_v31  ;;  %v4169_v40 = vpop.permute.xlu1 %4168 }
  0xfa   : > { %v1502_v35 = vpack.c.bf16 %v1482_v4, %v1481_v13  ;;  %v4164_v34 = vpop.permute.xlu0 %4163  ;;  %v4171_v50 = vunpack.i.h.bf16 %v4169_v40  ;;  %v4170_v56 = vunpack.i.l.bf16 %v4169_v40 }
  0xfb   : > { %3807 = vmatmul.mubr.msk.bf16.vlgmr.msra.gmra.mrb[0].mxu1 %vm1547_vm9, %v1506_v38  ;;  %v4166_v7 = vunpack.i.h.bf16 %v4164_v34  ;;  %v4165_v8 = vunpack.i.l.bf16 %v4164_v34 }
  0xfc   : > { %3799 = vmatmul.mubr.msk.bf16.gmra.mrb[4].mxu0 %vm1547_vm9, %v1502_v35  ;;  %v1318_v10 = vsel %vm1299_vm1, %v327_v57, %v4170_v56  ;;  %v1319_v16 = vsel %vm1299_vm1, %v328_v6, %v4171_v50 }
  0xfd   : > { %v4179_v36 = vpop.permute.xlu1 %4178  ;;  %v1310_v58 = vsel %vm1299_vm1, %v319_v63, %v4165_v8  ;;  %v1311_v22 = vsel %vm1299_vm1, %v320_v59, %v4166_v7 }
  0xfe   : > { %v4174_v43 = vpop.permute.xlu0 %4173  ;;  %v4181_v0 = vunpack.i.h.bf16 %v4179_v36  ;;  %v4180_v5 = vunpack.i.l.bf16 %v4179_v36 }
  0xff   : > { %v4176_v9 = vunpack.i.h.bf16 %v4174_v43  ;;  %v4175_v11 = vunpack.i.l.bf16 %v4174_v43 }
 0x100   : > { %v1341_v14 = vsel %vm1324_vm2, %v1316_v17, %v4180_v5  ;;  %v1342_v29 = vsel %vm1324_vm2, %v1317_v18, %v4181_v0 }
 0x101   : > { %v4189_v41 = vpop.permute.xlu1 %4188  ;;  %v1333_v30 = vsel %vm1324_vm2, %v1308_v1, %v4175_v11  ;;  %v1334_v31 = vsel %vm1324_vm2, %v1309_v20, %v4176_v9 }
 0x102   : > { %v5229_v52 = vpop.permute.xlu0 %4183  ;;  %v4191_v2 = vunpack.i.h.bf16 %v4189_v41  ;;  %v4190_v27 = vunpack.i.l.bf16 %v4189_v41 }
 0x103   : > { %v4186_v39 = vunpack.i.h.bf16 %v5229_v52  ;;  %v4185_v15 = vunpack.i.l.bf16 %v5229_v52 }
 0x104   : > { %v1343_v4 = vsel %vm1324_vm2, %v1318_v10, %v4190_v27  ;;  %v1344_v40 = vsel %vm1324_vm2, %v1319_v16, %v4191_v2 }
 0x105   : > { %v5231_v42 = vpop.permute.xlu1 %4198  ;;  %v1335_v36 = vsel %vm1324_vm2, %v1310_v58, %v4185_v15  ;;  %v1336_v43 = vsel %vm1324_vm2, %v1311_v22, %v4186_v39 }
 0x106   : > { %v5233_v24 = vpop.permute.xlu0 %4193  ;;  %v4201_v32 = vunpack.i.h.bf16 %v5231_v42  ;;  %v4200_v33 = vunpack.i.l.bf16 %v5231_v42 }
 0x107   : > { %v4196_v12 = vunpack.i.h.bf16 %v5233_v24  ;;  %v4195_v23 = vunpack.i.l.bf16 %v5233_v24 }
 0x108   : > { %v1366_v24 = vsel %vm1349_vm3, %v1341_v14, %v4200_v33 }
 0x109   : > { %v5235_v51 = vpop.permute.xlu1 %4208  ;;  %v1359_v26 = vsel %vm1349_vm3, %v1334_v31, %v4196_v12 }
 0x10a   : > { %v5237_v44 = vpop.permute.xlu0 %4203  ;;  %v4211_v38 = vunpack.i.h.bf16 %v5235_v51  ;;  %v4210_v13 = vunpack.i.l.bf16 %v5235_v51  ;;  %v1367_v51 = vsel %vm1349_vm3, %v1342_v29, %v4201_v32 }
 0x10b   : > { %v4206_v35 = vunpack.i.h.bf16 %v5237_v44  ;;  %v4205_v34 = vunpack.i.l.bf16 %v5237_v44  ;;  %v1358_v44 = vsel %vm1349_vm3, %v1333_v30, %v4195_v23 }
 0x10c   : > { %v5310_v61 = vsel %vm1349_vm3, %v1343_v4, %v4210_v13 }
 0x10d   : > { %v5239_v25 = vpop.permute.xlu1 %4218  ;;  %v1360_v54 = vsel %vm1349_vm3, %v1335_v36, %v4205_v34  ;;  %v1361_v62 = vsel %vm1349_vm3, %v1336_v43, %v4206_v35 }
 0x10e   : > { %v5241_v45 = vpop.permute.xlu0 %4213  ;;  %v4221_v41 = vunpack.i.h.bf16 %v5239_v25  ;;  %v4220_v52 = vunpack.i.l.bf16 %v5239_v25  ;;  %v5313_v25 = vsel %vm1349_vm3, %v1344_v40, %v4211_v38 }
 0x10f   : > { %v4216_v21 = vunpack.i.h.bf16 %v5241_v45  ;;  %v4215_v46 = vunpack.i.l.bf16 %v5241_v45 }
 0x110   : > { %v1391_v56 = vsel %vm1374_vm4, %v1366_v24, %v4220_v52  ;;  %v1392_v3 = vsel %vm1374_vm4, %v1367_v51, %v4221_v41 }
 0x111   : > { %v5243_v48 = vpop.permute.xlu1 %4228  ;;  %v1383_v8 = vsel %vm1374_vm4, %v1358_v44, %v4215_v46  ;;  %v1384_v63 = vsel %vm1374_vm4, %v1359_v26, %v4216_v21 }
 0x112   : > { %v5245_v47 = vpop.permute.xlu0 %4223  ;;  %v4230_v17 = vunpack.i.l.bf16 %v5243_v48 }
 0x113   : > { %v4226_v50 = vunpack.i.h.bf16 %v5245_v47  ;;  %v4225_v45 = vunpack.i.l.bf16 %v5245_v47  ;;  %v4231_v47 = vunpack.i.h.bf16 %v5243_v48 }
 0x115   : > { %v5247_v49 = vpop.permute.xlu1 %4238  ;;  %v1386_v11 = vsel %vm1374_vm4, %v1361_v62, %v4226_v50 }
 0x116   : > { %v5251_v37 = vpop.permute.xlu0 %4233  ;;  %v4241_v57 = vunpack.i.h.bf16 %v5247_v49  ;;  %v4240_v6 = vunpack.i.l.bf16 %v5247_v49  ;;  %v1385_v49 = vsel %vm1374_vm4, %v1360_v54, %v4225_v45 }
 0x117   : > { %v4236_v59 = vunpack.i.h.bf16 %v5251_v37  ;;  %v4235_v0 = vunpack.i.l.bf16 %v5251_v37 }
 0x118   : > { %v1416_v10 = vsel %vm1399_vm5, %v1391_v56, %v4240_v6  ;;  %v1417_v37 = vsel %vm1399_vm5, %v1392_v3, %v4241_v57 }
 0x119   : > { %v5263_v60 = vpop.permute.xlu1 %4248  ;;  %v1409_v2 = vsel %vm1399_vm5, %v1384_v63, %v4236_v59 }
 0x11a   : > { %v5267_v19 = vpop.permute.xlu0 %4243  ;;  %v4251_v39 = vunpack.i.h.bf16 %v5263_v60  ;;  %v4250_v15 = vunpack.i.l.bf16 %v5263_v60 }
 0x11b   : > { %v4246_v18 = vunpack.i.h.bf16 %v5267_v19  ;;  %v4245_v9 = vunpack.i.l.bf16 %v5267_v19  ;;  %v1408_v19 = vsel %vm1399_vm5, %v1383_v8, %v4235_v0 }
 0x11d   : > { %v5279_v53 = vpop.permute.xlu1 %4258  ;;  %v1411_v30 = vsel %vm1399_vm5, %v1386_v11, %v4246_v18 }
 0x11e   : > { %v5285_v28 = vpop.permute.xlu0 %4253  ;;  %v4261_v1 = vunpack.i.h.bf16 %v5279_v53  ;;  %v4260_v20 = vunpack.i.l.bf16 %v5279_v53  ;;  %v1410_v53 = vsel %vm1399_vm5, %v1385_v49, %v4245_v9  ;;  %v1394_v49 = vsel %vm1374_vm4, %v5313_v25, %v4231_v47 }
 0x11f   : > { %v4256_v16 = vunpack.i.h.bf16 %v5285_v28  ;;  %v4255_v58 = vunpack.i.l.bf16 %v5285_v28 }
 0x120   : > { %v1441_v31 = vsel %vm1424_vm6, %v1416_v10, %v4260_v20  ;;  %v1442_v32 = vsel %vm1424_vm6, %v1417_v37, %v4261_v1  ;;  %v1419_v10 = vsel %vm1399_vm5, %v1394_v49, %v4251_v39 }
 0x121   : > { %v5299_v42 = vpop.permute.xlu1 %4268  ;;  %v1433_v12 = vsel %vm1424_vm6, %v1408_v19, %v4255_v58  ;;  %v1434_v23 = vsel %vm1424_vm6, %v1409_v2, %v4256_v16 }
 0x122   : > { %v5305_v55 = vpop.permute.xlu0 %4263  ;;  %v4270_v8 = vunpack.i.l.bf16 %v5299_v42 }
 0x123   : > { %v4266_v38 = vunpack.i.h.bf16 %v5305_v55  ;;  %v4265_v13 = vunpack.i.l.bf16 %v5305_v55 }
 0x125   : > { %v4279_v7 = vpop.permute.xlu1 %4278  ;;  %v1435_v44 = vsel %vm1424_vm6, %v1410_v53, %v4265_v13  ;;  %v1436_v45 = vsel %vm1424_vm6, %v1411_v30, %v4266_v38  ;;  %v330_v38 = vld [vmem:[%s4618_s30 + $0xf8] sm:$0xff] }
 0x126   : > { %v4274_v5 = vpop.permute.xlu0 %4273  ;;  %v4281_v27 = vunpack.i.h.bf16 %v4279_v7  ;;  %v4280_v14 = vunpack.i.l.bf16 %v4279_v7  ;;  %v4271_v7 = vunpack.i.h.bf16 %v5299_v42  ;;  %v1393_v42 = vsel %vm1374_vm4, %v5310_v61, %v4230_v17 }
 0x127   : > { %v4276_v33 = vunpack.i.h.bf16 %v4274_v5  ;;  %v4275_v28 = vunpack.i.l.bf16 %v4274_v5  ;;  %v1418_v20 = vsel %vm1399_vm5, %v1393_v42, %v4250_v15 }
 0x128   : > { %v1466_v60 = vsel %vm1449_vm7, %v1441_v31, %v4280_v14  ;;  %v1467_v40 = vsel %vm1449_vm7, %v1442_v32, %v4281_v27  ;;  %v1443_v16 = vsel %vm1424_vm6, %v1418_v20, %v4270_v8  ;;  %v1444_v58 = vsel %vm1424_vm6, %v1419_v10, %v4271_v7 }
 0x129   : > { %v5339_v22 = vpop.permute.xlu1 %4288  ;;  %v1458_v51 = vsel %vm1449_vm7, %v1433_v12, %v4275_v28  ;;  %v1459_v21 = vsel %vm1449_vm7, %v1434_v23, %v4276_v33  ;;  %v329_v23 = vld [vmem:[%s4618_s30 + $0xf0] sm:$0xff] }
 0x12a   : > { %v4284_v29 = vpop.permute.xlu0 %4283  ;;  %v4291_v0 = vunpack.i.h.bf16 %v5339_v22  ;;  %v4290_v5 = vunpack.i.l.bf16 %v5339_v22 }
 0x12b   : > { %v4286_v43 = vunpack.i.h.bf16 %v4284_v29  ;;  %v4285_v41 = vunpack.i.l.bf16 %v4284_v29 }
 0x12c   : > { %v1468_v48 = vsel %vm1449_vm7, %v1443_v16, %v4290_v5  ;;  %v1469_v61 = vsel %vm1449_vm7, %v1444_v58, %v4291_v0 }
 0x12d   : > { %v4299_v4 = vpop.permute.xlu1 %4298  ;;  %v1460_v63 = vsel %vm1449_vm7, %v1435_v44, %v4285_v41  ;;  %v1461_v59 = vsel %vm1449_vm7, %v1436_v45, %v4286_v43  ;;  %v4398_v43 = vld [vmem:[%s4618_s30 + $0x110] sm:$0xff] }
 0x12e   : > { %v4301_v35 = vunpack.i.h.bf16 %v4299_v4  ;;  %v4300_v34 = vunpack.i.l.bf16 %v4299_v4  ;;  %v4294_v36 = vpop.permute.xlu0 %4293 }
 0x12f   : > { %v4296_v52 = vunpack.i.h.bf16 %v4294_v36  ;;  %v4295_v24 = vunpack.i.l.bf16 %v4294_v36 }
 0x130   : > { %v1491_v46 = vsel %vm1474_vm8, %v1466_v60, %v4300_v34  ;;  %v1492_v55 = vsel %vm1474_vm8, %v1467_v40, %v4301_v35  ;;  %v4397_v34 = vld [vmem:[%s4618_s30 + $0x108] sm:$0xff]  ;;  %s3593_s30 = sshll.u32 %s4477_s24, 3 }
 0x131   : > { %v1507_v26 = vpack.c.bf16 %v1492_v55, %v1491_v46  ;;  %v1483_v54 = vsel %vm1474_vm8, %v1458_v51, %v4295_v24  ;;  %v1484_v62 = vsel %vm1474_vm8, %v1459_v21, %v4296_v52  ;;  %v4309_v50 = vpop.permute.xlu1 %4308  ;;  %s3760_s9 = sadd.s32 4294967294, %s3593_s30  ;;  %s3762_s30 = sshll.u32 %s4477_s24, 2 }
 0x132   : > { %v1503_v56 = vpack.c.bf16 %v1484_v62, %v1483_v54  ;;  %v4311_v3 = vunpack.i.h.bf16 %v4309_v50  ;;  %v4310_v57 = vunpack.i.l.bf16 %v4309_v50  ;;  %v4304_v6 = vpop.permute.xlu0 %4303 }
 0x133   : > { %3810 = vmatprep.mubr.msk.bf16.mxu1 %vm1547_vm9, %v1507_v26  ;;  %v4306_v31 = vunpack.i.h.bf16 %v4304_v6  ;;  %v4305_v32 = vunpack.i.l.bf16 %v4304_v6 }
 0x134   : > { %v1485_v18 = vsel %vm1474_vm8, %v1460_v63, %v4310_v57  ;;  %v1486_v9 = vsel %vm1474_vm8, %v1461_v59, %v4311_v3  ;;  %3802 = vmatprep.mubr.msk.bf16.mxu0 %vm1547_vm9, %v1503_v56 }
 0x135   : > { %v1504_v11 = vpack.c.bf16 %v1486_v9, %v1485_v18  ;;  %v4319_v1 = vpop.permute.xlu1 %4318  ;;  %v1320_v51 = vsel %vm1299_vm1, %v329_v23, %v4305_v32  ;;  %v1321_v21 = vsel %vm1299_vm1, %v330_v38, %v4306_v31 }
 0x136   : > { %v4314_v37 = vpop.permute.xlu0 %4313  ;;  %v4321_v53 = vunpack.i.h.bf16 %v4319_v1  ;;  %v4320_v30 = vunpack.i.l.bf16 %v4319_v1 }
 0x137   : > { %v4316_v22 = vunpack.i.h.bf16 %v4314_v37  ;;  %v4315_v19 = vunpack.i.l.bf16 %v4314_v37  ;;  %3803 = vmatmul.mubr.msk.bf16.gmra.mrb[8].mxu0 %vm1547_vm9, %v1504_v11 }
 0x138   : > { %v1322_v36 = vsel %vm1299_vm1, %v4397_v34, %v4320_v30  ;;  %v1323_v41 = vsel %vm1299_vm1, %v4398_v43, %v4321_v53  ;;  %v1718_v34 = vlaneseq }
 0x139   : > { %v1493_v25 = vsel %vm1474_vm8, %v1468_v48, %v4315_v19  ;;  %v1494_v47 = vsel %vm1474_vm8, %v1469_v61, %v4316_v22  ;;  %v4329_v17 = vpop.permute.xlu1 %4328 }
 0x13a   : > { %v1508_v2 = vpack.c.bf16 %v1494_v47, %v1493_v25  ;;  %v4324_v27 = vpop.permute.xlu0 %4323  ;;  %v4331_v33 = vunpack.i.h.bf16 %v4329_v17  ;;  %v4330_v28 = vunpack.i.l.bf16 %v4329_v17 }
 0x13b   : > { %v4326_v13 = vunpack.i.h.bf16 %v4324_v27  ;;  %v4325_v4 = vunpack.i.l.bf16 %v4324_v27 }
 0x13c   : > { %3811 = vmatmul.mubr.msk.bf16.gmra.mrb[4].mxu1 %vm1547_vm9, %v1508_v2  ;;  %v1347_v46 = vsel %vm1324_vm2, %v1322_v36, %v4330_v28  ;;  %v1348_v55 = vsel %vm1324_vm2, %v1323_v41, %v4331_v33  ;;  %v5430_v36 = vshrl.u32 %v1718_v34, 7  ;;  %v1717_v41 = vld [vmem:[%s7167_s2] sm:$0x3] }
 0x13d   : > { %v4339_v14 = vpop.permute.xlu1 %4338  ;;  %v1345_v26 = vsel %vm1324_vm2, %v1320_v51, %v4325_v4  ;;  %v1346_v54 = vsel %vm1324_vm2, %v1321_v21, %v4326_v13 }
 0x13e   : > { %v4334_v29 = vpop.permute.xlu0 %4333  ;;  %v4341_v40 = vunpack.i.h.bf16 %v4339_v14  ;;  %v4340_v35 = vunpack.i.l.bf16 %v4339_v14  ;;  %7211 = vst [vmem:[#allocation7_spill] sm:$0xff] %v5430_v36  ;;  %v5433_v43 = vsub.s32 0, %v5430_v36 }
 0x13f   : > { %v4336_v52 = vunpack.i.h.bf16 %v4334_v29  ;;  %v4335_v24 = vunpack.i.l.bf16 %v4334_v29 }
 0x140   : > { %v1372_v56 = vsel %vm1349_vm3, %v1347_v46, %v4340_v35  ;;  %v1373_v3 = vsel %vm1349_vm3, %v1348_v55, %v4341_v40  ;;  %7212 = vst [vmem:[#allocation8_spill] sm:$0xff] %v5433_v43  ;;  %v5444_v51 = vrot.slane %v1717_v41, %v5433_v43 }
 0x141   : > { %v4349_v39 = vpop.permute.xlu1 %4348  ;;  %v1370_v7 = vsel %vm1349_vm3, %v1345_v26, %v4335_v24  ;;  %v1371_v8 = vsel %vm1349_vm3, %v1346_v54, %v4336_v52  ;;  %v5438_v52 = vstv %s3760_s9  ;;  %v5441_v24 = vsub.s32 1, %v5430_v36  ;;  %s3763_s9 = sshll.u32 %s4481_s25, 3  ;;  %s3503_s25 = sshll.u32 %s7078_s17, 4  ;;  %s7111_s25 = int_to_ptr.vmem [resolvable:$true] %s3503_s25 }
 0x142   : > { %v4344_v15 = vpop.permute.xlu0 %4343  ;;  %v4351_v62 = vunpack.i.h.bf16 %v4349_v39  ;;  %v4350_v50 = vunpack.i.l.bf16 %v4349_v39  ;;  %7214 = vst [vmem:[#allocation10_spill] sm:$0xff] %v5444_v51  ;;  %v1800_v21 = vadd.s32 1, %v5438_v52  ;;  %vm1811_vm13 = vcmp.ge.s32.totalorder %v5438_v52, 0  ;;  %s3499_s12 = sadd.s32 %s3763_s9, %s3762_s30  ;;  %s4403_s30 = sshll.u32 %s4505_s20, 4  ;;  %s4404_s30 = int_to_ptr.vmem [resolvable:$false] %s4403_s30 }
 0x143   : > { %v4346_v57 = vunpack.i.h.bf16 %v4344_v15  ;;  %v4345_v6 = vunpack.i.l.bf16 %v4344_v15  ;;  %7213 = vst [vmem:[#allocation9_spill] sm:$0xff] %v5441_v24  ;;  %v5448_v46 = vrot.slane %v1717_v41, %v5441_v24  ;;  %vm1823_vm14 = vcmp.lt.s32.totalorder %v5438_v52, 16  ;;  %s3764_s24 = sshll.u32 %s3499_s12, 7  ;;  %s4405_s9 = scalar_lea.vmem %s4404_s30, 1024 }
 0x144   : > { %v1397_v49 = vsel %vm1374_vm4, %v1372_v56, %v4350_v50  ;;  %v1398_v11 = vsel %vm1374_vm4, %v1373_v3, %v4351_v62  ;;  %vm1812_vm11 = vcmp.ge.s32.totalorder %v1800_v21, 0  ;;  %vm1824_vm12 = vcmp.lt.s32.totalorder %v1800_v21, 16  ;;  %vm5462_vm0 = vmand %vm1811_vm13, %vm1823_vm14  ;;  %p4406_p2 = scmp.lt.s32.totalorder %s7111_s25, %s4404_s30 }
 0x145   : > { %v4359_v12 = vpop.permute.xlu1 %4358  ;;  %v1395_v37 = vsel %vm1374_vm4, %v1370_v7, %v4345_v6  ;;  %v1396_v16 = vsel %vm1374_vm4, %v1371_v8, %v4346_v57  ;;  %7215 = vst [vmem:[#allocation11_spill] sm:$0xff] %v5448_v46  ;;  %vm5456_vm15 = vmand %vm1812_vm11, %vm1824_vm12 }
 0x146   : > { %v4354_v60 = vpop.permute.xlu0 %4353  ;;  %v4361_v63 = vunpack.i.h.bf16 %v4359_v12  ;;  %v4360_v59 = vunpack.i.l.bf16 %v4359_v12 }
 0x147   : > { %v4356_v0 = vunpack.i.h.bf16 %v4354_v60  ;;  %v4355_v5 = vunpack.i.l.bf16 %v4354_v60 }
 0x148   : > { %v1422_v19 = vsel %vm1399_vm5, %v1397_v49, %v4360_v59  ;;  %v1423_v48 = vsel %vm1399_vm5, %v1398_v11, %v4361_v63  ;;  %v1919_v49 = vld [vmem:[%s7168_s3] sm:$0x1f] }
 0x149   : > { %v4369_v44 = vpop.permute.xlu1 %4368  ;;  %v1420_v47 = vsel %vm1399_vm5, %v1395_v37, %v4355_v5  ;;  %v1421_v17 = vsel %vm1399_vm5, %v1396_v16, %v4356_v0  ;;  %v5490_v37 = vrot.slane %v1919_v49, %v5441_v24  ;;  %v5493_v16 = vsub.s32 3, %v5430_v36 }
 0x14a   : > { %v4364_v45 = vpop.permute.xlu0 %4363  ;;  %v4371_v18 = vunpack.i.h.bf16 %v4369_v44  ;;  %v4370_v9 = vunpack.i.l.bf16 %v4369_v44 }
 0x14b   : > { %v4366_v1 = vunpack.i.h.bf16 %v4364_v45  ;;  %v4365_v20 = vunpack.i.l.bf16 %v4364_v45  ;;  %7221 = vst [vmem:[#allocation13_spill] sm:$0xff] %v5493_v16 }
 0x14c   : > { %v1447_v2 = vsel %vm1424_vm6, %v1422_v19, %v4370_v9  ;;  %v1448_v27 = vsel %vm1424_vm6, %v1423_v48, %v4371_v18 }
 0x14d   : > { %v4379_v42 = vpop.permute.xlu1 %4378  ;;  %v1445_v29 = vsel %vm1424_vm6, %v1420_v47, %v4365_v20  ;;  %v1446_v39 = vsel %vm1424_vm6, %v1421_v17, %v4366_v1  ;;  %v5480_v1 = vsub.s32 2, %v5430_v36 }
 0x14e   : > { %v4374_v10 = vpop.permute.xlu0 %4373  ;;  %v4381_v58 = vunpack.i.h.bf16 %v4379_v42  ;;  %v4380_v22 = vunpack.i.l.bf16 %v4379_v42 }
 0x14f   : > { %v4376_v61 = vunpack.i.h.bf16 %v4374_v10  ;;  %v4375_v25 = vunpack.i.l.bf16 %v4374_v10  ;;  %7220 = vst [vmem:[#allocation12_spill] sm:$0xff] %v5480_v1  ;;  %v5487_v10 = vrot.slane %v1919_v49, %v5433_v43 }
 0x150   : > { %v1472_v31 = vsel %vm1449_vm7, %v1447_v2, %v4380_v22  ;;  %v1473_v32 = vsel %vm1449_vm7, %v1448_v27, %v4381_v58  ;;  %v5496_v58 = vsub.s32 4, %v5430_v36  ;;  %v5499_v22 = vrot.slane %v1919_v49, %v5480_v1 }
 0x151   : > { %v4389_v14 = vpop.permute.xlu1 %4388  ;;  %v1470_v12 = vsel %vm1449_vm7, %v1445_v29, %v4375_v25  ;;  %v1471_v23 = vsel %vm1449_vm7, %v1446_v39, %v4376_v61  ;;  %v5513_v29 = vrot.slane %v1919_v49, %v5493_v16 }
 0x152   : > { %v4391_v15 = vunpack.i.h.bf16 %v4389_v14  ;;  %v4390_v53 = vunpack.i.l.bf16 %v4389_v14  ;;  %v4384_v30 = vpop.permute.xlu0 %4383  ;;  %7222 = vst [vmem:[#allocation14_spill] sm:$0xff] %v5496_v58  ;;  %v5510_v14 = vld [vmem:[%s7169_s4] sm:$0x3] }
 0x153   : > { %v4386_v33 = vunpack.i.h.bf16 %v4384_v30  ;;  %v4385_v28 = vunpack.i.l.bf16 %v4384_v30  ;;  %7223 = vst [vmem:[#allocation15_spill] sm:$0xff] %v5513_v29 }
 0x154   : > { %v1497_v38 = vsel %vm1474_vm8, %v1472_v31, %v4390_v53  ;;  %v1498_v13 = vsel %vm1474_vm8, %v1473_v32, %v4391_v15  ;;  %v5520_v32 = vrot.slane %v1919_v49, %v5496_v58 }
 0x155   : > { %v1510_v4 = vpack.c.bf16 %v1498_v13, %v1497_v38  ;;  %v1495_v60 = vsel %vm1474_vm8, %v1470_v12, %v4385_v28  ;;  %v1496_v40 = vsel %vm1474_vm8, %v1471_v23, %v4386_v33 }
 0x156   : > { %v1509_v35 = vpack.c.bf16 %v1496_v40, %v1495_v60 }
 0x158   : > { %3814 = vmatprep.mubr.msk.bf16.mxu1 %vm1547_vm9, %v1509_v35 }
 0x159   : > { %3815 = vmatmul.mubr.msk.bf16.gmra.mrb[8].mxu1 %vm1547_vm9, %v1510_v4 }
 0x18e   : > { %v3796_v55 = vpop.f32.mrb[0].mxu0 }
 0x18f   : > { %v1724_v44 = vmul.f32 %v3796_v55, %v5444_v51  ;;  %v1622_v26 = vpop.f32.mrb[1].mxu0 }
 0x190   : > { %v1722_v54 = vmul.f32 %v5444_v51, %v1622_v26  ;;  %v3797_v62 = vpop.f32.mrb[2].mxu0 }
 0x191   : > { %v1752_v50 = vadd.f32 %v5448_v46, %v1724_v44  ;;  %v1725_v45 = vmul.f32 %v3797_v62, %v5444_v51  ;;  %v1625_v56 = vpop.f32.mrb[3].mxu0 }
 0x192   : > { %v1750_v57 = vadd.f32 %v5448_v46, %v1722_v54  ;;  %v1723_v6 = vmul.f32 %v5444_v51, %v1625_v56  ;;  %v5535_v56 = vrot.slane %v5510_v14, %v5433_v43 }
 0x193   : > { %v1776_v7 = vmax.f32 %v1752_v50, 0.0  ;;  %v1753_v63 = vadd.f32 %v5448_v46, %v1725_v45 }
 0x194   : > { %v1774_v59 = vmax.f32 %v1750_v57, 0.0  ;;  %v1751_v0 = vadd.f32 %v5448_v46, %v1723_v6  ;;  %v5542_v6 = vld [vmem:[%s7168_s3 + $0x8] sm:$0x1f] }
 0x195   : > { %v1873_v5 = vsel %vm5456_vm15, %v1776_v7, 0.0  ;;  %v1777_v18 = vmax.f32 %v1753_v63, 0.0 }
 0x196   : > { %1897 = vst.msk [vmem:[#allocation2 + $0x1a] sm:$0xff] %vm1374_vm4, %v1873_v5  ;;  %v1871_v9 = vsel %vm5462_vm0, %v1774_v59, 0.0  ;;  %v1775_v42 = vmax.f32 %v1751_v0, 0.0 }
 0x197   : > { %1895 = vst.msk [vmem:[#allocation2 + $0x2] sm:$0xff] %vm1374_vm4, %v1871_v9  ;;  %v1874_v11 = vsel %vm5456_vm15, %v1777_v18, 0.0 }
 0x198   : > { %1898 = vst.msk [vmem:[#allocation2 + $0x22] sm:$0xff] %vm1374_vm4, %v1874_v11  ;;  %v1872_v20 = vsel %vm5462_vm0, %v1775_v42, 0.0 }
 0x199   : > { %1896 = vst.msk [vmem:[#allocation2 + $0xa] sm:$0xff] %vm1374_vm4, %v1872_v20 }
 0x19d   : > { %v1926_v19 = vld [vmem:[#allocation2 + $0x18] sm:$0xff] }
 0x19e   : > { %v2002_v48 = vld [vmem:[#allocation2 + $0x19] sm:$0xff]  ;;  %v1954_v25 = vmul.f32 %v5487_v10, %v1926_v19  ;;  %v2000_v2 = vld [vmem:[#allocation2 + $0x1] sm:$0xff] }
 0x19f   : > { %v5501_v61 = vld [vmem:[#allocation2 + $0x1a] sm:$0xff]  ;;  %v2030_v47 = vmul.f32 %v5490_v37, %v2002_v48  ;;  %v5505_v27 = vld [vmem:[#allocation2 + $0x2] sm:$0xff]  ;;  %v2028_v15 = vmul.f32 %v5490_v37, %v2000_v2  ;;  %v5552_v48 = vrot.slane %v5542_v6, %v5441_v24 }
 0x1a0   : > { %v1924_v17 = vld [vmem:[#allocation2] sm:$0xff]  ;;  %v2106_v28 = vmul.f32 %v5499_v22, %v5501_v61  ;;  %v2104_v40 = vmul.f32 %v5499_v22, %v5505_v27  ;;  %v1925_v35 = vld [vmem:[#allocation2 + $0x8] sm:$0xff] }
 0x1a1   : > { %v1952_v39 = vmul.f32 %v5487_v10, %v1924_v17  ;;  %v1927_v53 = vld [vmem:[#allocation2 + $0x20] sm:$0xff]  ;;  %v2054_v33 = vadd.f32 %v2030_v47, %v1954_v25  ;;  %v2001_v34 = vld [vmem:[#allocation2 + $0x9] sm:$0xff]  ;;  %v1953_v59 = vmul.f32 %v5487_v10, %v1925_v35 }
 0x1a2   : > { %v2003_v30 = vld [vmem:[#allocation2 + $0x21] sm:$0xff]  ;;  %v1955_v12 = vmul.f32 %v5487_v10, %v1927_v53  ;;  %v5537_v57 = vld [vmem:[#allocation2 + $0xa] sm:$0xff]  ;;  %v2029_v0 = vmul.f32 %v5490_v37, %v2001_v34 }
 0x1a3   : > { %v5517_v31 = vld [vmem:[#allocation2 + $0x22] sm:$0xff]  ;;  %v2031_v23 = vmul.f32 %v5490_v37, %v2003_v30  ;;  %v2052_v60 = vadd.f32 %v2028_v15, %v1952_v39  ;;  %v2130_v41 = vadd.f32 %v2106_v28, %v2054_v33  ;;  %v2153_v9 = vld [vmem:[#allocation2 + $0xb] sm:$0xff]  ;;  %v2105_v19 = vmul.f32 %v5499_v22, %v5537_v57 }
 0x1a4   : > { %v2154_v38 = vld [vmem:[#allocation2 + $0x1b] sm:$0xff]  ;;  %v2155_v13 = vld [vmem:[#allocation2 + $0x23] sm:$0xff]  ;;  %v2107_v55 = vmul.f32 %v5499_v22, %v5517_v31  ;;  %v2053_v20 = vadd.f32 %v2029_v0, %v1953_v59  ;;  %v2229_v47 = vld [vmem:[#allocation2 + $0xc] sm:$0xff]  ;;  %v2181_v53 = vmul.f32 %v5513_v29, %v2153_v9  ;;  %v5559_v30 = vrot.slane %v5542_v6, %v5433_v43 }
 0x1a5   : > { %v2230_v4 = vld [vmem:[#allocation2 + $0x1c] sm:$0xff]  ;;  %v2055_v21 = vadd.f32 %v2031_v23, %v1955_v12  ;;  %v2182_v44 = vmul.f32 %v5513_v29, %v2154_v38  ;;  %v2231_v26 = vld [vmem:[#allocation2 + $0x24] sm:$0xff]  ;;  %v2128_v62 = vadd.f32 %v2104_v40, %v2052_v60  ;;  %v2183_v50 = vmul.f32 %v5513_v29, %v2155_v13 }
 0x1a6   : > { %v2152_v54 = vld [vmem:[#allocation2 + $0x3] sm:$0xff]  ;;  %v2258_v45 = vmul.f32 %v5520_v32, %v2230_v4  ;;  %v2259_v18 = vmul.f32 %v5520_v32, %v2231_v26  ;;  %v2129_v15 = vadd.f32 %v2105_v19, %v2053_v20  ;;  %v2257_v38 = vmul.f32 %v5520_v32, %v2229_v47 }
 0x1a7   : > { %v2131_v7 = vadd.f32 %v2107_v55, %v2055_v21  ;;  %v2206_v63 = vadd.f32 %v2182_v44, %v2130_v41  ;;  %v2228_v5 = vld [vmem:[#allocation2 + $0x4] sm:$0xff]  ;;  %v2180_v42 = vmul.f32 %v5513_v29, %v2152_v54  ;;  %v1802_v54 = vadd.s32 3, %v5438_v52 }
 0x1a8   : > { %v2256_v17 = vmul.f32 %v5520_v32, %v2228_v5  ;;  %v2205_v23 = vadd.f32 %v2181_v53, %v2129_v15 }
 0x1a9   : > { %v2207_v49 = vadd.f32 %v2183_v50, %v2131_v7  ;;  %v2282_v11 = vadd.f32 %v2258_v45, %v2206_v63  ;;  %v2204_v25 = vadd.f32 %v2180_v42, %v2128_v62  ;;  %v1806_v62 = vadd.s32 7, %v5438_v52 }
 0x1aa   : > { %v2281_v40 = vadd.f32 %v2257_v38, %v2205_v23  ;;  %v1801_v50 = vadd.s32 2, %v5438_v52  ;;  %v1805_v45 = vadd.s32 6, %v5438_v52  ;;  %vm1814_vm1 = vcmp.ge.s32.totalorder %v1802_v54, 0 }
 0x1ab   : > { %v2283_v2 = vadd.f32 %v2259_v18, %v2207_v49  ;;  %v2310_v39 = vadd.f32 %v5535_v56, %v2282_v11  ;;  %v2280_v33 = vadd.f32 %v2256_v17, %v2204_v25  ;;  %vm1826_vm2 = vcmp.lt.s32.totalorder %v1802_v54, 16 }
 0x1ac   : > { %v2309_v34 = vadd.f32 %v5535_v56, %v2281_v40  ;;  %vm1818_vm3 = vcmp.ge.s32.totalorder %v1806_v62, 0  ;;  %vm1830_vm5 = vcmp.lt.s32.totalorder %v1806_v62, 16  ;;  %vm1813_vm6 = vcmp.ge.s32.totalorder %v1801_v50, 0  ;;  %vm5595_vm10 = vmand %vm1814_vm1, %vm1826_vm2 }
 0x1ad   : > { %v2311_v28 = vadd.f32 %v5535_v56, %v2283_v2  ;;  %v5564_v12 = vsel %vm5456_vm15, %v2310_v39, 0.0  ;;  %v2308_v13 = vadd.f32 %v5535_v56, %v2280_v33  ;;  %vm1817_vm7 = vcmp.ge.s32.totalorder %v1805_v45, 0  ;;  %vm5605_vm12 = vmand %vm1818_vm3, %vm1830_vm5 }
 0x1ae   : > { %v2396_v60 = vmul.f32 %v5552_v48, %v5564_v12  ;;  %v2333_v55 = vsel %vm5462_vm0, %v2309_v34, 0.0  ;;  %vm1829_vm9 = vcmp.lt.s32.totalorder %v1805_v45, 16  ;;  %vm1825_vm11 = vcmp.lt.s32.totalorder %v1801_v50, 16 }
 0x1af   : > { %v5570_v4 = vsel %vm5456_vm15, %v2311_v28, 0.0  ;;  %v2332_v35 = vsel %vm5462_vm0, %v2308_v13, 0.0  ;;  %v2361_v44 = vmul.f32 %v5559_v30, %v2333_v55  ;;  %vm5615_vm13 = vmand %vm1817_vm7, %vm1829_vm9 }
 0x1b0   : > { %v2360_v41 = vmul.f32 %v5559_v30, %v2332_v35  ;;  %v2397_v21 = vmul.f32 %v5552_v48, %v5570_v4  ;;  %vm5623_vm14 = vmand %vm1813_vm6, %vm1825_vm11 }
 0x1b2   : > { %v5582_v3 = vadd.f32 %v2396_v60, %v2360_v41  ;;  %v5585_v26 = vadd.f32 %v2397_v21, %v2361_v44 }
 0x1ce   : > { %v3808_v7 = vpop.f32.mrb[0].mxu1 }
 0x1cf   : > { %v3800_v63 = vpop.f32.mrb[4].mxu0  ;;  %v1736_v8 = vmul.f32 %v3808_v7, %v5444_v51  ;;  %v1670_v59 = vpop.f32.mrb[1].mxu1 }
 0x1d0   : > { %v1728_v0 = vmul.f32 %v3800_v63, %v5444_v51  ;;  %v1638_v5 = vpop.f32.mrb[5].mxu0  ;;  %v1734_v18 = vmul.f32 %v5444_v51, %v1670_v59  ;;  %v3809_v9 = vpop.f32.mrb[2].mxu1  ;;  %v1921_v63 = vld [vmem:[%s7168_s3 + $0x10] sm:$0x1f] }
 0x1d1   : > { %v1764_v49 = vadd.f32 %v5448_v46, %v1736_v8  ;;  %v1726_v11 = vmul.f32 %v5444_v51, %v1638_v5  ;;  %v3801_v20 = vpop.f32.mrb[6].mxu0  ;;  %v1737_v19 = vmul.f32 %v3809_v9, %v5444_v51  ;;  %v1673_v25 = vpop.f32.mrb[3].mxu1 }
 0x1d2   : > { %v1756_v47 = vadd.f32 %v5448_v46, %v1728_v0  ;;  %v1762_v2 = vadd.f32 %v5448_v46, %v1734_v18  ;;  %v1729_v39 = vmul.f32 %v3801_v20, %v5444_v51  ;;  %v1641_v15 = vpop.f32.mrb[7].mxu0  ;;  %v1735_v53 = vmul.f32 %v5444_v51, %v1673_v25 }
 0x1d3   : > { %v1788_v33 = vmax.f32 %v1764_v49, 0.0  ;;  %v1754_v28 = vadd.f32 %v5448_v46, %v1726_v11  ;;  %v1765_v38 = vadd.f32 %v5448_v46, %v1737_v19  ;;  %v1727_v13 = vmul.f32 %v5444_v51, %v1641_v15 }
 0x1d4   : > { %v1780_v60 = vmax.f32 %v1756_v47, 0.0  ;;  %v1786_v35 = vmax.f32 %v1762_v2, 0.0  ;;  %v1757_v34 = vadd.f32 %v5448_v46, %v1729_v39  ;;  %v1763_v41 = vadd.f32 %v5448_v46, %v1735_v53 }
 0x1d5   : > { %v1885_v21 = vsel %vm5605_vm12, %v1788_v33, 0.0  ;;  %v1778_v55 = vmax.f32 %v1754_v28, 0.0  ;;  %v1789_v44 = vmax.f32 %v1765_v38, 0.0  ;;  %v1755_v54 = vadd.f32 %v5448_v46, %v1727_v13 }
 0x1d6   : > { %v1877_v62 = vsel %vm5595_vm10, %v1780_v60, 0.0  ;;  %1909 = vst.msk [vmem:[#allocation2 + $0xaa] sm:$0xff] %vm1374_vm4, %v1885_v21  ;;  %v1883_v50 = vsel %vm5615_vm13, %v1786_v35, 0.0  ;;  %v1781_v45 = vmax.f32 %v1757_v34, 0.0  ;;  %v1787_v7 = vmax.f32 %v1763_v41, 0.0 }
 0x1d7   : > { %1901 = vst.msk [vmem:[#allocation2 + $0x4a] sm:$0xff] %vm1374_vm4, %v1877_v62  ;;  %v1875_v8 = vsel %vm5623_vm14, %v1778_v55, 0.0  ;;  %1907 = vst.msk [vmem:[#allocation2 + $0x92] sm:$0xff] %vm1374_vm4, %v1883_v50  ;;  %v1886_v59 = vsel %vm5605_vm12, %v1789_v44, 0.0  ;;  %v1779_v0 = vmax.f32 %v1755_v54, 0.0  ;;  %v5657_v49 = vrot.slane %v1921_v63, %v5433_v43 }
 0x1d8   : > { %1899 = vst.msk [vmem:[#allocation2 + $0x32] sm:$0xff] %vm1374_vm4, %v1875_v8  ;;  %v1878_v5 = vsel %vm5595_vm10, %v1781_v45, 0.0  ;;  %1910 = vst.msk [vmem:[#allocation2 + $0xb2] sm:$0xff] %vm1374_vm4, %v1886_v59  ;;  %v1884_v18 = vsel %vm5615_vm13, %v1787_v7, 0.0  ;;  %v5660_v11 = vrot.slane %v1921_v63, %v5441_v24  ;;  %v5668_v15 = vrot.slane %v1921_v63, %v5480_v1 }
 0x1d9   : > { %1902 = vst.msk [vmem:[#allocation2 + $0x52] sm:$0xff] %vm1374_vm4, %v1878_v5  ;;  %v1876_v9 = vsel %vm5623_vm14, %v1779_v0, 0.0  ;;  %1908 = vst.msk [vmem:[#allocation2 + $0x9a] sm:$0xff] %vm1374_vm4, %v1884_v18  ;;  %v2540_v47 = vmul.f32 %v5657_v49, %v5505_v27  ;;  %v5671_v53 = vrot.slane %v1921_v63, %v5493_v16  ;;  %v2541_v28 = vmul.f32 %v5657_v49, %v5537_v57 }
 0x1da   : > { %1900 = vst.msk [vmem:[#allocation2 + $0x3a] sm:$0xff] %vm1374_vm4, %v1876_v9  ;;  %v2593_v25 = vmul.f32 %v5660_v11, %v5501_v61  ;;  %v2594_v33 = vmul.f32 %v5660_v11, %v5517_v31  ;;  %v5682_v35 = vrot.slane %v1921_v63, %v5496_v58  ;;  %v5686_v34 = vrot.slane %v5542_v6, %v5480_v1 }
 0x1db   : > { %v5690_v41 = vmul.f32 %v5657_v49, %v5501_v61  ;;  %v5694_v57 = vrot.slane %v5542_v6, %v5493_v16  ;;  %v5698_v21 = vrot.slane %v5542_v6, %v5496_v58  ;;  %v5701_v55 = vadd.s32 5, %v5438_v52  ;;  %v5719_v6 = vld [vmem:[%s7168_s3 + $0x18] sm:$0x1f] }
 0x1dc   : > { %v5703_v44 = vadd.f32 %v2593_v25, %v2540_v47  ;;  %v5707_v54 = vmul.f32 %v5657_v49, %v5517_v31  ;;  %v5710_v50 = vadd.s32 4, %v5438_v52  ;;  %v5714_v45 = vrot.slane %v5510_v14, %v5441_v24  ;;  %7235 = vst [vmem:[#allocation19_spill] sm:$0xff] %v5719_v6 }
 0x1dd   : > { %v1938_v20 = vld [vmem:[#allocation2 + $0xa8] sm:$0xff]  ;;  %7232 = vst [vmem:[#allocation16_spill] sm:$0xff] %v5698_v21  ;;  %v5723_v7 = vmul.f32 %v5559_v30, %v5564_v12  ;;  %v5727_v31 = vmul.f32 %v5559_v30, %v5570_v4  ;;  %v5729_v63 = vadd.f32 %v2594_v33, %v2541_v28  ;;  %v5732_v14 = vadd.s32 9, %v5438_v52 }
 0x1de   : > { %v2014_v19 = vld [vmem:[#allocation2 + $0xa9] sm:$0xff]  ;;  %v1966_v27 = vmul.f32 %v5487_v10, %v1938_v20  ;;  %7233 = vst [vmem:[#allocation17_spill] sm:$0xff] %v5707_v54  ;;  %7234 = vst [vmem:[#allocation18_spill] sm:$0xff] %v5714_v45  ;;  %v5735_v0 = vadd.s32 8, %v5438_v52  ;;  %v5738_v5 = vadd.s32 11, %v5438_v52  ;;  %v5743_v20 = vadd.s32 10, %v5438_v52 }
 0x1df   : > { %v1930_v2 = vld [vmem:[#allocation2 + $0x48] sm:$0xff]  ;;  %v2042_v60 = vmul.f32 %v5490_v37, %v2014_v19  ;;  %7236 = vst [vmem:[#allocation20_spill] sm:$0xff] %v5729_v63  ;;  %v5747_v19 = vrot.slane %v5719_v6, %v5433_v43  ;;  %v1928_v33 = vld [vmem:[#allocation2 + $0x30] sm:$0xff]  ;;  %vm1816_vm15 = vcmp.ge.s32.totalorder %v5701_v55, 0  ;;  %vm1828_vm0 = vcmp.lt.s32.totalorder %v5701_v55, 16 }
 0x1e0   : > { %v2006_v39 = vld [vmem:[#allocation2 + $0x49] sm:$0xff]  ;;  %v1958_v38 = vmul.f32 %v5487_v10, %v1930_v2  ;;  %7237 = vst [vmem:[#allocation21_spill] sm:$0xff] %v5735_v0  ;;  %7238 = vst [vmem:[#allocation22_spill] sm:$0xff] %v5738_v5  ;;  %v2007_v4 = vld [vmem:[#allocation2 + $0x51] sm:$0xff]  ;;  %vm1815_vm1 = vcmp.ge.s32.totalorder %v5710_v50, 0  ;;  %vm1827_vm2 = vcmp.lt.s32.totalorder %v5710_v50, 16 }
 0x1e1   : > { %v2034_v13 = vmul.f32 %v5490_v37, %v2006_v39  ;;  %v2082_v62 = vld [vmem:[#allocation2 + $0x4a] sm:$0xff]  ;;  %v2066_v59 = vadd.f32 %v2042_v60, %v1966_v27  ;;  %7239 = vst [vmem:[#allocation23_spill] sm:$0xff] %v5743_v20  ;;  %7240 = vst [vmem:[#allocation24_spill] sm:$0xff] %v5747_v19  ;;  %v2080_v36 = vld [vmem:[#allocation2 + $0x32] sm:$0xff]  ;;  %vm1820_vm3 = vcmp.ge.s32.totalorder %v5732_v14, 0  ;;  %vm1832_vm5 = vcmp.lt.s32.totalorder %v5732_v14, 16 }
 0x1e2   : > { %v2090_v61 = vld [vmem:[#allocation2 + $0xaa] sm:$0xff]  ;;  %v2110_v12 = vmul.f32 %v5499_v22, %v2082_v62  ;;  %v5750_v25 = vmul.f32 %v5657_v49, %v2082_v62  ;;  %v5753_v47 = vmul.f32 %v5660_v11, %v2082_v62  ;;  %v5756_v2 = vmul.f32 %v5668_v15, %v2082_v62  ;;  %v5770_v43 = vld [vmem:[#allocation2 + $0x52] sm:$0xff]  ;;  %vm6044_vm9 = vmand %vm1816_vm15, %vm1828_vm0 }
 0x1e3   : > { %v2058_v8 = vadd.f32 %v2034_v13, %v1958_v38  ;;  %v2118_v18 = vmul.f32 %v5499_v22, %v2090_v61  ;;  %v1931_v9 = vld [vmem:[#allocation2 + $0x50] sm:$0xff]  ;;  %v5759_v39 = vmul.f32 %v5657_v49, %v2090_v61  ;;  %v5762_v13 = vmul.f32 %v5671_v53, %v2082_v62  ;;  %vm6090_vm11 = vmand %vm1820_vm3, %vm1832_vm5 }
 0x1e4   : > { %7241 = vst [vmem:[#allocation25_spill] sm:$0xff] %v5750_v25  ;;  %7242 = vst [vmem:[#allocation26_spill] sm:$0xff] %v5756_v2  ;;  %v2004_v28 = vld [vmem:[#allocation2 + $0x31] sm:$0xff]  ;;  %v5765_v27 = vmul.f32 %v5660_v11, %v2090_v61  ;;  %v5768_v60 = vmul.f32 %v5668_v15, %v2090_v61  ;;  %v5773_v20 = vmul.f32 %v5671_v53, %v2090_v61  ;;  %v7284_v14 = vmov 0 }
 0x1e5   : > { %7243 = vst [vmem:[#allocation27_spill] sm:$0xff] %v5759_v39  ;;  %v2158_v52 = vld [vmem:[#allocation2 + $0x4b] sm:$0xff]  ;;  %v2134_v38 = vadd.f32 %v2110_v12, %v2058_v8  ;;  %7244 = vst [vmem:[#allocation28_spill] sm:$0xff] %v5762_v13  ;;  %v2142_v19 = vadd.f32 %v2118_v18, %v2066_v59  ;;  %v1959_v5 = vmul.f32 %v5487_v10, %v1931_v9  ;;  %v2159_v58 = vld [vmem:[#allocation2 + $0x53] sm:$0xff]  ;;  %vm3108_vm3 = vcmask 1042434  }
 0x1e6   : > { %7245 = vst [vmem:[#allocation29_spill] sm:$0xff] %v5768_v60  ;;  %7246 = vst [vmem:[#allocation30_spill] sm:$0xff] %v5773_v20  ;;  %v2035_v8 = vmul.f32 %v5490_v37, %v2007_v4  ;;  %v2234_v12 = vld [vmem:[#allocation2 + $0x4c] sm:$0xff]  ;;  %v5778_v45 = vmul.f32 %v5682_v35, %v2090_v61  ;;  %v1956_v25 = vmul.f32 %v5487_v10, %v1928_v33  ;;  %v2243_v21 = vld [vmem:[#allocation2 + $0xb4] sm:$0xff]  ;;  %vm3105_vm5 = vcmask 1041409  }
 0x1e7   : > { %v1939_v62 = vld [vmem:[#allocation2 + $0xb0] sm:$0xff]  ;;  %v2032_v60 = vmul.f32 %v5490_v37, %v2004_v28  ;;  %v2186_v59 = vmul.f32 %v5513_v29, %v2158_v52  ;;  %v2108_v20 = vmul.f32 %v5499_v22, %v2080_v36  ;;  %v2544_v9 = vmul.f32 %v5657_v49, %v2080_v36 }
 0x1e8   : > { %v2015_v39 = vld [vmem:[#allocation2 + $0xb1] sm:$0xff]  ;;  %7247 = vst [vmem:[#allocation31_spill] sm:$0xff] %v5778_v45  ;;  %v2059_v16 = vadd.f32 %v2035_v8, %v1959_v5  ;;  %v2111_v4 = vmul.f32 %v5499_v22, %v5770_v43  ;;  %v2262_v33 = vmul.f32 %v5520_v32, %v2234_v12  ;;  %v1967_v28 = vmul.f32 %v5487_v10, %v1939_v62 }
 0x1e9   : > { %v2166_v18 = vld [vmem:[#allocation2 + $0xab] sm:$0xff]  ;;  %v2210_v61 = vadd.f32 %v2186_v59, %v2134_v38  ;;  %v2235_v45 = vld [vmem:[#allocation2 + $0x54] sm:$0xff]  ;;  %v2043_v6 = vmul.f32 %v5490_v37, %v2015_v39  ;;  %v2595_v24 = vmul.f32 %v5660_v11, %v2080_v36  ;;  %v2187_v5 = vmul.f32 %v5513_v29, %v2159_v58 }
 0x1ea   : > { %v5787_v1 = vld [vmem:[#allocation2 + $0xb2] sm:$0xff]  ;;  %v2135_v46 = vadd.f32 %v2111_v4, %v2059_v16  ;;  %v2194_v2 = vmul.f32 %v5513_v29, %v2166_v18  ;;  %v2056_v51 = vadd.f32 %v2032_v60, %v1956_v25  ;;  %v2263_v39 = vmul.f32 %v5520_v32, %v2235_v45 }
 0x1eb   : > { %v2242_v52 = vld [vmem:[#allocation2 + $0xac] sm:$0xff]  ;;  %v2286_v38 = vadd.f32 %v2262_v33, %v2210_v61  ;;  %v2067_v59 = vadd.f32 %v2043_v6, %v1967_v28  ;;  %v2119_v12 = vmul.f32 %v5499_v22, %v5787_v1  ;;  %v1929_v62 = vld [vmem:[#allocation2 + $0x38] sm:$0xff] }
 0x1ec   : > { %v1936_v13 = vld [vmem:[#allocation2 + $0x90] sm:$0xff]  ;;  %v2211_v0 = vadd.f32 %v2187_v5, %v2135_v46  ;;  %v2218_v54 = vadd.f32 %v2194_v2, %v2142_v19  ;;  %v2270_v16 = vmul.f32 %v5520_v32, %v2242_v52  ;;  %v2005_v4 = vld [vmem:[#allocation2 + $0x39] sm:$0xff]  ;;  %v1957_v45 = vmul.f32 %v5487_v10, %v1929_v62  ;;  %v7278_v55 = vld [vmem:[#allocation28_spill] sm:$0xff] }
 0x1ed   : > { %v2167_v8 = vld [vmem:[#allocation2 + $0xb3] sm:$0xff]  ;;  %v1964_v58 = vmul.f32 %v5487_v10, %v1936_v13  ;;  %v2314_v18 = vadd.f32 %v5535_v56, %v2286_v38  ;;  %v2143_v25 = vadd.f32 %v2119_v12, %v2067_v59  ;;  %v2271_v13 = vmul.f32 %v5520_v32, %v2243_v21  ;;  %v2157_v38 = vld [vmem:[#allocation2 + $0x3b] sm:$0xff] }
 0x1ee   : > { %v2012_v63 = vld [vmem:[#allocation2 + $0x91] sm:$0xff]  ;;  %v2195_v60 = vmul.f32 %v5513_v29, %v2167_v8  ;;  %v2287_v33 = vadd.f32 %v2263_v39, %v2211_v0  ;;  %v2294_v46 = vadd.f32 %v2270_v16, %v2218_v54  ;;  %v2033_v28 = vmul.f32 %v5490_v37, %v2005_v4  ;;  %v5812_v52 = vld [vmem:[#allocation2 + $0x3a] sm:$0xff] }
 0x1ef   : > { %v2040_v6 = vmul.f32 %v5490_v37, %v2012_v63  ;;  %v5803_v61 = vld [vmem:[#allocation2 + $0x92] sm:$0xff]  ;;  %v5808_v19 = vsel %vm5595_vm10, %v2314_v18, 0.0  ;;  %v2132_v8 = vadd.f32 %v2108_v20, %v2056_v51  ;;  %v5815_v63 = vadd.f32 %v2595_v24, %v5690_v41  ;;  %v2233_v18 = vld [vmem:[#allocation2 + $0x3c] sm:$0xff] }
 0x1f0   : > { %v2219_v2 = vadd.f32 %v2195_v60, %v2143_v25  ;;  %v2156_v5 = vld [vmem:[#allocation2 + $0x33] sm:$0xff]  ;;  %v2646_v54 = vmul.f32 %v5668_v15, %v2080_v36  ;;  %v2315_v0 = vadd.f32 %v5535_v56, %v2287_v33  ;;  %v2552_v12 = vmul.f32 %v5657_v49, %v5803_v61 }
 0x1f1   : > { %v2232_v59 = vld [vmem:[#allocation2 + $0x34] sm:$0xff]  ;;  %v2322_v21 = vadd.f32 %v5535_v56, %v2294_v46  ;;  %v2057_v39 = vadd.f32 %v2033_v28, %v1957_v45  ;;  %v5823_v16 = vadd.f32 %v5753_v47, %v2544_v9  ;;  %v2109_v36 = vmul.f32 %v5499_v22, %v5812_v52 }
 0x1f2   : > { %v2295_v62 = vadd.f32 %v2271_v13, %v2219_v2  ;;  %v5827_v24 = vsel %vm5595_vm10, %v2315_v0, 0.0  ;;  %v2184_v51 = vmul.f32 %v5513_v29, %v2156_v5  ;;  %v2064_v41 = vadd.f32 %v2040_v6, %v1964_v58  ;;  %v1937_v33 = vld [vmem:[#allocation2 + $0x98] sm:$0xff]  ;;  %v7262_v23 = vld [vmem:[#allocation21_spill] sm:$0xff]  ;;  %vm6056_vm10 = vmand %vm1815_vm1, %vm1827_vm2 }
 0x1f3   : > { %7248 = vst [vmem:[#allocation32_spill] sm:$0xff] %v5823_v16  ;;  %v2116_v20 = vmul.f32 %v5499_v22, %v5803_v61  ;;  %v2185_v4 = vmul.f32 %v5513_v29, %v2157_v38  ;;  %v2260_v25 = vmul.f32 %v5520_v32, %v2232_v59  ;;  %v5839_v42 = vsel %vm5605_vm12, %v2322_v21, 0.0  ;;  %v2013_v5 = vld [vmem:[#allocation2 + $0x99] sm:$0xff] }
 0x1f4   : > { %v2323_v47 = vadd.f32 %v5535_v56, %v2295_v62  ;;  %v2133_v9 = vadd.f32 %v2109_v36, %v2057_v39  ;;  %v2208_v60 = vadd.f32 %v2184_v51, %v2132_v8  ;;  %v5842_v46 = vadd.f32 %v2646_v54, %v5703_v44  ;;  %v5867_v38 = vld [vmem:[#allocation2 + $0x9a] sm:$0xff] }
 0x1f5   : > { %v5846_v58 = vmul.f32 %v5660_v11, %v5803_v61  ;;  %v5849_v6 = vadd.f32 %v5765_v27, %v2552_v12  ;;  %v5853_v45 = vmul.f32 %v5668_v15, %v5803_v61  ;;  %v2261_v28 = vmul.f32 %v5520_v32, %v2233_v18  ;;  %v2164_v17 = vld [vmem:[#allocation2 + $0x93] sm:$0xff] }
 0x1f6   : > { %v5857_v2 = vsel %vm5605_vm12, %v2323_v47, 0.0  ;;  %v2209_v13 = vadd.f32 %v2185_v4, %v2133_v9  ;;  %v2284_v44 = vadd.f32 %v2260_v25, %v2208_v60  ;;  %v2140_v8 = vadd.f32 %v2116_v20, %v2064_v41  ;;  %v2165_v20 = vld [vmem:[#allocation2 + $0x9b] sm:$0xff] }
 0x1f7   : > { %7249 = vst [vmem:[#allocation33_spill] sm:$0xff] %v5849_v6  ;;  %7250 = vst [vmem:[#allocation34_spill] sm:$0xff] %v5853_v45  ;;  %v5862_v54 = vmul.f32 %v5671_v53, %v5803_v61  ;;  %v2400_v27 = vmul.f32 %v5552_v48, %v5808_v19  ;;  %v1965_v0 = vmul.f32 %v5487_v10, %v1937_v33  ;;  %v2240_v4 = vld [vmem:[#allocation2 + $0x94] sm:$0xff]  ;;  %v2241_v6 = vld [vmem:[#allocation2 + $0x9c] sm:$0xff]  ;;  %vm1819_vm6 = vcmp.ge.s32.totalorder %v7262_v23, 0 }
 0x1f8   : > { %v2434_v59 = vmul.f32 %v5686_v34, %v5808_v19  ;;  %v2468_v12 = vmul.f32 %v5694_v57, %v5808_v19  ;;  %v2285_v62 = vadd.f32 %v2261_v28, %v2209_v13  ;;  %v2312_v21 = vadd.f32 %v5535_v56, %v2284_v44 }
 0x1f9   : > { %7251 = vst [vmem:[#allocation35_spill] sm:$0xff] %v5862_v54  ;;  %v2401_v39 = vmul.f32 %v5552_v48, %v5827_v24  ;;  %v2435_v36 = vmul.f32 %v5686_v34, %v5827_v24  ;;  %v2469_v51 = vmul.f32 %v5694_v57, %v5827_v24  ;;  %v2041_v41 = vmul.f32 %v5490_v37, %v2013_v5 }
 0x1fa   : > { %v2313_v18 = vadd.f32 %v5535_v56, %v2285_v62  ;;  %v2336_v25 = vsel %vm5623_vm14, %v2312_v21, 0.0  ;;  %v2117_v47 = vmul.f32 %v5499_v22, %v5867_v38  ;;  %v2192_v9 = vmul.f32 %v5513_v29, %v2164_v17 }
 0x1fb   : > { %v2364_v60 = vmul.f32 %v5559_v30, %v2336_v25  ;;  %v2398_v33 = vmul.f32 %v5552_v48, %v2336_v25  ;;  %v2432_v13 = vmul.f32 %v5686_v34, %v2336_v25  ;;  %v2065_v28 = vadd.f32 %v2041_v41, %v1965_v0 }
 0x1fc   : > { %v2337_v44 = vsel %vm5623_vm14, %v2313_v18, 0.0  ;;  %v2193_v5 = vmul.f32 %v5513_v29, %v2165_v20  ;;  %v2216_v62 = vadd.f32 %v2192_v9, %v2140_v8  ;;  %v2268_v21 = vmul.f32 %v5520_v32, %v2240_v4 }
 0x1fd   : > { %v2365_v54 = vmul.f32 %v5559_v30, %v2337_v44  ;;  %v2399_v17 = vmul.f32 %v5552_v48, %v2337_v44  ;;  %v2414_v45 = vadd.f32 %v2398_v33, %v5723_v7  ;;  %v5897_v16 = vadd.f32 %v2400_v27, %v2364_v60 }
 0x1fe   : > { %v2433_v25 = vmul.f32 %v5686_v34, %v2337_v44  ;;  %v2448_v0 = vadd.f32 %v2432_v13, %v5582_v3  ;;  %v2141_v40 = vadd.f32 %v2117_v47, %v2065_v28  ;;  %v2292_v41 = vadd.f32 %v2268_v21, %v2216_v62 }
 0x1ff   : > { %v2415_v20 = vadd.f32 %v2399_v17, %v5727_v31  ;;  %v5902_v8 = vadd.f32 %v2401_v39, %v2365_v54  ;;  %v5904_v18 = vadd.f32 %v2434_v59, %v2414_v45  ;;  %v2269_v4 = vmul.f32 %v5520_v32, %v2241_v6 }
 0x200   : > { %v2449_v9 = vadd.f32 %v2433_v25, %v5585_v26  ;;  %v5908_v29 = vadd.f32 %v2468_v12, %v2448_v0  ;;  %v2217_v7 = vadd.f32 %v2193_v5, %v2141_v40  ;;  %v2320_v27 = vadd.f32 %v5535_v56, %v2292_v41 }
 0x201   : > { %v5913_v3 = vmul.f32 %v5682_v35, %v5803_v61  ;;  %v5917_v31 = vmul.f32 %v5657_v49, %v5770_v43  ;;  %v2598_v45 = vmul.f32 %v5660_v11, %v5770_v43  ;;  %v5921_v54 = vadd.f32 %v2435_v36, %v2415_v20  ;;  %v7263_v20 = vld [vmem:[#allocation20_spill] sm:$0xff] }
 0x202   : > { %v2649_v26 = vmul.f32 %v5668_v15, %v5770_v43  ;;  %v5927_v6 = vadd.f32 %v2469_v51, %v2449_v9  ;;  %v2293_v61 = vadd.f32 %v2269_v4, %v2217_v7  ;;  %v5931_v59 = vsel %vm5615_vm13, %v2320_v27, 0.0 }
 0x203   : > { %7252 = vst [vmem:[#allocation36_spill] sm:$0xff] %v5921_v54  ;;  %v2700_v12 = vmul.f32 %v5671_v53, %v5770_v43  ;;  %v5939_v39 = vmul.f32 %v5657_v49, %v5787_v1  ;;  %v2606_v36 = vmul.f32 %v5660_v11, %v5787_v1  ;;  %v2596_v51 = vmul.f32 %v5660_v11, %v5812_v52 }
 0x204   : > { %7253 = vst [vmem:[#allocation37_spill] sm:$0xff] %v5927_v6  ;;  %v2545_v47 = vmul.f32 %v5657_v49, %v5812_v52  ;;  %v2647_v60 = vmul.f32 %v5668_v15, %v5812_v52  ;;  %v2321_v33 = vadd.f32 %v5535_v56, %v2293_v61  ;;  %v2372_v43 = vmul.f32 %v5559_v30, %v5931_v59  ;;  %v7308_v6 = vld [vmem:[#allocation34_spill] sm:$0xff] }
 0x205   : > { %7254 = vst [vmem:[#allocation38_spill] sm:$0xff] %v5939_v39  ;;  %v5954_v13 = vmul.f32 %v5668_v15, %v5787_v1  ;;  %v5958_v28 = vmul.f32 %v5671_v53, %v5787_v1  ;;  %v2553_v44 = vmul.f32 %v5657_v49, %v5867_v38  ;;  %v2408_v5 = vmul.f32 %v5552_v48, %v5839_v42 }
 0x206   : > { %v5966_v52 = vmul.f32 %v5559_v30, %v5808_v19  ;;  %v5970_v62 = vmul.f32 %v5559_v30, %v5827_v24  ;;  %v5974_v21 = vmul.f32 %v5682_v35, %v5787_v1  ;;  %v5978_v17 = vsel %vm5615_vm13, %v2321_v33, 0.0  ;;  %v7259_v24 = vld [vmem:[#allocation16_spill] sm:$0xff]  ;;  %v7261_v1 = vld [vmem:[#allocation17_spill] sm:$0xff] }
 0x207   : > { %7255 = vst [vmem:[#allocation39_spill] sm:$0xff] %v5954_v13  ;;  %7256 = vst [vmem:[#allocation40_spill] sm:$0xff] %v5958_v28  ;;  %v2409_v19 = vmul.f32 %v5552_v48, %v5857_v2  ;;  %v5986_v25 = vmul.f32 %v5694_v57, %v5857_v2  ;;  %v5990_v0 = vmul.f32 %v7259_v24, %v5857_v2  ;;  %vm1831_vm7 = vcmp.lt.s32.totalorder %v7262_v23, 16 }
 0x208   : > { %7257 = vst [vmem:[#allocation41_spill] sm:$0xff] %v5974_v21  ;;  %v2612_v40 = vadd.f32 %v2596_v51, %v7261_v1  ;;  %v5995_v41 = vadd.f32 %v2598_v45, %v2545_v47  ;;  %v2663_v4 = vadd.f32 %v2647_v60, %v7263_v20  ;;  %v2373_v9 = vmul.f32 %v5559_v30, %v5978_v17  ;;  %v7266_v45 = vld [vmem:[#allocation10_spill] sm:$0xff]  ;;  %vm6107_vm12 = vmand %vm1819_vm6, %vm1831_vm7 }
 0x209   : > { %7258 = vst [vmem:[#allocation42_spill] sm:$0xff] %v5986_v25  ;;  %7260 = vst [vmem:[#allocation16_spill] sm:$0xff] %v5990_v0  ;;  %v6000_v27 = vadd.f32 %v2408_v5, %v2372_v43  ;;  %v6004_v61 = vmul.f32 %v5660_v11, %v5867_v38  ;;  %v6006_v33 = vadd.f32 %v2606_v36, %v2553_v44  ;;  %v7268_v36 = vld [vmem:[#allocation26_spill] sm:$0xff]  ;;  %v7271_v25 = vld [vmem:[#allocation11_spill] sm:$0xff]  ;;  %v7285_v14 = vsel %vm6107_vm12, 4294967295, %v7284_v14 }
 0x20a   : > { %v3804_v7 = vpop.f32.mrb[8].mxu0  ;;  %v6010_v51 = vmul.f32 %v5668_v15, %v5867_v38  ;;  %v6015_v60 = vmul.f32 %v5671_v53, %v5867_v38  ;;  %v6019_v43 = vmul.f32 %v5682_v35, %v5867_v38  ;;  %v6024_v44 = vadd.f32 %v7268_v36, %v5815_v63  ;;  %7286 = vst [vmem:[#allocation48_spill] sm:$0xff] %v7285_v14  ;;  %v7307_v14 = vld [vmem:[#allocation32_spill] sm:$0xff] }
 0x20b   : > { %7264 = vst [vmem:[#allocation17_spill] sm:$0xff] %v6000_v27  ;;  %7265 = vst [vmem:[#allocation21_spill] sm:$0xff] %v6006_v33  ;;  %v1732_v47 = vmul.f32 %v3804_v7, %v7266_v45  ;;  %v1654_v1 = vpop.f32.mrb[9].mxu0  ;;  %v6028_v0 = vmul.f32 %v5686_v34, %v5931_v59  ;;  %v6032_v7 = vmul.f32 %v5694_v57, %v5931_v59  ;;  %vm3111_vm6 = vcmask 1043459  }
 0x20c   : > { %7267 = vst [vmem:[#allocation20_spill] sm:$0xff] %v6019_v43  ;;  %v1730_v5 = vmul.f32 %v7266_v45, %v1654_v1  ;;  %v3805_v20 = vpop.f32.mrb[10].mxu0  ;;  %v6038_v1 = vmul.f32 %v7259_v24, %v5931_v59  ;;  %v6124_v23 = vmul.f32 %v7259_v24, %v5839_v42  ;;  %vm3114_vm7 = vcmask 1044484  }
 0x20d   : > { %7269 = vst [vmem:[#allocation26_spill] sm:$0xff] %v6028_v0  ;;  %7270 = vst [vmem:[#allocation43_spill] sm:$0xff] %v6032_v7  ;;  %v1760_v27 = vadd.f32 %v7271_v25, %v1732_v47  ;;  %v1733_v38 = vmul.f32 %v3805_v20, %v7266_v45  ;;  %v1657_v28 = vpop.f32.mrb[11].mxu0  ;;  %v6050_v47 = vadd.f32 %v2409_v19, %v2373_v9 }
 0x20e   : > { %7272 = vst [vmem:[#allocation44_spill] sm:$0xff] %v6038_v1  ;;  %v1758_v36 = vadd.f32 %v7271_v25, %v1730_v5  ;;  %v1731_v7 = vmul.f32 %v7266_v45, %v1657_v28  ;;  %v6062_v0 = vadd.f32 %v7278_v55, %v5842_v46  ;;  %v6065_v5 = vadd.f32 %v2649_v26, %v2612_v40 }
 0x20f   : > { %7275 = vst [vmem:[#allocation45_spill] sm:$0xff] %v6050_v47  ;;  %v1784_v20 = vmax.f32 %v1760_v27, 0.0  ;;  %v1761_v33 = vadd.f32 %v7271_v25, %v1733_v38  ;;  %v3812_v28 = vpop.f32.mrb[4].mxu1  ;;  %v6068_v27 = vadd.f32 %v2700_v12, %v2663_v4  ;;  %v6076_v26 = vmul.f32 %v5559_v30, %v5839_v42  ;;  %7289 = vst [vmem:[#allocation51_spill] sm:$0xff] %v6124_v23 }
 0x210   : > { %v1782_v19 = vmax.f32 %v1758_v36, 0.0  ;;  %v1759_v9 = vadd.f32 %v7271_v25, %v1731_v7  ;;  %v1740_v50 = vmul.f32 %v3812_v28, %v7266_v45  ;;  %v1686_v47 = vpop.f32.mrb[5].mxu1 }
 0x211   : > { %v1881_v13 = vsel %vm6044_vm9, %v1784_v20, 0.0  ;;  %v1785_v39 = vmax.f32 %v1761_v33, 0.0  ;;  %v1738_v46 = vmul.f32 %v7266_v45, %v1686_v47  ;;  %v3813_v55 = vpop.f32.mrb[6].mxu1  ;;  %7279 = vst [vmem:[#allocation28_spill] sm:$0xff] %v6076_v26  ;;  %v6098_v20 = vmul.f32 %v5552_v48, %v5931_v59 }
 0x212   : > { %1905 = vst.msk [vmem:[#allocation2 + $0x7a] sm:$0xff] %vm1374_vm4, %v1881_v13  ;;  %v1879_v12 = vsel %vm6056_vm10, %v1782_v19, 0.0  ;;  %v1783_v40 = vmax.f32 %v1759_v9, 0.0  ;;  %v1768_v4 = vadd.f32 %v7271_v25, %v1740_v50  ;;  %v1741_v7 = vmul.f32 %v3813_v55, %v7266_v45  ;;  %v1689_v38 = vpop.f32.mrb[7].mxu1 }
 0x213   : > { %1903 = vst.msk [vmem:[#allocation2 + $0x62] sm:$0xff] %vm1374_vm4, %v1879_v12  ;;  %v1882_v33 = vsel %vm6044_vm9, %v1785_v39, 0.0  ;;  %v7280_v13 = vmov 0  ;;  %v1766_v36 = vadd.f32 %v7271_v25, %v1738_v46  ;;  %v1739_v47 = vmul.f32 %v7266_v45, %v1689_v38  ;;  %7283 = vst [vmem:[#allocation47_spill] sm:$0xff] %v6098_v20 }
 0x214   : > { %v7281_v13 = vsel %vm6090_vm11, 4294967295, %v7280_v13  ;;  %1906 = vst.msk [vmem:[#allocation2 + $0x82] sm:$0xff] %vm1374_vm4, %v1882_v33  ;;  %v1880_v39 = vsel %vm6056_vm10, %v1783_v40, 0.0  ;;  %v1792_v28 = vmax.f32 %v1768_v4, 0.0  ;;  %v1769_v19 = vadd.f32 %v7271_v25, %v1741_v7  ;;  %v7291_v4 = vld [vmem:[#allocation9_spill] sm:$0xff]  ;;  %v7292_v7 = vld [vmem:[#allocation19_spill] sm:$0xff] }
 0x215   : > { %7282 = vst [vmem:[#allocation46_spill] sm:$0xff] %v7281_v13  ;;  %v6114_v59 = vmul.f32 %v5686_v34, %v5839_v42  ;;  %1904 = vst.msk [vmem:[#allocation2 + $0x6a] sm:$0xff] %vm1374_vm4, %v1880_v39  ;;  %v1790_v9 = vmax.f32 %v1766_v36, 0.0  ;;  %v1767_v50 = vadd.f32 %v7271_v25, %v1739_v47  ;;  %v6120_v46 = vmul.f32 %v5694_v57, %v5839_v42 }
 0x216   : > { %v6128_v55 = vmul.f32 %v5686_v34, %v5978_v17  ;;  %v1889_v12 = vsel %vm6090_vm11, %v1792_v28, 0.0  ;;  %v1793_v40 = vmax.f32 %v1769_v19, 0.0  ;;  %v6134_v38 = vrot.slane %v7292_v7, %v7291_v4  ;;  %v7296_v28 = vld [vmem:[#allocation12_spill] sm:$0xff]  ;;  %v7298_v4 = vld [vmem:[#allocation13_spill] sm:$0xff] }
 0x217   : > { %7287 = vst [vmem:[#allocation49_spill] sm:$0xff] %v6114_v59  ;;  %7288 = vst [vmem:[#allocation50_spill] sm:$0xff] %v6120_v46  ;;  %v6138_v33 = vmul.f32 %v5694_v57, %v5978_v17  ;;  %v6142_v42 = vmul.f32 %v7259_v24, %v5978_v17  ;;  %v1887_v36 = vsel %vm6107_vm12, %v1790_v9, 0.0  ;;  %v1791_v47 = vmax.f32 %v1767_v50, 0.0 }
 0x218   : > { %7290 = vst [vmem:[#allocation52_spill] sm:$0xff] %v6128_v55  ;;  %7293 = vst [vmem:[#allocation19_spill] sm:$0xff] %v6134_v38  ;;  %v1890_v39 = vsel %vm6090_vm11, %v1793_v40, 0.0  ;;  %v6152_v19 = vrot.slane %v7292_v7, %v7296_v28 }
 0x219   : > { %7294 = vst [vmem:[#allocation53_spill] sm:$0xff] %v6138_v33  ;;  %7295 = vst [vmem:[#allocation54_spill] sm:$0xff] %v6142_v42  ;;  %v6156_v33 = vrot.slane %v7292_v7, %v7298_v4  ;;  %v7300_v42 = vld [vmem:[#allocation14_spill] sm:$0xff]  ;;  %v1888_v40 = vsel %vm6107_vm12, %v1791_v47, 0.0  ;;  %v6171_v4 = vmul.f32 %v5552_v48, %v5978_v17 }
 0x21a   : > { %1913 = vst.msk [vmem:[#allocation2 + $0xda] sm:$0xff] %vm1374_vm4, %v1889_v12  ;;  %1911 = vst.msk [vmem:[#allocation2 + $0xc2] sm:$0xff] %vm1374_vm4, %v1887_v36  ;;  %v6160_v12 = vrot.slane %v7292_v7, %v7300_v42  ;;  %v1934_v55 = vld [vmem:[#allocation2 + $0x78] sm:$0xff]  ;;  %v6167_v36 = vmul.f32 %v5559_v30, %v5857_v2  ;;  %v6175_v7 = vmul.f32 %v5686_v34, %v5857_v2 }
 0x21b   : > { %7297 = vst [vmem:[#allocation55_spill] sm:$0xff] %v6152_v19  ;;  %7299 = vst [vmem:[#allocation56_spill] sm:$0xff] %v6156_v33  ;;  %v2010_v9 = vld [vmem:[#allocation2 + $0x79] sm:$0xff]  ;;  %v1962_v42 = vmul.f32 %v5487_v10, %v1934_v55  ;;  %v2008_v33 = vld [vmem:[#allocation2 + $0x61] sm:$0xff] }
 0x21c   : > { %7301 = vst [vmem:[#allocation57_spill] sm:$0xff] %v6160_v12  ;;  %v2086_v50 = vld [vmem:[#allocation2 + $0x7a] sm:$0xff]  ;;  %1914 = vst.msk [vmem:[#allocation2 + $0xe2] sm:$0xff] %vm1374_vm4, %v1890_v39  ;;  %v2038_v28 = vmul.f32 %v5490_v37, %v2010_v9  ;;  %v2084_v19 = vld [vmem:[#allocation2 + $0x62] sm:$0xff]  ;;  %v2036_v38 = vmul.f32 %v5490_v37, %v2008_v33 }
 0x21d   : > { %7302 = vst [vmem:[#allocation58_spill] sm:$0xff] %v6167_v36  ;;  %7303 = vst [vmem:[#allocation59_spill] sm:$0xff] %v6171_v4  ;;  %v2114_v39 = vmul.f32 %v5499_v22, %v2086_v50  ;;  %v2550_v47 = vmul.f32 %v5657_v49, %v2086_v50  ;;  %v1932_v12 = vld [vmem:[#allocation2 + $0x60] sm:$0xff]  ;;  %v2601_v17 = vmul.f32 %v5660_v11, %v2086_v50 }
 0x21e   : > { %7304 = vst [vmem:[#allocation60_spill] sm:$0xff] %v6175_v7  ;;  %1912 = vst.msk [vmem:[#allocation2 + $0xca] sm:$0xff] %vm1374_vm4, %v1888_v40  ;;  %v2652_v4 = vmul.f32 %v5668_v15, %v2086_v50  ;;  %v2703_v2 = vmul.f32 %v5671_v53, %v2086_v50  ;;  %v2754_v7 = vmul.f32 %v5682_v35, %v2086_v50  ;;  %v1935_v23 = vld [vmem:[#allocation2 + $0x80] sm:$0xff] }
 0x21f   : > { %v2062_v55 = vadd.f32 %v2038_v28, %v1962_v42  ;;  %v6187_v9 = vadd.f32 %v5846_v58, %v2550_v47  ;;  %v1960_v36 = vmul.f32 %v5487_v10, %v1932_v12  ;;  %v2112_v46 = vmul.f32 %v5499_v22, %v2084_v19  ;;  %v2011_v20 = vld [vmem:[#allocation2 + $0x81] sm:$0xff]  ;;  %v7306_v12 = vld [vmem:[#allocation25_spill] sm:$0xff] }
 0x220   : > { %v2548_v40 = vmul.f32 %v5657_v49, %v2084_v19  ;;  %v2599_v59 = vmul.f32 %v5660_v11, %v2084_v19  ;;  %v2650_v26 = vmul.f32 %v5668_v15, %v2084_v19  ;;  %v2701_v42 = vmul.f32 %v5671_v53, %v2084_v19  ;;  %v2087_v28 = vld [vmem:[#allocation2 + $0x82] sm:$0xff] }
 0x221   : > { %7305 = vst [vmem:[#allocation61_spill] sm:$0xff] %v6187_v9  ;;  %v2138_v25 = vadd.f32 %v2114_v39, %v2062_v55  ;;  %v2060_v50 = vadd.f32 %v2036_v38, %v1960_v36  ;;  %v2752_v58 = vmul.f32 %v5682_v35, %v2084_v19  ;;  %v1963_v45 = vmul.f32 %v5487_v10, %v1935_v23  ;;  %v2162_v9 = vld [vmem:[#allocation2 + $0x7b] sm:$0xff]  ;;  %v2163_v36 = vld [vmem:[#allocation2 + $0x83] sm:$0xff] }
 0x222   : > { %v2615_v47 = vadd.f32 %v2599_v59, %v7306_v12  ;;  %v2617_v33 = vadd.f32 %v2601_v17, %v2548_v40  ;;  %v2666_v13 = vadd.f32 %v2650_v26, %v7307_v14  ;;  %v2717_v43 = vadd.f32 %v2701_v42, %v6024_v44  ;;  %v2238_v55 = vld [vmem:[#allocation2 + $0x7c] sm:$0xff]  ;;  %v2239_v14 = vld [vmem:[#allocation2 + $0x84] sm:$0xff] }
 0x223   : > { %v6200_v21 = vadd.f32 %v2112_v46, %v2060_v50  ;;  %v2768_v39 = vadd.f32 %v2752_v58, %v6062_v0  ;;  %v2039_v38 = vmul.f32 %v5490_v37, %v2011_v20  ;;  %v2115_v26 = vmul.f32 %v5499_v22, %v2087_v28  ;;  %v7309_v17 = vld [vmem:[#allocation18_spill] sm:$0xff]  ;;  %v7310_v50 = vld [vmem:[#allocation15_spill] sm:$0xff] }
 0x224   : > { %v2668_v19 = vadd.f32 %v2652_v4, %v2615_v47  ;;  %v6206_v54 = vadd.f32 %v7308_v6, %v2617_v33  ;;  %v2719_v59 = vadd.f32 %v2703_v2, %v2666_v13  ;;  %v2770_v23 = vadd.f32 %v2754_v7, %v2717_v43  ;;  %v7311_v42 = vld [vmem:[#allocation35_spill] sm:$0xff]  ;;  %v1933_v7 = vld [vmem:[#allocation2 + $0x68] sm:$0xff] }
 0x225   : > { %v2788_v46 = vadd.f32 %v7309_v17, %v2768_v39  ;;  %v2063_v40 = vadd.f32 %v2039_v38, %v1963_v45  ;;  %v2190_v44 = vmul.f32 %v7310_v50, %v2162_v9  ;;  %v2191_v58 = vmul.f32 %v7310_v50, %v2163_v36  ;;  %v7312_v45 = vld [vmem:[#allocation31_spill] sm:$0xff]  ;;  %v2009_v33 = vld [vmem:[#allocation2 + $0x69] sm:$0xff] }
 0x226   : > { %v2721_v0 = vadd.f32 %v7311_v42, %v2668_v19  ;;  %v2772_v20 = vadd.f32 %v5913_v3, %v2719_v59  ;;  %v2266_v4 = vmul.f32 %v5520_v32, %v2238_v55  ;;  %v2790_v6 = vadd.f32 %v7309_v17, %v2770_v23  ;;  %v2085_v39 = vld [vmem:[#allocation2 + $0x6a] sm:$0xff] }
 0x227   : > { %2804 = vst.msk [vmem:[#allocation3 + $0x2] sm:$0xff] %vm1374_vm4, %v2788_v46  ;;  %v2139_v13 = vadd.f32 %v2115_v26, %v2063_v40  ;;  %v2214_v2 = vadd.f32 %v2190_v44, %v2138_v25  ;;  %v2267_v43 = vmul.f32 %v5520_v32, %v2239_v14  ;;  %v2551_v47 = vmul.f32 %v5657_v49, %v2087_v28  ;;  %v2160_v38 = vld [vmem:[#allocation2 + $0x63] sm:$0xff]  ;;  %v2161_v59 = vld [vmem:[#allocation2 + $0x6b] sm:$0xff] }
 0x228   : > { %v2774_v12 = vadd.f32 %v7312_v45, %v2721_v0  ;;  %v2792_v9 = vadd.f32 %v7309_v17, %v2772_v20  ;;  %v2602_v3 = vmul.f32 %v5660_v11, %v2087_v28  ;;  %2806 = vst.msk [vmem:[#allocation3 + $0x1a] sm:$0xff] %vm1374_vm4, %v2790_v6  ;;  %v2653_v25 = vmul.f32 %v5668_v15, %v2087_v28  ;;  %v2236_v26 = vld [vmem:[#allocation2 + $0x64] sm:$0xff]  ;;  %v2237_v14 = vld [vmem:[#allocation2 + $0x6c] sm:$0xff] }
 0x229   : > { %v2215_v36 = vadd.f32 %v2191_v58, %v2139_v13  ;;  %v2290_v55 = vadd.f32 %v2266_v4, %v2214_v2  ;;  %v6225_v19 = vmul.f32 %v5671_v53, %v2087_v28  ;;  %v6230_v46 = vadd.f32 %v6004_v61, %v2551_v47 }
 0x22a   : > { %v2794_v23 = vadd.f32 %v7309_v17, %v2774_v12  ;;  %2808 = vst.msk [vmem:[#allocation3 + $0x32] sm:$0xff] %vm1374_vm4, %v2792_v9  ;;  %v2755_v40 = vmul.f32 %v5682_v35, %v2087_v28  ;;  %v1961_v44 = vmul.f32 %v5487_v10, %v1933_v7  ;;  %v2037_v20 = vmul.f32 %v5490_v37, %v2009_v33 }
 0x22b   : > { %v2291_v42 = vadd.f32 %v2267_v43, %v2215_v36  ;;  %v2318_v0 = vadd.f32 %v5535_v56, %v2290_v55  ;;  %v2113_v58 = vmul.f32 %v5499_v22, %v2085_v39  ;;  %v2188_v4 = vmul.f32 %v7310_v50, %v2160_v38  ;;  %v1942_v55 = vld [vmem:[#allocation2 + $0xd8] sm:$0xff] }
 0x22c   : > { %2810 = vst.msk [vmem:[#allocation3 + $0x4a] sm:$0xff] %vm1374_vm4, %v2794_v23  ;;  %v2189_v6 = vmul.f32 %v7310_v50, %v2161_v59  ;;  %v2264_v61 = vmul.f32 %v5520_v32, %v2236_v26  ;;  %v2265_v13 = vmul.f32 %v5520_v32, %v2237_v14  ;;  %v2061_v43 = vadd.f32 %v2037_v20, %v1961_v44  ;;  %v6270_v59 = vpop.f32.mrb[8].mxu1 }
 0x22d   : > { %v2319_v28 = vadd.f32 %v5535_v56, %v2291_v42  ;;  %v6245_v2 = vsel %vm6044_vm9, %v2318_v0, 0.0  ;;  %v2549_v7 = vmul.f32 %v5657_v49, %v2085_v39  ;;  %v2212_v38 = vadd.f32 %v2188_v4, %v6200_v21  ;;  %v6284_v21 = vpop.f32.mrb[9].mxu1 }
 0x22e   : > { %v6250_v45 = vmul.f32 %v5552_v48, %v6245_v2  ;;  %v6254_v12 = vmul.f32 %v5686_v34, %v6245_v2  ;;  %v6258_v9 = vmul.f32 %v5694_v57, %v6245_v2  ;;  %v6262_v47 = vmul.f32 %v7259_v24, %v6245_v2  ;;  %v6287_v4 = vpop.f32.mrb[10].mxu1 }
 0x22f   : > { %v6266_v33 = vsel %vm6044_vm9, %v2319_v28, 0.0  ;;  %v2137_v49 = vadd.f32 %v2113_v58, %v2061_v43  ;;  %v2600_v36 = vmul.f32 %v5660_v11, %v2085_v39  ;;  %v2288_v42 = vadd.f32 %v2264_v61, %v2212_v38  ;;  %v2018_v58 = vld [vmem:[#allocation2 + $0xd9] sm:$0xff] }
 0x230   : > { %7313 = vst [vmem:[#allocation25_spill] sm:$0xff] %v6258_v9  ;;  %7314 = vst [vmem:[#allocation32_spill] sm:$0xff] %v6262_v47  ;;  %v2405_v26 = vmul.f32 %v5552_v48, %v6266_v33  ;;  %v6276_v14 = vmul.f32 %v5686_v34, %v6266_v33  ;;  %v6280_v63 = vmul.f32 %v5694_v57, %v6266_v33  ;;  %v2094_v47 = vld [vmem:[#allocation2 + $0xda] sm:$0xff]  ;;  %vm3117_vm9 = vcmask 1045509  }
 0x231   : > { %7315 = vst [vmem:[#allocation34_spill] sm:$0xff] %v6266_v33  ;;  %v2507_v23 = vmul.f32 %v7259_v24, %v6266_v33  ;;  %v2213_v44 = vadd.f32 %v2189_v6, %v2137_v49  ;;  %v2616_v0 = vadd.f32 %v2600_v36, %v5917_v31  ;;  %v2618_v20 = vadd.f32 %v2602_v3, %v2549_v7  ;;  %v6293_v33 = vpop.f32.mrb[11].mxu1 }
 0x232   : > { %7316 = vst [vmem:[#allocation18_spill] sm:$0xff] %v6276_v14  ;;  %7317 = vst [vmem:[#allocation15_spill] sm:$0xff] %v6280_v63  ;;  %v2651_v28 = vmul.f32 %v5668_v15, %v2085_v39  ;;  %v2702_v43 = vmul.f32 %v5671_v53, %v2085_v39  ;;  %v2753_v14 = vmul.f32 %v5682_v35, %v2085_v39 }
 0x233   : > { %v1970_v63 = vmul.f32 %v5487_v10, %v1942_v55  ;;  %v2289_v9 = vadd.f32 %v2265_v13, %v2213_v44  ;;  %v2316_v6 = vadd.f32 %v5535_v56, %v2288_v42  ;;  %v2669_v61 = vadd.f32 %v2653_v25, %v2616_v0 }
 0x234   : > { %v6297_v31 = vadd.f32 %v6010_v51, %v2618_v20  ;;  %v2667_v3 = vadd.f32 %v2651_v28, %v5995_v41  ;;  %v2718_v7 = vadd.f32 %v2702_v43, %v6065_v5  ;;  %v2769_v49 = vadd.f32 %v2753_v14, %v6068_v27 }
 0x235   : > { %v2046_v39 = vmul.f32 %v5490_v37, %v2018_v58  ;;  %v2317_v38 = vadd.f32 %v5535_v56, %v2289_v9  ;;  %v2340_v36 = vsel %vm6056_vm10, %v2316_v6, 0.0  ;;  %v2722_v13 = vadd.f32 %v6015_v60, %v2669_v61 }
 0x236   : > { %v2122_v25 = vmul.f32 %v5499_v22, %v2094_v47  ;;  %v6309_v51 = vmul.f32 %v5559_v30, %v2340_v36  ;;  %v2402_v41 = vmul.f32 %v5552_v48, %v2340_v36  ;;  %v2436_v5 = vmul.f32 %v5686_v34, %v2340_v36 }
 0x237   : > { %v2470_v27 = vmul.f32 %v5694_v57, %v2340_v36  ;;  %v2341_v55 = vsel %vm6056_vm10, %v2317_v38, 0.0  ;;  %v2504_v9 = vmul.f32 %v7259_v24, %v2340_v36  ;;  %v2720_v14 = vadd.f32 %v6225_v19, %v2667_v3  ;;  %v7323_v3 = vld [vmem:[#allocation37_spill] sm:$0xff] }
 0x238   : > { %v2771_v44 = vadd.f32 %v2755_v40, %v2718_v7  ;;  %v2369_v60 = vmul.f32 %v5559_v30, %v2341_v55  ;;  %v2403_v42 = vmul.f32 %v5552_v48, %v2341_v55  ;;  %v6321_v0 = vadd.f32 %v2402_v41, %v5966_v52  ;;  %v7326_v36 = vld [vmem:[#allocation41_spill] sm:$0xff] }
 0x239   : > { %v2437_v20 = vmul.f32 %v5686_v34, %v2341_v55  ;;  %v6325_v58 = vadd.f32 %v2436_v5, %v5897_v16  ;;  %v2471_v1 = vmul.f32 %v5694_v57, %v2341_v55  ;;  %v6329_v28 = vadd.f32 %v2470_v27, %v5904_v18  ;;  %v7322_v16 = vld [vmem:[#allocation36_spill] sm:$0xff]  ;;  %v1940_v5 = vld [vmem:[#allocation2 + $0xc0] sm:$0xff] }
 0x23a   : > { %v2505_v19 = vmul.f32 %v7259_v24, %v2341_v55  ;;  %v6333_v40 = vadd.f32 %v2403_v42, %v5970_v62  ;;  %v6335_v43 = vadd.f32 %v2405_v26, %v2369_v60  ;;  %v6341_v6 = vadd.f32 %v2504_v9, %v5908_v29  ;;  %v7325_v18 = vld [vmem:[#allocation20_spill] sm:$0xff] }
 0x23b   : > { %v6338_v52 = vadd.f32 %v2437_v20, %v5902_v8  ;;  %v2487_v61 = vadd.f32 %v2471_v1, %v7322_v16  ;;  %v2773_v38 = vadd.f32 %v7325_v18, %v2720_v14  ;;  %v2775_v41 = vadd.f32 %v7326_v36, %v2722_v13  ;;  %v2016_v62 = vld [vmem:[#allocation2 + $0xc1] sm:$0xff]  ;;  %v7328_v16 = vld [vmem:[#allocation61_spill] sm:$0xff] }
 0x23c   : > { %7318 = vst [vmem:[#allocation35_spill] sm:$0xff] %v6333_v40  ;;  %7319 = vst [vmem:[#allocation31_spill] sm:$0xff] %v6335_v43  ;;  %v6345_v7 = vadd.f32 %v2505_v19, %v7323_v3  ;;  %v2789_v26 = vadd.f32 %v7309_v17, %v2769_v49  ;;  %v2791_v27 = vadd.f32 %v7309_v17, %v2771_v44  ;;  %v2092_v29 = vld [vmem:[#allocation2 + $0xc2] sm:$0xff]  ;;  %vm3123_vm10 = vcmask 1047559  }
 0x23d   : > { %7320 = vst [vmem:[#allocation62_spill] sm:$0xff] %v6338_v52  ;;  %7321 = vst [vmem:[#allocation63_spill] sm:$0xff] %v6341_v6  ;;  %v2070_v8 = vadd.f32 %v2046_v39, %v1970_v63  ;;  %v6352_v55 = vmul.f32 %v5668_v15, %v2094_v47  ;;  %v6354_v9 = vadd.f32 %v2507_v23, %v2487_v61  ;;  %v1943_v23 = vld [vmem:[#allocation2 + $0xe0] sm:$0xff] }
 0x23e   : > { %7324 = vst [vmem:[#allocation36_spill] sm:$0xff] %v6345_v7  ;;  %v2793_v60 = vadd.f32 %v7309_v17, %v2773_v38  ;;  %v2795_v42 = vadd.f32 %v7309_v17, %v2775_v41  ;;  %v6359_v14 = vmul.f32 %v5671_v53, %v2094_v47  ;;  %2805 = vst.msk [vmem:[#allocation3 + $0xa] sm:$0xff] %vm1374_vm4, %v2789_v26  ;;  %v2019_v44 = vld [vmem:[#allocation2 + $0xe1] sm:$0xff]  ;;  %v7330_v38 = vld [vmem:[#allocation30_spill] sm:$0xff] }
 0x23f   : > { %7327 = vst [vmem:[#allocation37_spill] sm:$0xff] %v6354_v9  ;;  %2807 = vst.msk [vmem:[#allocation3 + $0x22] sm:$0xff] %vm1374_vm4, %v2791_v27  ;;  %v2146_v49 = vadd.f32 %v2122_v25, %v2070_v8  ;;  %v2762_v63 = vmul.f32 %v5682_v35, %v2094_v47  ;;  %v1968_v39 = vmul.f32 %v5487_v10, %v1940_v5  ;;  %v7329_v25 = vld [vmem:[#allocation29_spill] sm:$0xff]  ;;  %v2095_v47 = vld [vmem:[#allocation2 + $0xe2] sm:$0xff] }
 0x240   : > { %v2044_v13 = vmul.f32 %v5490_v37, %v2016_v62  ;;  %2809 = vst.msk [vmem:[#allocation3 + $0x3a] sm:$0xff] %vm1374_vm4, %v2793_v60  ;;  %2811 = vst.msk [vmem:[#allocation3 + $0x52] sm:$0xff] %vm1374_vm4, %v2795_v42  ;;  %v2120_v20 = vmul.f32 %v5499_v22, %v2092_v29  ;;  %v2607_v1 = vmul.f32 %v5660_v11, %v2092_v29  ;;  %v2170_v5 = vld [vmem:[#allocation2 + $0xdb] sm:$0xff]  ;;  %v2171_v62 = vld [vmem:[#allocation2 + $0xe3] sm:$0xff] }
 0x241   : > { %v2658_v19 = vmul.f32 %v5668_v15, %v2092_v29  ;;  %v2672_v61 = vadd.f32 %v7329_v25, %v7328_v16  ;;  %v2709_v18 = vmul.f32 %v5671_v53, %v2092_v29  ;;  %v2723_v36 = vadd.f32 %v7330_v38, %v6206_v54  ;;  %v2246_v26 = vld [vmem:[#allocation2 + $0xdc] sm:$0xff]  ;;  %v7332_v60 = vld [vmem:[#allocation33_spill] sm:$0xff] }
 0x242   : > { %v2068_v3 = vadd.f32 %v2044_v13, %v1968_v39  ;;  %v2760_v41 = vmul.f32 %v5682_v35, %v2092_v29  ;;  %v7331_v27 = vld [vmem:[#allocation27_spill] sm:$0xff]  ;;  %v1971_v16 = vmul.f32 %v5487_v10, %v1943_v23  ;;  %v2047_v39 = vmul.f32 %v5490_v37, %v2019_v44 }
 0x243   : > { %v6378_v8 = vadd.f32 %v2607_v1, %v7331_v27  ;;  %v6381_v42 = vadd.f32 %v2658_v19, %v7332_v60  ;;  %v2247_v13 = vld [vmem:[#allocation2 + $0xe4] sm:$0xff]  ;;  %v2725_v9 = vadd.f32 %v2709_v18, %v2672_v61  ;;  %v2123_v54 = vmul.f32 %v5499_v22, %v2095_v47 }
 0x244   : > { %v2144_v25 = vadd.f32 %v2120_v20, %v2068_v3  ;;  %v2776_v7 = vadd.f32 %v2760_v41, %v2723_v36  ;;  %v2071_v29 = vadd.f32 %v2047_v39, %v1971_v16  ;;  %v2198_v38 = vmul.f32 %v7310_v50, %v2170_v5  ;;  %v1941_v27 = vld [vmem:[#allocation2 + $0xc8] sm:$0xff]  ;;  %v7333_v16 = vld [vmem:[#allocation22_spill] sm:$0xff]  ;;  %v7334_v39 = vld [vmem:[#allocation23_spill] sm:$0xff] }
 0x245   : > { %v2199_v52 = vmul.f32 %v7310_v50, %v2171_v62  ;;  %v2274_v1 = vmul.f32 %v5520_v32, %v2246_v26  ;;  %v2017_v19 = vld [vmem:[#allocation2 + $0xc9] sm:$0xff]  ;;  %v2778_v43 = vadd.f32 %v2762_v63, %v2725_v9  ;;  %v2275_v44 = vmul.f32 %v5520_v32, %v2247_v13 }
 0x246   : > { %v2093_v60 = vld [vmem:[#allocation2 + $0xca] sm:$0xff]  ;;  %v2796_v23 = vadd.f32 %v7309_v17, %v2776_v7  ;;  %v6392_v20 = vmul.f32 %v5668_v15, %v2095_v47  ;;  %v2147_v18 = vadd.f32 %v2123_v54, %v2071_v29  ;;  %v2222_v36 = vadd.f32 %v2198_v38, %v2146_v49 }
 0x247   : > { %v2168_v61 = vld [vmem:[#allocation2 + $0xc3] sm:$0xff]  ;;  %v2169_v3 = vld [vmem:[#allocation2 + $0xcb] sm:$0xff]  ;;  %v6395_v41 = vmul.f32 %v5671_v53, %v2095_v47  ;;  %v2763_v5 = vmul.f32 %v5682_v35, %v2095_v47  ;;  %vm1822_vm13 = vcmp.ge.s32.totalorder %v7333_v16, 0  ;;  %vm1834_vm14 = vcmp.lt.s32.totalorder %v7333_v16, 16 }
 0x248   : > { %v2244_v62 = vld [vmem:[#allocation2 + $0xc4] sm:$0xff]  ;;  %v2245_v26 = vld [vmem:[#allocation2 + $0xcc] sm:$0xff]  ;;  %v2798_v7 = vadd.f32 %v7309_v17, %v2778_v43  ;;  %2812 = vst.msk [vmem:[#allocation3 + $0x62] sm:$0xff] %vm1374_vm4, %v2796_v23  ;;  %v1969_v9 = vmul.f32 %v5487_v10, %v1941_v27  ;;  %v2045_v63 = vmul.f32 %v5490_v37, %v2017_v19  ;;  %v2121_v49 = vmul.f32 %v5499_v22, %v2093_v60  ;;  %vm6455_vm1 = vmand %vm1822_vm13, %vm1834_vm14 }
 0x249   : > { %vm1821_vm15 = vcmp.ge.s32.totalorder %v7334_v39, 0  ;;  %vm1833_vm0 = vcmp.lt.s32.totalorder %v7334_v39, 16  ;;  %v2223_v47 = vadd.f32 %v2199_v52, %v2147_v18  ;;  %v2298_v13 = vadd.f32 %v2274_v1, %v2222_v36  ;;  %v7335_v18 = vld [vmem:[#allocation38_spill] sm:$0xff] }
 0x24a   : > { %v2196_v54 = vmul.f32 %v7310_v50, %v2168_v61  ;;  %v2197_v29 = vmul.f32 %v7310_v50, %v2169_v3  ;;  %2814 = vst.msk [vmem:[#allocation3 + $0x7a] sm:$0xff] %vm1374_vm4, %v2798_v7  ;;  %v2069_v43 = vadd.f32 %v2045_v63, %v1969_v9  ;;  %v2272_v38 = vmul.f32 %v5520_v32, %v2244_v62  ;;  %v7336_v3 = vld [vmem:[#allocation39_spill] sm:$0xff]  ;;  %vm6470_vm2 = vmand %vm1821_vm15, %vm1833_vm0 }
 0x24b   : > { %v2273_v27 = vmul.f32 %v5520_v32, %v2245_v26  ;;  %v2608_v19 = vmul.f32 %v5660_v11, %v2093_v60  ;;  %v2299_v23 = vadd.f32 %v2275_v44, %v2223_v47  ;;  %v2326_v40 = vadd.f32 %v5535_v56, %v2298_v13  ;;  %v7337_v26 = vld [vmem:[#allocation21_spill] sm:$0xff]  ;;  %v7338_v11 = vld [vmem:[#allocation40_spill] sm:$0xff] }
 0x24c   : > { %v2220_v6 = vadd.f32 %v2196_v54, %v2144_v25  ;;  %v2659_v52 = vmul.f32 %v5668_v15, %v2093_v60  ;;  %v2145_v1 = vadd.f32 %v2121_v49, %v2069_v43  ;;  %v2673_v36 = vadd.f32 %v7336_v3, %v6230_v46  ;;  %v7339_v49 = vld [vmem:[#allocation10_spill] sm:$0xff]  ;;  %v7347_v54 = vld [vmem:[#allocation47_spill] sm:$0xff] }
 0x24d   : > { %v2624_v61 = vadd.f32 %v2608_v19, %v7335_v18  ;;  %v2710_v7 = vmul.f32 %v5671_v53, %v2093_v60  ;;  %v2327_v62 = vadd.f32 %v5535_v56, %v2299_v23  ;;  %v2724_v44 = vadd.f32 %v7338_v11, %v6297_v31  ;;  %v7368_v3 = vld [vmem:[#allocation59_spill] sm:$0xff] }
 0x24e   : > { %v2296_v9 = vadd.f32 %v2272_v38, %v2220_v6  ;;  %v2675_v63 = vadd.f32 %v2659_v52, %v7337_v26  ;;  %v2221_v47 = vadd.f32 %v2197_v29, %v2145_v1  ;;  %v2761_v15 = vmul.f32 %v5682_v35, %v2093_v60  ;;  %v7342_v1 = vld [vmem:[#allocation11_spill] sm:$0xff] }
 0x24f   : > { %v2726_v25 = vadd.f32 %v2710_v7, %v2673_v36  ;;  %v1744_v13 = vmul.f32 %v6270_v59, %v7339_v49  ;;  %v6428_v46 = vsel %vm6090_vm11, %v2327_v62, 0.0  ;;  %v1742_v6 = vmul.f32 %v7339_v49, %v6284_v21 }
 0x250   : > { %v2324_v43 = vadd.f32 %v5535_v56, %v2296_v9  ;;  %v6435_v38 = vadd.f32 %v6352_v55, %v6378_v8  ;;  %v6439_v31 = vmul.f32 %v5686_v34, %v6428_v46  ;;  %v6443_v59 = vmul.f32 %v5694_v57, %v6428_v46 }
 0x251   : > { %v2297_v60 = vadd.f32 %v2273_v27, %v2221_v47  ;;  %v2777_v29 = vadd.f32 %v2761_v15, %v2724_v44  ;;  %v2779_v52 = vadd.f32 %v2763_v5, %v2726_v25  ;;  %v1772_v21 = vadd.f32 %v7342_v1, %v1744_v13 }
 0x252   : > { %v2348_v23 = vsel %vm6107_vm12, %v2324_v43, 0.0  ;;  %v1770_v18 = vadd.f32 %v7342_v1, %v1742_v6  ;;  %v6461_v27 = vadd.f32 %v6359_v14, %v6381_v42  ;;  %v1745_v5 = vmul.f32 %v6287_v4, %v7339_v49 }
 0x253   : > { %v2325_v55 = vadd.f32 %v5535_v56, %v2297_v60  ;;  %v2797_v8 = vadd.f32 %v7309_v17, %v2777_v29  ;;  %v2799_v36 = vadd.f32 %v7309_v17, %v2779_v52  ;;  %v1796_v7 = vmax.f32 %v1772_v21, 0.0  ;;  %v7348_v60 = vld [vmem:[#allocation28_spill] sm:$0xff]  ;;  %v7349_v29 = vld [vmem:[#allocation26_spill] sm:$0xff]  ;;  %v7351_v21 = vld [vmem:[#allocation25_spill] sm:$0xff] }
 0x254   : > { %v1794_v62 = vmax.f32 %v1770_v18, 0.0  ;;  %v1743_v9 = vmul.f32 %v7339_v49, %v6293_v33  ;;  %v1773_v4 = vadd.f32 %v7342_v1, %v1745_v5  ;;  %v6483_v42 = vadd.f32 %v6392_v20, %v2624_v61  ;;  %v7352_v18 = vld [vmem:[#allocation49_spill] sm:$0xff]  ;;  %v7353_v5 = vld [vmem:[#allocation43_spill] sm:$0xff] }
 0x255   : > { %v6478_v14 = vsel %vm6107_vm12, %v2325_v55, 0.0  ;;  %2813 = vst.msk [vmem:[#allocation3 + $0x6a] sm:$0xff] %vm1374_vm4, %v2797_v8  ;;  %v6486_v39 = vadd.f32 %v6395_v41, %v2675_v63  ;;  %2815 = vst.msk [vmem:[#allocation3 + $0x82] sm:$0xff] %vm1374_vm4, %v2799_v36  ;;  %v1893_v20 = vsel %vm6455_vm1, %v1796_v7, 0.0  ;;  %v2350_v44 = vsel %vm6090_vm11, %v2326_v40, 0.0  ;;  %v7354_v7 = vld [vmem:[#allocation50_spill] sm:$0xff] }
 0x256   : > { %v6490_v26 = vmul.f32 %v5552_v48, %v6478_v14  ;;  %v6494_v33 = vmul.f32 %v5686_v34, %v6478_v14  ;;  %v6498_v11 = vmul.f32 %v7259_v24, %v6478_v14  ;;  %1917 = vst.msk [vmem:[#allocation2 + $0x10a] sm:$0xff] %vm1374_vm4, %v1893_v20  ;;  %v1891_v41 = vsel %vm6470_vm2, %v1794_v62, 0.0 }
 0x257   : > { %v1797_v61 = vmax.f32 %v1773_v4, 0.0  ;;  %v1771_v63 = vadd.f32 %v7342_v1, %v1743_v9  ;;  %1915 = vst.msk [vmem:[#allocation2 + $0xf2] sm:$0xff] %vm1374_vm4, %v1891_v41  ;;  %v2370_v47 = vmul.f32 %v5559_v30, %v6245_v2  ;;  %v2410_v25 = vmul.f32 %v5552_v48, %v2348_v23  ;;  %v7355_v41 = vld [vmem:[#allocation32_spill] sm:$0xff] }
 0x258   : > { %v2420_v15 = vadd.f32 %v6250_v45, %v6309_v51  ;;  %v2444_v49 = vmul.f32 %v5686_v34, %v2348_v23  ;;  %v2446_v6 = vmul.f32 %v5686_v34, %v2350_v44  ;;  %v2454_v40 = vadd.f32 %v6254_v12, %v6321_v0  ;;  %v7350_v45 = vld [vmem:[#allocation17_spill] sm:$0xff]  ;;  %v2820_v0 = vld [vmem:[#allocation3] sm:$0xff] }
 0x259   : > { %v1894_v13 = vsel %vm6455_vm1, %v1797_v61, 0.0  ;;  %v1795_v43 = vmax.f32 %v1771_v63, 0.0  ;;  %v2422_v2 = vadd.f32 %v7347_v54, %v2370_v47  ;;  %v2426_v48 = vadd.f32 %v2410_v25, %v7348_v60 }
 0x25a   : > { %1918 = vst.msk [vmem:[#allocation2 + $0x112] sm:$0xff] %vm1374_vm4, %v1894_v13  ;;  %v2456_v19 = vadd.f32 %v7349_v29, %v2420_v15  ;;  %v2460_v51 = vadd.f32 %v2444_v49, %v7350_v45  ;;  %v2478_v1 = vmul.f32 %v5694_v57, %v2348_v23  ;;  %v2480_v34 = vmul.f32 %v5694_v57, %v2350_v44  ;;  %v7356_v15 = vld [vmem:[#allocation44_spill] sm:$0xff]  ;;  %v7357_v13 = vld [vmem:[#allocation51_spill] sm:$0xff] }
 0x25b   : > { %v1892_v52 = vsel %vm6470_vm2, %v1795_v43, 0.0  ;;  %v2488_v12 = vadd.f32 %v7351_v21, %v6325_v58  ;;  %v2458_v55 = vadd.f32 %v7352_v18, %v2422_v2  ;;  %v6534_v8 = vadd.f32 %v2446_v6, %v2426_v48  ;;  %v7358_v6 = vld [vmem:[#allocation24_spill] sm:$0xff] }
 0x25c   : > { %1916 = vst.msk [vmem:[#allocation2 + $0xfa] sm:$0xff] %vm1374_vm4, %v1892_v52  ;;  %v2490_v36 = vadd.f32 %v7353_v5, %v2454_v40  ;;  %v2492_v62 = vadd.f32 %v7354_v7, %v2456_v19  ;;  %v6538_v9 = vadd.f32 %v2480_v34, %v2460_v51  ;;  %v2512_v4 = vmul.f32 %v7259_v24, %v2348_v23 }
 0x25d   : > { %v2514_v20 = vmul.f32 %v7259_v24, %v2350_v44  ;;  %v6544_v58 = vadd.f32 %v7355_v41, %v6329_v28  ;;  %v1946_v61 = vld [vmem:[#allocation2 + $0x108] sm:$0xff]  ;;  %v2494_v25 = vadd.f32 %v2478_v1, %v2458_v55  ;;  %v6547_v49 = vadd.f32 %v7356_v15, %v2488_v12 }
 0x25e   : > { %v2022_v63 = vld [vmem:[#allocation2 + $0x109] sm:$0xff]  ;;  %v6550_v43 = vadd.f32 %v7357_v13, %v2490_v36  ;;  %v6553_v40 = vmul.f32 %v7358_v6, %v2820_v0  ;;  %v1974_v23 = vmul.f32 %v5487_v10, %v1946_v61  ;;  %v2020_v60 = vld [vmem:[#allocation2 + $0xf1] sm:$0xff]  ;;  %v6564_v0 = vadd.f32 %v2512_v4, %v2492_v62 }
 0x25f   : > { %v2098_v47 = vld [vmem:[#allocation2 + $0x10a] sm:$0xff]  ;;  %v2050_v44 = vmul.f32 %v5490_v37, %v2022_v63  ;;  %v2096_v48 = vld [vmem:[#allocation2 + $0xf2] sm:$0xff]  ;;  %v2048_v19 = vmul.f32 %v5490_v37, %v2020_v60  ;;  %v6566_v18 = vadd.f32 %v2514_v20, %v2494_v25  ;;  %vm3120_vm11 = vcmask 1046534  }
 0x260   : > { %v2126_v28 = vmul.f32 %v5499_v22, %v2098_v47  ;;  %v2766_v54 = vmul.f32 %v5682_v35, %v2098_v47  ;;  %v1944_v2 = vld [vmem:[#allocation2 + $0xf0] sm:$0xff]  ;;  %v2124_v45 = vmul.f32 %v5499_v22, %v2096_v48  ;;  %v2713_v51 = vmul.f32 %v5671_v53, %v2096_v48 }
 0x261   : > { %v1972_v29 = vmul.f32 %v5487_v10, %v1944_v2  ;;  %v2074_v52 = vadd.f32 %v2050_v44, %v1974_v23  ;;  %v2764_v1 = vmul.f32 %v5682_v35, %v2096_v48  ;;  %v1947_v34 = vld [vmem:[#allocation2 + $0x110] sm:$0xff]  ;;  %vm3385_vm12 = vcmask 785408  }
 0x262   : > { %v2023_v21 = vld [vmem:[#allocation2 + $0x111] sm:$0xff]  ;;  %v2729_v5 = vadd.f32 %v2713_v51, %v6435_v38  ;;  %v1975_v36 = vmul.f32 %v5487_v10, %v1947_v34 }
 0x263   : > { %v2099_v12 = vld [vmem:[#allocation2 + $0x112] sm:$0xff]  ;;  %v2072_v55 = vadd.f32 %v2048_v19, %v1972_v29  ;;  %v2051_v7 = vmul.f32 %v5490_v37, %v2023_v21  ;;  %v2150_v47 = vadd.f32 %v2126_v28, %v2074_v52  ;;  %v2780_v15 = vadd.f32 %v2764_v1, %v6461_v27  ;;  %v2097_v60 = vld [vmem:[#allocation2 + $0xfa] sm:$0xff] }
 0x264   : > { %v2174_v41 = vld [vmem:[#allocation2 + $0x10b] sm:$0xff]  ;;  %v2175_v61 = vld [vmem:[#allocation2 + $0x113] sm:$0xff]  ;;  %v2127_v13 = vmul.f32 %v5499_v22, %v2099_v12  ;;  %v2782_v23 = vadd.f32 %v2766_v54, %v2729_v5  ;;  %v2173_v51 = vld [vmem:[#allocation2 + $0xfb] sm:$0xff]  ;;  %v2767_v54 = vmul.f32 %v5682_v35, %v2099_v12 }
 0x265   : > { %v2250_v63 = vld [vmem:[#allocation2 + $0x10c] sm:$0xff]  ;;  %v2202_v62 = vmul.f32 %v7310_v50, %v2174_v41  ;;  %v2251_v4 = vld [vmem:[#allocation2 + $0x114] sm:$0xff]  ;;  %v2148_v25 = vadd.f32 %v2124_v45, %v2072_v55  ;;  %v2075_v44 = vadd.f32 %v2051_v7, %v1975_v36  ;;  %v2203_v38 = vmul.f32 %v7310_v50, %v2175_v61  ;;  %v2249_v1 = vld [vmem:[#allocation2 + $0xfc] sm:$0xff] }
 0x266   : > { %v1945_v20 = vld [vmem:[#allocation2 + $0xf8] sm:$0xff]  ;;  %v2800_v29 = vadd.f32 %v7309_v17, %v2780_v15  ;;  %v2278_v28 = vmul.f32 %v5520_v32, %v2250_v63  ;;  %v2279_v27 = vmul.f32 %v5520_v32, %v2251_v4  ;;  %v2802_v34 = vadd.f32 %v7309_v17, %v2782_v23  ;;  %v2824_v61 = vld [vmem:[#allocation3 + $0x30] sm:$0xff]  ;;  %v2828_v23 = vld [vmem:[#allocation3 + $0x60] sm:$0xff] }
 0x267   : > { %v2021_v2 = vld [vmem:[#allocation2 + $0xf9] sm:$0xff]  ;;  %v2226_v19 = vadd.f32 %v2202_v62, %v2150_v47  ;;  %v2151_v45 = vadd.f32 %v2127_v13, %v2075_v44  ;;  %v1973_v21 = vmul.f32 %v5487_v10, %v1945_v20  ;;  %v2125_v36 = vmul.f32 %v5499_v22, %v2097_v60  ;;  %v2826_v22 = vld [vmem:[#allocation3 + $0x48] sm:$0xff] }
 0x268   : > { %v2172_v48 = vld [vmem:[#allocation2 + $0xf3] sm:$0xff]  ;;  %2816 = vst.msk [vmem:[#allocation3 + $0x92] sm:$0xff] %vm1374_vm4, %v2800_v29  ;;  %v2049_v5 = vmul.f32 %v5490_v37, %v2021_v2  ;;  %2818 = vst.msk [vmem:[#allocation3 + $0xaa] sm:$0xff] %vm1374_vm4, %v2802_v34  ;;  %v2201_v47 = vmul.f32 %v7310_v50, %v2173_v51  ;;  %v2277_v10 = vmul.f32 %v5520_v32, %v2249_v1  ;;  %v2878_v34 = vld [vmem:[#allocation3 + $0x49] sm:$0xff] }
 0x269   : > { %v2248_v52 = vld [vmem:[#allocation2 + $0xf4] sm:$0xff]  ;;  %v2302_v55 = vadd.f32 %v2278_v28, %v2226_v19  ;;  %v2200_v7 = vmul.f32 %v7310_v50, %v2172_v48  ;;  %v2227_v63 = vadd.f32 %v2203_v38, %v2151_v45  ;;  %v2714_v37 = vmul.f32 %v5671_v53, %v2097_v60 }
 0x26a   : > { %v2822_v41 = vld [vmem:[#allocation3 + $0x18] sm:$0xff]  ;;  %v2276_v12 = vmul.f32 %v5520_v32, %v2248_v52  ;;  %v2073_v13 = vadd.f32 %v2049_v5, %v1973_v21  ;;  %v2765_v20 = vmul.f32 %v5682_v35, %v2097_v60  ;;  %v2844_v38 = vmul.f32 %v7358_v6, %v2824_v61  ;;  %v2880_v5 = vld [vmem:[#allocation3 + $0x61] sm:$0xff] }
 0x26b   : > { %v2330_v15 = vadd.f32 %v5535_v56, %v2302_v55  ;;  %v2224_v62 = vadd.f32 %v2200_v7, %v2148_v25  ;;  %v2303_v4 = vadd.f32 %v2279_v27, %v2227_v63  ;;  %v2842_v44 = vmul.f32 %v7358_v6, %v2822_v41  ;;  %v2830_v29 = vld [vmem:[#allocation3 + $0x78] sm:$0xff]  ;;  %v2872_v25 = vld [vmem:[#allocation3 + $0x1] sm:$0xff] }
 0x26c   : > { %v2149_v50 = vadd.f32 %v2125_v36, %v2073_v13  ;;  %v2730_v48 = vadd.f32 %v2714_v37, %v6483_v42  ;;  %v2874_v19 = vld [vmem:[#allocation3 + $0x19] sm:$0xff]  ;;  %v2781_v35 = vadd.f32 %v2765_v20, %v6486_v39  ;;  %v2846_v28 = vmul.f32 %v7358_v6, %v2826_v22  ;;  %v2876_v1 = vld [vmem:[#allocation3 + $0x31] sm:$0xff] }
 0x26d   : > { %v2300_v2 = vadd.f32 %v2276_v12, %v2224_v62  ;;  %v2354_v32 = vsel %vm6455_vm1, %v2330_v15, 0.0  ;;  %v6598_v53 = vadd.f32 %v5535_v56, %v2303_v4  ;;  %v2848_v42 = vmul.f32 %v7358_v6, %v2828_v23  ;;  %v2882_v36 = vld [vmem:[#allocation3 + $0x79] sm:$0xff] }
 0x26e   : > { %v2518_v60 = vmul.f32 %v7259_v24, %v2354_v32  ;;  %v2225_v27 = vadd.f32 %v2201_v47, %v2149_v50  ;;  %v2783_v52 = vadd.f32 %v2767_v54, %v2730_v48  ;;  %v2801_v45 = vadd.f32 %v7309_v17, %v2781_v35  ;;  %v7359_v39 = vld [vmem:[#allocation19_spill] sm:$0xff] }
 0x26f   : > { %v2328_v51 = vadd.f32 %v5535_v56, %v2300_v2  ;;  %v2832_v21 = vld [vmem:[#allocation3 + $0x90] sm:$0xff]  ;;  %v2850_v55 = vmul.f32 %v7358_v6, %v2830_v29  ;;  %v2892_v7 = vmul.f32 %v7359_v39, %v2872_v25  ;;  %v2894_v41 = vmul.f32 %v7359_v39, %v2874_v19  ;;  %v2834_v47 = vld [vmem:[#allocation3 + $0xa8] sm:$0xff]  ;;  %v2926_v25 = vld [vmem:[#allocation3 + $0x1a] sm:$0xff] }
 0x270   : > { %v2301_v61 = vadd.f32 %v2277_v10, %v2225_v27  ;;  %v2803_v54 = vadd.f32 %v7309_v17, %v2783_v52  ;;  %v2852_v12 = vmul.f32 %v7358_v6, %v2832_v21  ;;  %v2884_v15 = vld [vmem:[#allocation3 + $0x91] sm:$0xff]  ;;  %v2886_v13 = vld [vmem:[#allocation3 + $0xa9] sm:$0xff]  ;;  %2817 = vst.msk [vmem:[#allocation3 + $0x9a] sm:$0xff] %vm1374_vm4, %v2801_v45  ;;  %v2854_v22 = vmul.f32 %v7358_v6, %v2834_v47  ;;  %v2934_v21 = vld [vmem:[#allocation3 + $0x7a] sm:$0xff] }
 0x271   : > { %v2352_v63 = vsel %vm6470_vm2, %v2328_v51, 0.0  ;;  %v2896_v10 = vmul.f32 %v7359_v39, %v2876_v1  ;;  %v2898_v17 = vmul.f32 %v7359_v39, %v2878_v34  ;;  %v2900_v20 = vmul.f32 %v7359_v39, %v2880_v5  ;;  %v2924_v29 = vld [vmem:[#allocation3 + $0x2] sm:$0xff]  ;;  %v2928_v51 = vld [vmem:[#allocation3 + $0x32] sm:$0xff]  ;;  %v2930_v52 = vld [vmem:[#allocation3 + $0x4a] sm:$0xff] }
 0x272   : > { %v2482_v62 = vmul.f32 %v5694_v57, %v2352_v63  ;;  %v2516_v37 = vmul.f32 %v7259_v24, %v2352_v63  ;;  %v2329_v4 = vadd.f32 %v5535_v56, %v2301_v61  ;;  %2819 = vst.msk [vmem:[#allocation3 + $0xb2] sm:$0xff] %vm1374_vm4, %v2803_v54  ;;  %v2902_v23 = vmul.f32 %v7359_v39, %v2882_v36  ;;  %v2936_v5 = vld [vmem:[#allocation3 + $0x92] sm:$0xff]  ;;  %v2938_v16 = vld [vmem:[#allocation3 + $0xaa] sm:$0xff]  ;;  %v2978_v47 = vld [vmem:[#allocation3 + $0x1b] sm:$0xff] }
 0x273   : > { %v2904_v48 = vmul.f32 %v7359_v39, %v2884_v15  ;;  %v2906_v32 = vmul.f32 %v7359_v39, %v2886_v13  ;;  %v2908_v19 = vadd.f32 %v2892_v7, %v6553_v40  ;;  %v2910_v35 = vadd.f32 %v2894_v41, %v2842_v44  ;;  %v7360_v40 = vld [vmem:[#allocation55_spill] sm:$0xff]  ;;  %v2980_v15 = vld [vmem:[#allocation3 + $0x33] sm:$0xff]  ;;  %v2982_v13 = vld [vmem:[#allocation3 + $0x4b] sm:$0xff] }
 0x274   : > { %v2498_v50 = vadd.f32 %v2482_v62, %v6534_v8  ;;  %v6625_v2 = vadd.f32 %v2516_v37, %v6538_v9  ;;  %v6631_v56 = vsel %vm6470_vm2, %v2329_v4, 0.0  ;;  %v2912_v27 = vadd.f32 %v2896_v10, %v2844_v38  ;;  %v2932_v8 = vld [vmem:[#allocation3 + $0x62] sm:$0xff] }
 0x275   : > { %v6636_v9 = vmul.f32 %v7259_v24, %v6631_v56  ;;  %v2914_v34 = vadd.f32 %v2898_v17, %v2846_v28  ;;  %v2916_v45 = vadd.f32 %v2900_v20, %v2848_v42  ;;  %v2918_v36 = vadd.f32 %v2902_v23, %v2850_v55  ;;  %v2984_v62 = vld [vmem:[#allocation3 + $0x63] sm:$0xff]  ;;  %v2986_v17 = vld [vmem:[#allocation3 + $0x7b] sm:$0xff] }
 0x276   : > { %v6638_v1 = vadd.f32 %v2518_v60, %v2498_v50  ;;  %v2920_v61 = vadd.f32 %v2904_v48, %v2852_v12  ;;  %v2922_v63 = vadd.f32 %v2906_v32, %v2854_v22  ;;  %v2944_v44 = vmul.f32 %v7360_v40, %v2924_v29  ;;  %v2976_v60 = vld [vmem:[#allocation3 + $0x3] sm:$0xff] }
 0x277   : > { %v2946_v38 = vmul.f32 %v7360_v40, %v2926_v25  ;;  %v2948_v7 = vmul.f32 %v7360_v40, %v2928_v51  ;;  %v2950_v41 = vmul.f32 %v7360_v40, %v2930_v52  ;;  %v2952_v54 = vmul.f32 %v7360_v40, %v2932_v8  ;;  %v2988_v20 = vld [vmem:[#allocation3 + $0x93] sm:$0xff]  ;;  %v7361_v29 = vld [vmem:[#allocation56_spill] sm:$0xff] }
 0x278   : > { %v2954_v28 = vmul.f32 %v7360_v40, %v2934_v21  ;;  %v2956_v42 = vmul.f32 %v7360_v40, %v2936_v5  ;;  %v2958_v55 = vmul.f32 %v7360_v40, %v2938_v16  ;;  %v2960_v12 = vadd.f32 %v2944_v44, %v2908_v19  ;;  %v3032_v16 = vld [vmem:[#allocation3 + $0x34] sm:$0xff] }
 0x279   : > { %v2962_v37 = vadd.f32 %v2946_v38, %v2910_v35  ;;  %v2964_v22 = vadd.f32 %v2948_v7, %v2912_v27  ;;  %v2966_v10 = vadd.f32 %v2950_v41, %v2914_v34  ;;  %v2968_v4 = vadd.f32 %v2952_v54, %v2916_v45  ;;  %v2990_v23 = vld [vmem:[#allocation3 + $0xab] sm:$0xff]  ;;  %v3030_v27 = vld [vmem:[#allocation3 + $0x1c] sm:$0xff]  ;;  %v3040_v54 = vld [vmem:[#allocation3 + $0x94] sm:$0xff] }
 0x27a   : > { %v2970_v50 = vadd.f32 %v2954_v28, %v2918_v36  ;;  %v2972_v48 = vadd.f32 %v2956_v42, %v2920_v61  ;;  %v2974_v32 = vadd.f32 %v2958_v55, %v2922_v63  ;;  %v2996_v25 = vmul.f32 %v7361_v29, %v2976_v60  ;;  %v3028_v35 = vld [vmem:[#allocation3 + $0x4] sm:$0xff]  ;;  %v3034_v36 = vld [vmem:[#allocation3 + $0x4c] sm:$0xff]  ;;  %v3038_v41 = vld [vmem:[#allocation3 + $0x7c] sm:$0xff] }
 0x27b   : > { %v2998_v51 = vmul.f32 %v7361_v29, %v2978_v47  ;;  %v3000_v52 = vmul.f32 %v7361_v29, %v2980_v15  ;;  %v3002_v19 = vmul.f32 %v7361_v29, %v2982_v13  ;;  %v3004_v8 = vmul.f32 %v7361_v29, %v2984_v62  ;;  %v3036_v61 = vld [vmem:[#allocation3 + $0x64] sm:$0xff]  ;;  %v3042_v60 = vld [vmem:[#allocation3 + $0xac] sm:$0xff] }
 0x27c   : > { %v3006_v34 = vmul.f32 %v7361_v29, %v2986_v17  ;;  %v3008_v45 = vmul.f32 %v7361_v29, %v2988_v20  ;;  %v3010_v21 = vmul.f32 %v7361_v29, %v2990_v23  ;;  %v3012_v5 = vadd.f32 %v2996_v25, %v2960_v12  ;;  %v7362_v55 = vld [vmem:[#allocation57_spill] sm:$0xff] }
 0x27d   : > { %v3014_v63 = vadd.f32 %v2998_v51, %v2962_v37  ;;  %v3016_v44 = vadd.f32 %v3000_v52, %v2964_v22  ;;  %v3018_v38 = vadd.f32 %v3002_v19, %v2966_v10  ;;  %v3020_v7 = vadd.f32 %v3004_v8, %v2968_v4  ;;  %v7363_v52 = vld [vmem:[#allocation63_spill] sm:$0xff] }
 0x27e   : > { %v3022_v47 = vadd.f32 %v3006_v34, %v2970_v50  ;;  %v3024_v28 = vadd.f32 %v3008_v45, %v2972_v48  ;;  %v3026_v42 = vadd.f32 %v3010_v21, %v2974_v32  ;;  %v3048_v15 = vmul.f32 %v7362_v55, %v3028_v35 }
 0x27f   : > { %v3050_v12 = vmul.f32 %v7362_v55, %v3030_v27  ;;  %v3052_v13 = vmul.f32 %v7362_v55, %v3032_v16  ;;  %v3054_v62 = vmul.f32 %v7362_v55, %v3034_v36  ;;  %v3056_v37 = vmul.f32 %v7362_v55, %v3036_v61 }
 0x280   : > { %v3058_v22 = vmul.f32 %v7362_v55, %v3038_v41  ;;  %v3060_v10 = vmul.f32 %v7362_v55, %v3040_v54  ;;  %v3062_v4 = vmul.f32 %v7362_v55, %v3042_v60  ;;  %v3064_v17 = vadd.f32 %v3048_v15, %v3012_v5 }
 0x281   : > { %v3066_v20 = vadd.f32 %v3050_v12, %v3014_v63  ;;  %v3068_v23 = vadd.f32 %v3052_v13, %v3016_v44  ;;  %v3070_v50 = vadd.f32 %v3054_v62, %v3018_v38  ;;  %v3072_v48 = vadd.f32 %v3056_v37, %v3020_v7 }
 0x282   : > { %v3074_v32 = vadd.f32 %v3058_v22, %v3022_v47  ;;  %v3076_v25 = vadd.f32 %v3060_v10, %v3024_v28  ;;  %v3078_v51 = vadd.f32 %v3062_v4, %v3026_v42  ;;  %v6665_v19 = vadd.f32 %v3064_v17, %v7363_v52 }
 0x283   : > { %v6668_v8 = vadd.f32 %v3066_v20, %v6544_v58  ;;  %v6671_v35 = vadd.f32 %v3068_v23, %v6547_v49  ;;  %v6674_v27 = vadd.f32 %v3070_v50, %v6550_v43  ;;  %v6677_v34 = vadd.f32 %v3072_v48, %v6564_v0 }
 0x284   : > { %v6680_v45 = vadd.f32 %v3074_v32, %v6566_v18  ;;  %v6683_v21 = vadd.f32 %v3076_v25, %v6625_v2  ;;  %v6686_v5 = vadd.f32 %v3078_v51, %v6638_v1  ;;  %v3192_v58 = vrot.slane %v6665_v19, 5 }
 0x285   : > { %v3193_v49 = vrot.slane %v6668_v8, 4  ;;  %v3195_v43 = vrot.slane %v6671_v35, 3  ;;  %v3197_v16 = vrot.slane %v6674_v27, 2  ;;  %v3199_v0 = vrot.slane %v6677_v34, 1 }
 0x286   : > { %v3202_v36 = vrot.slane %v6683_v21, 7  ;;  %v3204_v18 = vrot.slane %v6686_v5, 6  ;;  %v3160_v2 = vrot.slane %v6665_v19, 3  ;;  %v3161_v61 = vrot.slane %v6668_v8, 2 }
 0x287   : > { %v3194_v1 = vsel %vm3105_vm5, %v3193_v49, %v3192_v58  ;;  %v3163_v63 = vrot.slane %v6671_v35, 1  ;;  %v3166_v44 = vrot.slane %v6677_v34, 7  ;;  %v3168_v38 = vrot.slane %v6680_v45, 6 }
 0x288   : > { %v3196_v7 = vsel %vm3108_vm3, %v3195_v43, %v3194_v1  ;;  %v3162_v41 = vsel %vm3105_vm5, %v3161_v61, %v3160_v2  ;;  %v3170_v54 = vrot.slane %v6683_v21, 5  ;;  %v3172_v60 = vrot.slane %v6686_v5, 4 }
 0x289   : > { %v3198_v47 = vsel %vm3111_vm6, %v3197_v16, %v3196_v7  ;;  %v3164_v28 = vsel %vm3108_vm3, %v3163_v63, %v3162_v41  ;;  %v3209_v42 = vrot.slane %v6665_v19, 6  ;;  %v3210_v15 = vrot.slane %v6668_v8, 5 }
 0x28a   : > { %v3200_v12 = vsel %vm3114_vm7, %v3199_v0, %v3198_v47  ;;  %v3165_v13 = vsel %vm3111_vm6, %v6674_v27, %v3164_v28  ;;  %v3212_v62 = vrot.slane %v6671_v35, 4  ;;  %v3214_v37 = vrot.slane %v6674_v27, 3 }
 0x28b   : > { %v3201_v22 = vsel %vm3117_vm9, %v6680_v45, %v3200_v12  ;;  %v3167_v10 = vsel %vm3114_vm7, %v3166_v44, %v3165_v13  ;;  %v3211_v4 = vsel %vm3105_vm5, %v3210_v15, %v3209_v42  ;;  %v3216_v17 = vrot.slane %v6677_v34, 2 }
 0x28c   : > { %v3203_v20 = vsel %vm3120_vm11, %v3202_v36, %v3201_v22  ;;  %v3169_v23 = vsel %vm3117_vm9, %v3168_v38, %v3167_v10  ;;  %v3213_v50 = vsel %vm3108_vm3, %v3212_v62, %v3211_v4  ;;  %v3218_v48 = vrot.slane %v6680_v45, 1 }
 0x28d   : > { %v3205_v32 = vsel %vm3123_vm10, %v3204_v18, %v3203_v20  ;;  %v3171_v25 = vsel %vm3120_vm11, %v3170_v54, %v3169_v23  ;;  %v3215_v51 = vsel %vm3111_vm6, %v3214_v37, %v3213_v50  ;;  %v3221_v52 = vrot.slane %v6686_v5, 7 }
 0x28e   : > { %3206 = vrot.lane.b32.xlu1 %v3205_v32, %s4498_s14  ;;  %v3173_v58 = vsel %vm3123_vm10, %v3172_v60, %v3171_v25  ;;  %v3217_v49 = vsel %vm3114_vm7, %v3216_v17, %v3215_v51  ;;  %v3126_v43 = vrot.slane %v6665_v19, 1  ;;  %v3128_v16 = vrot.slane %v6671_v35, 7 }
 0x28f   : > { %3174 = vrot.lane.b32.xlu0 %v3173_v58, %s4504_s29  ;;  %v3219_v0 = vsel %vm3117_vm9, %v3218_v48, %v3217_v49  ;;  %v3130_v36 = vrot.slane %v6674_v27, 6  ;;  %v3132_v18 = vrot.slane %v6677_v34, 5  ;;  %v3134_v2 = vrot.slane %v6680_v45, 4 }
 0x290   : > { %v3220_v61 = vsel %vm3120_vm11, %v6683_v21, %v3219_v0  ;;  %v3127_v1 = vsel %vm3105_vm5, %v6668_v8, %v3126_v43  ;;  %v3136_v63 = vrot.slane %v6683_v21, 3  ;;  %v3138_v44 = vrot.slane %v6686_v5, 2 }
 0x291   : > { %v3222_v38 = vsel %vm3123_vm10, %v3221_v52, %v3220_v61  ;;  %v3129_v7 = vsel %vm3108_vm3, %v3128_v16, %v3127_v1  ;;  %v3226_v41 = vrot.slane %v6665_v19, 7  ;;  %v3227_v54 = vrot.slane %v6668_v8, 6 }
 0x292   : > { %3223 = vrot.lane.b32.xlu1 %v3222_v38, %s4502_s18  ;;  %v3131_v60 = vsel %vm3111_vm6, %v3130_v36, %v3129_v7  ;;  %v3229_v47 = vrot.slane %v6671_v35, 5  ;;  %v3231_v28 = vrot.slane %v6674_v27, 4  ;;  %v3233_v42 = vrot.slane %v6677_v34, 3  ;;  %v7366_v38 = vld [vmem:[#allocation35_spill] sm:$0xff]  ;;  %v7367_v7 = vld [vmem:[#allocation18_spill] sm:$0xff] }
 0x293   : > { %v3133_v15 = vsel %vm3114_vm7, %v3132_v18, %v3131_v60  ;;  %v3228_v12 = vsel %vm3105_vm5, %v3227_v54, %v3226_v41  ;;  %v3235_v13 = vrot.slane %v6680_v45, 2  ;;  %v3237_v62 = vrot.slane %v6683_v21, 1  ;;  %v7364_v18 = vld [vmem:[#allocation34_spill] sm:$0xff]  ;;  %v7369_v60 = vld [vmem:[#allocation31_spill] sm:$0xff] }
 0x294   : > { %v3135_v37 = vsel %vm3117_vm9, %v3134_v2, %v3133_v15  ;;  %v3230_v22 = vsel %vm3108_vm3, %v3229_v47, %v3228_v12  ;;  %v3143_v10 = vrot.slane %v6665_v19, 2  ;;  %v3144_v4 = vrot.slane %v6668_v8, 1  ;;  %v7370_v47 = vld [vmem:[#allocation52_spill] sm:$0xff] }
 0x295   : > { %v3137_v17 = vsel %vm3120_vm11, %v3136_v63, %v3135_v37  ;;  %v3232_v20 = vsel %vm3111_vm6, %v3231_v28, %v3230_v22  ;;  %v3147_v23 = vrot.slane %v6674_v27, 7  ;;  %v3149_v50 = vrot.slane %v6677_v34, 6  ;;  %v7365_v63 = vld [vmem:[#allocation58_spill] sm:$0xff]  ;;  %v7371_v28 = vld [vmem:[#allocation45_spill] sm:$0xff]  ;;  %v7372_v22 = vld [vmem:[#allocation60_spill] sm:$0xff] }
 0x296   : > { %v3139_v48 = vsel %vm3123_vm10, %v3138_v44, %v3137_v17  ;;  %v3234_v32 = vsel %vm3114_vm7, %v3233_v42, %v3232_v20  ;;  %v3145_v25 = vsel %vm3105_vm5, %v3144_v4, %v3143_v10  ;;  %v3151_v51 = vrot.slane %v6680_v45, 5  ;;  %v7373_v4 = vld [vmem:[#allocation62_spill] sm:$0xff]  ;;  %v7374_v17 = vld [vmem:[#allocation15_spill] sm:$0xff] }
 0x297   : > { %3140 = vrot.lane.b32.xlu0 %v3139_v48, %s4498_s14  ;;  %v3236_v52 = vsel %vm3117_vm9, %v3235_v13, %v3234_v32  ;;  %v3146_v58 = vsel %vm3108_vm3, %v6671_v35, %v3145_v25  ;;  %v3153_v49 = vrot.slane %v6683_v21, 4  ;;  %v3155_v43 = vrot.slane %v6686_v5, 3  ;;  %v2825_v48 = vld [vmem:[#allocation3 + $0x38] sm:$0xff]  ;;  %v2827_v32 = vld [vmem:[#allocation3 + $0x50] sm:$0xff] }
 0x298   : > { %v3238_v16 = vsel %vm3120_vm11, %v3237_v62, %v3236_v52  ;;  %v3148_v0 = vsel %vm3111_vm6, %v3147_v23, %v3146_v58  ;;  %v2355_v36 = vsel %vm6455_vm1, %v6598_v53, 0.0  ;;  %v2371_v2 = vmul.f32 %v5559_v30, %v7364_v18  ;;  %v2821_v62 = vld [vmem:[#allocation3 + $0x8] sm:$0xff]  ;;  %v7375_v23 = vld [vmem:[#allocation53_spill] sm:$0xff] }
 0x299   : > { %v3239_v61 = vsel %vm3123_vm10, %v6686_v5, %v3238_v16  ;;  %v3150_v1 = vsel %vm3114_vm7, %v3149_v50, %v3148_v0  ;;  %v2427_v44 = vadd.f32 %v6490_v26, %v7365_v63  ;;  %v2455_v41 = vadd.f32 %v7367_v7, %v7366_v38  ;;  %v2823_v50 = vld [vmem:[#allocation3 + $0x20] sm:$0xff]  ;;  %v2873_v52 = vld [vmem:[#allocation3 + $0x9] sm:$0xff]  ;;  %v7377_v16 = vld [vmem:[#allocation54_spill] sm:$0xff] }
 0x29a   : > { %3240 = vrot.lane.b32.xlu1 %v3239_v61, %s4504_s29  ;;  %v3152_v54 = vsel %vm3117_vm9, %v3151_v51, %v3150_v1  ;;  %v2423_v53 = vadd.f32 %v7368_v3, %v2371_v2  ;;  %v2457_v30 = vadd.f32 %v7370_v47, %v7369_v60  ;;  %v2461_v42 = vadd.f32 %v6494_v33, %v7371_v28  ;;  %v2829_v51 = vld [vmem:[#allocation3 + $0x68] sm:$0xff]  ;;  %v2831_v61 = vld [vmem:[#allocation3 + $0x80] sm:$0xff]  ;;  %v2833_v1 = vld [vmem:[#allocation3 + $0x98] sm:$0xff] }
 0x29b   : > { %v3154_v15 = vsel %vm3120_vm11, %v3153_v49, %v3152_v54  ;;  %v2463_v12 = vadd.f32 %v6439_v31, %v2427_v44  ;;  %v2479_v26 = vmul.f32 %v5694_v57, %v6478_v14  ;;  %v2483_v13 = vmul.f32 %v5694_v57, %v6631_v56  ;;  %v7376_v31 = vld [vmem:[#allocation42_spill] sm:$0xff]  ;;  %v2875_v58 = vld [vmem:[#allocation3 + $0x21] sm:$0xff]  ;;  %v2835_v63 = vld [vmem:[#allocation3 + $0xb0] sm:$0xff] }
 0x29c   : > { %v3156_v37 = vsel %vm3123_vm10, %v3155_v43, %v3154_v15  ;;  %v2459_v10 = vadd.f32 %v7372_v22, %v2423_v53  ;;  %v2489_v20 = vadd.f32 %v7374_v17, %v7373_v4  ;;  %v2491_v33 = vadd.f32 %v7375_v23, %v2455_v41  ;;  %v7378_v18 = vld [vmem:[#allocation16_spill] sm:$0xff]  ;;  %v2885_v60 = vld [vmem:[#allocation3 + $0x99] sm:$0xff]  ;;  %v2887_v47 = vld [vmem:[#allocation3 + $0xb1] sm:$0xff] }
 0x29d   : > { %3157 = vrot.lane.b32.xlu0 %v3156_v37, %s4502_s18  ;;  %v2493_v14 = vadd.f32 %v7376_v31, %v2457_v30  ;;  %v2497_v25 = vadd.f32 %v6443_v59, %v2461_v42  ;;  %v2499_v57 = vadd.f32 %v2483_v13, %v2463_v12  ;;  %v2515_v56 = vmul.f32 %v7259_v24, %v6428_v46  ;;  %v2881_v7 = vld [vmem:[#allocation3 + $0x69] sm:$0xff] }
 0x29e   : > { %v2495_v49 = vadd.f32 %v2479_v26, %v2459_v10  ;;  %v2519_v43 = vmul.f32 %v7259_v24, %v2355_v36  ;;  %v6813_v0 = vadd.f32 %v7377_v16, %v2489_v20  ;;  %v6816_v2 = vadd.f32 %v7378_v18, %v2491_v33  ;;  %v2877_v24 = vld [vmem:[#allocation3 + $0x39] sm:$0xff]  ;;  %v2879_v36 = vld [vmem:[#allocation3 + $0x51] sm:$0xff]  ;;  %v2927_v37 = vld [vmem:[#allocation3 + $0x22] sm:$0xff] }
 0x29f   : > { %v6819_v59 = vadd.f32 %v6498_v11, %v2493_v14  ;;  %v6822_v46 = vadd.f32 %v6636_v9, %v2497_v25  ;;  %v2841_v44 = vmul.f32 %v7358_v6, %v2821_v62  ;;  %v2843_v38 = vmul.f32 %v7358_v6, %v2823_v50  ;;  %v2883_v11 = vld [vmem:[#allocation3 + $0x81] sm:$0xff]  ;;  %v2925_v62 = vld [vmem:[#allocation3 + $0xa] sm:$0xff]  ;;  %v2939_v25 = vld [vmem:[#allocation3 + $0xb2] sm:$0xff] }
 0x2a0   : > { %v6826_v41 = vadd.f32 %v2515_v56, %v2495_v49  ;;  %v6828_v54 = vadd.f32 %v2519_v43, %v2499_v57  ;;  %v2845_v3 = vmul.f32 %v7358_v6, %v2825_v48  ;;  %v2847_v53 = vmul.f32 %v7358_v6, %v2827_v32  ;;  %v2929_v20 = vld [vmem:[#allocation3 + $0x3a] sm:$0xff]  ;;  %v2933_v23 = vld [vmem:[#allocation3 + $0x6a] sm:$0xff]  ;;  %v2935_v31 = vld [vmem:[#allocation3 + $0x82] sm:$0xff] }
 0x2a1   : > { %v2849_v9 = vmul.f32 %v7358_v6, %v2829_v51  ;;  %v2851_v30 = vmul.f32 %v7358_v6, %v2831_v61  ;;  %v2853_v28 = vmul.f32 %v7358_v6, %v2833_v1  ;;  %v2855_v42 = vmul.f32 %v7358_v6, %v2835_v63  ;;  %v2931_v6 = vld [vmem:[#allocation3 + $0x52] sm:$0xff]  ;;  %v2937_v14 = vld [vmem:[#allocation3 + $0x9a] sm:$0xff]  ;;  %v2979_v18 = vld [vmem:[#allocation3 + $0x23] sm:$0xff] }
 0x2a2   : > { %v2893_v15 = vmul.f32 %v7359_v39, %v2873_v52  ;;  %v2895_v12 = vmul.f32 %v7359_v39, %v2875_v58  ;;  %v2897_v26 = vmul.f32 %v7359_v39, %v2877_v24  ;;  %v2899_v13 = vmul.f32 %v7359_v39, %v2879_v36  ;;  %v2977_v16 = vld [vmem:[#allocation3 + $0xb] sm:$0xff]  ;;  %v2983_v24 = vld [vmem:[#allocation3 + $0x53] sm:$0xff] }
 0x2a3   : > { %v2901_v22 = vmul.f32 %v7359_v39, %v2881_v7  ;;  %v2903_v10 = vmul.f32 %v7359_v39, %v2883_v11  ;;  %v2905_v4 = vmul.f32 %v7359_v39, %v2885_v60  ;;  %v2907_v17 = vmul.f32 %v7359_v39, %v2887_v47  ;;  %v2985_v36 = vld [vmem:[#allocation3 + $0x6b] sm:$0xff]  ;;  %v2987_v60 = vld [vmem:[#allocation3 + $0x83] sm:$0xff]  ;;  %v2989_v47 = vld [vmem:[#allocation3 + $0x9b] sm:$0xff] }
 0x2a4   : > { %v2909_v33 = vadd.f32 %v2893_v15, %v2841_v44  ;;  %v2911_v50 = vadd.f32 %v2895_v12, %v2843_v38  ;;  %v2913_v48 = vadd.f32 %v2897_v26, %v2845_v3  ;;  %v2915_v32 = vadd.f32 %v2899_v13, %v2847_v53  ;;  %v2981_v38 = vld [vmem:[#allocation3 + $0x3b] sm:$0xff] }
 0x2a5   : > { %v2917_v57 = vadd.f32 %v2901_v22, %v2849_v9  ;;  %v2919_v56 = vadd.f32 %v2903_v10, %v2851_v30  ;;  %v2921_v51 = vadd.f32 %v2905_v4, %v2853_v28  ;;  %v2923_v52 = vadd.f32 %v2907_v17, %v2855_v42  ;;  %v2991_v9 = vld [vmem:[#allocation3 + $0xb3] sm:$0xff] }
 0x2a6   : > { %v2945_v58 = vmul.f32 %v7360_v40, %v2925_v62  ;;  %v2947_v49 = vmul.f32 %v7360_v40, %v2927_v37  ;;  %v2949_v39 = vmul.f32 %v7360_v40, %v2929_v20  ;;  %v2951_v43 = vmul.f32 %v7360_v40, %v2931_v6  ;;  %v3029_v62 = vld [vmem:[#allocation3 + $0xc] sm:$0xff]  ;;  %v3031_v37 = vld [vmem:[#allocation3 + $0x24] sm:$0xff]  ;;  %v3033_v20 = vld [vmem:[#allocation3 + $0x3c] sm:$0xff] }
 0x2a7   : > { %v2953_v61 = vmul.f32 %v7360_v40, %v2933_v23  ;;  %v2955_v1 = vmul.f32 %v7360_v40, %v2935_v31  ;;  %v2957_v63 = vmul.f32 %v7360_v40, %v2937_v14  ;;  %v2959_v44 = vmul.f32 %v7360_v40, %v2939_v25  ;;  %v3035_v6 = vld [vmem:[#allocation3 + $0x54] sm:$0xff]  ;;  %v3037_v23 = vld [vmem:[#allocation3 + $0x6c] sm:$0xff]  ;;  %v3039_v31 = vld [vmem:[#allocation3 + $0x84] sm:$0xff] }
 0x2a8   : > { %v2961_v7 = vadd.f32 %v2945_v58, %v2909_v33  ;;  %v2963_v3 = vadd.f32 %v2947_v49, %v2911_v50  ;;  %v2965_v53 = vadd.f32 %v2949_v39, %v2913_v48  ;;  %v2967_v11 = vadd.f32 %v2951_v43, %v2915_v32  ;;  %v3041_v14 = vld [vmem:[#allocation3 + $0x9c] sm:$0xff]  ;;  %v3043_v25 = vld [vmem:[#allocation3 + $0xb4] sm:$0xff] }
 0x2a9   : > { %v2969_v30 = vadd.f32 %v2953_v61, %v2917_v57  ;;  %v2971_v28 = vadd.f32 %v2955_v1, %v2919_v56  ;;  %v2973_v42 = vadd.f32 %v2957_v63, %v2921_v51  ;;  %v2975_v15 = vadd.f32 %v2959_v44, %v2923_v52 }
 0x2aa   : > { %v2997_v12 = vmul.f32 %v7361_v29, %v2977_v16  ;;  %v2999_v26 = vmul.f32 %v7361_v29, %v2979_v18  ;;  %v3001_v40 = vmul.f32 %v7361_v29, %v2981_v38  ;;  %v3003_v13 = vmul.f32 %v7361_v29, %v2983_v24 }
 0x2ab   : > { %v3005_v22 = vmul.f32 %v7361_v29, %v2985_v36  ;;  %v3007_v10 = vmul.f32 %v7361_v29, %v2987_v60  ;;  %v3009_v4 = vmul.f32 %v7361_v29, %v2989_v47  ;;  %v3011_v17 = vmul.f32 %v7361_v29, %v2991_v9  ;;  %v7380_v60 = vld [vmem:[#allocation37_spill] sm:$0xff] }
 0x2ac   : > { %v3013_v33 = vadd.f32 %v2997_v12, %v2961_v7  ;;  %v3015_v50 = vadd.f32 %v2999_v26, %v2963_v3  ;;  %v3017_v48 = vadd.f32 %v3001_v40, %v2965_v53  ;;  %v3019_v32 = vadd.f32 %v3003_v13, %v2967_v11  ;;  %v7379_v53 = vld [vmem:[#allocation36_spill] sm:$0xff] }
 0x2ad   : > { %v3021_v57 = vadd.f32 %v3005_v22, %v2969_v30  ;;  %v3023_v56 = vadd.f32 %v3007_v10, %v2971_v28  ;;  %v3025_v51 = vadd.f32 %v3009_v4, %v2973_v42  ;;  %v3027_v52 = vadd.f32 %v3011_v17, %v2975_v15 }
 0x2ae   : > { %v3049_v58 = vmul.f32 %v7362_v55, %v3029_v62  ;;  %v3051_v49 = vmul.f32 %v7362_v55, %v3031_v37  ;;  %v3053_v29 = vmul.f32 %v7362_v55, %v3033_v20  ;;  %v3055_v39 = vmul.f32 %v7362_v55, %v3035_v6 }
 0x2af   : > { %v3057_v43 = vmul.f32 %v7362_v55, %v3037_v23  ;;  %v3059_v16 = vmul.f32 %v7362_v55, %v3039_v31  ;;  %v3061_v18 = vmul.f32 %v7362_v55, %v3041_v14  ;;  %v3063_v61 = vmul.f32 %v7362_v55, %v3043_v25 }
 0x2b0   : > { %v3065_v1 = vadd.f32 %v3049_v58, %v3013_v33  ;;  %v3067_v63 = vadd.f32 %v3051_v49, %v3015_v50  ;;  %v3069_v44 = vadd.f32 %v3053_v29, %v3017_v48  ;;  %v3071_v38 = vadd.f32 %v3055_v39, %v3019_v32 }
 0x2b1   : > { %v3073_v24 = vadd.f32 %v3057_v43, %v3021_v57  ;;  %v3075_v36 = vadd.f32 %v3059_v16, %v3023_v56  ;;  %v3077_v7 = vadd.f32 %v3061_v18, %v3025_v51  ;;  %v3079_v3 = vadd.f32 %v3063_v61, %v3027_v52 }
 0x2b2   : > { %v6869_v11 = vadd.f32 %v3065_v1, %v7379_v53  ;;  %v6872_v47 = vadd.f32 %v3067_v63, %v7380_v60  ;;  %v6875_v9 = vadd.f32 %v3069_v44, %v6813_v0  ;;  %v6878_v30 = vadd.f32 %v3071_v38, %v6816_v2 }
 0x2b3   : > { %v6881_v55 = vadd.f32 %v3073_v24, %v6819_v59  ;;  %v6884_v28 = vadd.f32 %v3075_v36, %v6826_v41  ;;  %v6887_v42 = vadd.f32 %v3077_v7, %v6822_v46  ;;  %v6890_v15 = vadd.f32 %v3079_v3, %v6828_v54 }
 0x2b4   : > { %v3332_v12 = vrot.slane %v6869_v11, 5  ;;  %v3333_v0 = vrot.slane %v6872_v47, 4  ;;  %v3335_v26 = vrot.slane %v6875_v9, 3  ;;  %v3337_v2 = vrot.slane %v6878_v30, 2 }
 0x2b5   : > { %v3339_v59 = vrot.slane %v6881_v55, 1  ;;  %v3342_v40 = vrot.slane %v6887_v42, 7  ;;  %v3344_v41 = vrot.slane %v6890_v15, 6  ;;  %v3266_v46 = vrot.slane %v6869_v11, 1 }
 0x2b6   : > { %v3334_v13 = vsel %vm3105_vm5, %v3333_v0, %v3332_v12  ;;  %v3268_v54 = vrot.slane %v6875_v9, 7  ;;  %v3270_v62 = vrot.slane %v6878_v30, 6  ;;  %v3272_v37 = vrot.slane %v6881_v55, 5 }
 0x2b7   : > { %v3336_v22 = vsel %vm3108_vm3, %v3335_v26, %v3334_v13  ;;  %v3267_v10 = vsel %vm3105_vm5, %v6872_v47, %v3266_v46  ;;  %v3274_v4 = vrot.slane %v6884_v28, 4  ;;  %v3276_v17 = vrot.slane %v6887_v42, 3 }
 0x2b8   : > { %v3338_v20 = vsel %vm3111_vm6, %v3337_v2, %v3336_v22  ;;  %v3269_v6 = vsel %vm3108_vm3, %v3268_v54, %v3267_v10  ;;  %v3278_v23 = vrot.slane %v6890_v15, 2  ;;  %v3349_v33 = vrot.slane %v6869_v11, 6 }
 0x2b9   : > { %v3340_v50 = vsel %vm3114_vm7, %v3339_v59, %v3338_v20  ;;  %v3271_v48 = vsel %vm3111_vm6, %v3270_v62, %v3269_v6  ;;  %v3350_v32 = vrot.slane %v6872_v47, 5  ;;  %v3352_v31 = vrot.slane %v6875_v9, 4 }
 0x2ba   : > { %v3341_v14 = vsel %vm3117_vm9, %v6884_v28, %v3340_v50  ;;  %v3273_v25 = vsel %vm3114_vm7, %v3272_v37, %v3271_v48  ;;  %v3354_v57 = vrot.slane %v6878_v30, 3  ;;  %v3356_v56 = vrot.slane %v6881_v55, 2 }
 0x2bb   : > { %v3343_v51 = vsel %vm3120_vm11, %v3342_v40, %v3341_v14  ;;  %v3275_v52 = vsel %vm3117_vm9, %v3274_v4, %v3273_v25  ;;  %v3351_v58 = vsel %vm3105_vm5, %v3350_v32, %v3349_v33  ;;  %v3358_v49 = vrot.slane %v6884_v28, 1 }
 0x2bc   : > { %v3345_v29 = vsel %vm3123_vm10, %v3344_v41, %v3343_v51  ;;  %v3277_v39 = vsel %vm3120_vm11, %v3276_v17, %v3275_v52  ;;  %v3353_v43 = vsel %vm3108_vm3, %v3352_v31, %v3351_v58  ;;  %v3361_v16 = vrot.slane %v6890_v15, 7 }
 0x2bd   : > { %3346 = vrot.lane.b32.xlu1 %v3345_v29, %s4498_s14  ;;  %v3279_v18 = vsel %vm3123_vm10, %v3278_v23, %v3277_v39  ;;  %v3355_v61 = vsel %vm3111_vm6, %v3354_v57, %v3353_v43  ;;  %v3283_v1 = vrot.slane %v6869_v11, 2  ;;  %v3284_v63 = vrot.slane %v6872_v47, 1 }
 0x2be   : > { %3280 = vrot.lane.b32.xlu0 %v3279_v18, %s4498_s14  ;;  %v3357_v44 = vsel %vm3114_vm7, %v3356_v56, %v3355_v61  ;;  %v3287_v38 = vrot.slane %v6878_v30, 7  ;;  %v3289_v24 = vrot.slane %v6881_v55, 6  ;;  %v3291_v36 = vrot.slane %v6884_v28, 5  ;;  %s3487_s14 = scalar_lea.sflag [#allocation5], %s256_s19 }
 0x2bf   : > { %v3359_v7 = vsel %vm3117_vm9, %v3358_v49, %v3357_v44  ;;  %v3285_v3 = vsel %vm3105_vm5, %v3284_v63, %v3283_v1  ;;  %v3293_v53 = vrot.slane %v6887_v42, 4  ;;  %v3295_v60 = vrot.slane %v6890_v15, 3 }
 0x2c0   : > { %v3360_v12 = vsel %vm3120_vm11, %v6887_v42, %v3359_v7  ;;  %v3286_v0 = vsel %vm3108_vm3, %v6875_v9, %v3285_v3  ;;  %v3366_v26 = vrot.slane %v6869_v11, 7  ;;  %v3367_v2 = vrot.slane %v6872_v47, 6 }
 0x2c1   : > { %v3362_v59 = vsel %vm3123_vm10, %v3361_v16, %v3360_v12  ;;  %v3288_v40 = vsel %vm3111_vm6, %v3287_v38, %v3286_v0  ;;  %v3369_v41 = vrot.slane %v6875_v9, 5  ;;  %v3371_v46 = vrot.slane %v6878_v30, 4 }
 0x2c2   : > { %3363 = vrot.lane.b32.xlu1 %v3362_v59, %s4502_s18  ;;  %v3290_v13 = vsel %vm3114_vm7, %v3289_v24, %v3288_v40  ;;  %v3368_v54 = vsel %vm3105_vm5, %v3367_v2, %v3366_v26  ;;  %v3373_v62 = vrot.slane %v6881_v55, 3  ;;  %v3375_v37 = vrot.slane %v6884_v28, 2 }
 0x2c3   : > { %v3292_v22 = vsel %vm3117_vm9, %v3291_v36, %v3290_v13  ;;  %v3370_v10 = vsel %vm3108_vm3, %v3369_v41, %v3368_v54  ;;  %v3377_v4 = vrot.slane %v6887_v42, 1  ;;  %v3300_v17 = vrot.slane %v6869_v11, 3 }
 0x2c4   : > { %v3294_v20 = vsel %vm3120_vm11, %v3293_v53, %v3292_v22  ;;  %v3372_v6 = vsel %vm3111_vm6, %v3371_v46, %v3370_v10  ;;  %v3301_v23 = vrot.slane %v6872_v47, 2  ;;  %v3303_v33 = vrot.slane %v6875_v9, 1 }
 0x2c5   : > { %v3296_v50 = vsel %vm3123_vm10, %v3295_v60, %v3294_v20  ;;  %v3374_v48 = vsel %vm3114_vm7, %v3373_v62, %v3372_v6  ;;  %v3306_v32 = vrot.slane %v6881_v55, 7  ;;  %v3308_v25 = vrot.slane %v6884_v28, 6 }
 0x2c6   : > { %3297 = vrot.lane.b32.xlu0 %v3296_v50, %s4502_s18  ;;  %v3376_v31 = vsel %vm3117_vm9, %v3375_v37, %v3374_v48  ;;  %v3302_v14 = vsel %vm3105_vm5, %v3301_v23, %v3300_v17  ;;  %v3310_v51 = vrot.slane %v6887_v42, 5  ;;  %v3312_v49 = vrot.slane %v6890_v15, 4  ;;  %s4399_s18 = scalar_lea.vmem %s7111_s25, 512 }
 0x2c7   : > { %v3378_v57 = vsel %vm3120_vm11, %v3377_v4, %v3376_v31  ;;  %v3304_v56 = vsel %vm3108_vm3, %v3303_v33, %v3302_v14  ;;  %v3317_v18 = vrot.slane %v6869_v11, 4  ;;  %v3318_v61 = vrot.slane %v6872_v47, 3  ;;  %p4400_p13 = scmp.ne.s32.totalorder %s7111_s25, %s4399_s18  ;;  %p4407_p4 = scmp.lt.s32.totalorder %s4405_s9, %s4399_s18 }
 0x2c8   : > { %v3379_v52 = vsel %vm3123_vm10, %v6890_v15, %v3378_v57  ;;  %v3305_v58 = vsel %vm3111_vm6, %v6878_v30, %v3304_v56  ;;  %v3320_v63 = vrot.slane %v6875_v9, 2  ;;  %v3322_v44 = vrot.slane %v6878_v30, 1  ;;  %v7381_v56 = vld [vmem:[#allocation12_spill] sm:$0xff] }
 0x2c9   : > { %3380 = vrot.lane.b32.xlu1 %v3379_v52, %s4504_s29  ;;  %v3307_v29 = vsel %vm3114_vm7, %v3306_v32, %v3305_v58  ;;  %v3319_v1 = vsel %vm3105_vm5, %v3318_v61, %v3317_v18  ;;  %v3327_v24 = vrot.slane %v6887_v42, 6  ;;  %v3251_v36 = vrot.slane %v6872_v47, 7  ;;  %p4401_p0 = pnand %p4400_p13, %p4592_p3  ;;  %p4408_p5 = por %p4407_p4, %p4406_p2 }
 0x2ca   : > { %v3309_v39 = vsel %vm3117_vm9, %v3308_v25, %v3307_v29  ;;  %v3321_v38 = vsel %vm3108_vm3, %v3320_v63, %v3319_v1  ;;  %v3253_v7 = vrot.slane %v6875_v9, 6  ;;  %v3325_v53 = vrot.slane %v6884_v28, 7  ;;  %v7382_v29 = vld [vmem:[#allocation13_spill] sm:$0xff]  ;;  %v7383_v1 = vld [vmem:[#allocation8_spill] sm:$0xff] }
 0x2cb   : > { %v3311_v43 = vsel %vm3120_vm11, %v3310_v51, %v3309_v39  ;;  %v3323_v3 = vsel %vm3111_vm6, %v3322_v44, %v3321_v38  ;;  %v3329_v60 = vrot.slane %v6890_v15, 5  ;;  %v3255_v12 = vrot.slane %v6878_v30, 5  ;;  %p4402_p1 = pneg %p4401_p0 }
 0x2cc   : > { %v3313_v16 = vsel %vm3123_vm10, %v3312_v49, %v3311_v43  ;;  %v3324_v0 = vsel %vm3114_vm7, %v6881_v55, %v3323_v3  ;;  %v3252_v26 = vsel %vm3105_vm5, %v3251_v36, %v6869_v11  ;;  %v3257_v2 = vrot.slane %v6881_v55, 4 }
 0x2cd   : > { %3314 = vrot.lane.b32.xlu0 %v3313_v16, %s4504_s29  ;;  %v3326_v47 = vsel %vm3117_vm9, %v3325_v53, %v3324_v0  ;;  %v3254_v9 = vsel %vm3108_vm3, %v3253_v7, %v3252_v26  ;;  %v3261_v59 = vrot.slane %v6887_v42, 2  ;;  %v3259_v30 = vrot.slane %v6884_v28, 3  ;;  %s7109_s29 = scalar_lea.hbm %s7171_s6, %s3764_s24  ;;  %p4409_p6 = pnand %p4408_p5, %p4402_p1 }
 0x2ce   : > { %v3328_v40 = vsel %vm3120_vm11, %v3327_v24, %v3326_v47  ;;  %v3256_v41 = vsel %vm3111_vm6, %v3255_v12, %v3254_v9  ;;  %v3263_v46 = vrot.slane %v6890_v15, 1  ;;  %v3178_v42 = vrot.slane %v6668_v8, 3 }
 0x2cf   : > { %v7014_v13 = vsel %vm3123_vm10, %v3329_v60, %v3328_v40  ;;  %v3258_v11 = vsel %vm3114_vm7, %v3257_v2, %v3256_v41  ;;  %v3177_v37 = vrot.slane %v6665_v19, 4  ;;  %v3180_v28 = vrot.slane %v6671_v35, 2 }
 0x2d0   : > { %v3260_v55 = vsel %vm3117_vm9, %v3259_v30, %v3258_v11  ;;  %v3104_v22 = vrot.slane %v6668_v8, 7  ;;  %v3182_v10 = vrot.slane %v6674_v27, 1  ;;  %v3107_v17 = vrot.slane %v6671_v35, 6  ;;  %v7042_v35 = vld [vmem:[%s7170_s5] sm:$0xff] }
 0x2d1   : > { %v3262_v54 = vsel %vm3120_vm11, %v3261_v59, %v3260_v55  ;;  %v3179_v15 = vsel %vm3105_vm5, %v3178_v42, %v3177_v37  ;;  %v3110_v33 = vrot.slane %v6674_v27, 5  ;;  %v3187_v48 = vrot.slane %v6683_v21, 6  ;;  %v7385_v55 = vld [vmem:[#allocation7_spill] sm:$0xff] }
 0x2d2   : > { %v7020_v62 = vsel %vm3123_vm10, %v3263_v46, %v3262_v54  ;;  %v3181_v4 = vsel %vm3108_vm3, %v3180_v28, %v3179_v15  ;;  %v3106_v20 = vsel %vm3105_vm5, %v3104_v22, %v6665_v19  ;;  %v3113_v31 = vrot.slane %v6677_v34, 4 }
 0x2d3   : > { %v3183_v6 = vsel %vm3111_vm6, %v3182_v10, %v3181_v4  ;;  %v3109_v50 = vsel %vm3108_vm3, %v3107_v17, %v3106_v20  ;;  %v3185_v19 = vrot.slane %v6680_v45, 7  ;;  %v3189_v27 = vrot.slane %v6686_v5, 5  ;;  %v7386_v20 = vld [vmem:[#allocation14_spill] sm:$0xff] }
 0x2d4   : > { %v3184_v8 = vsel %vm3114_vm7, %v6677_v34, %v3183_v6  ;;  %v3112_v14 = vsel %vm3111_vm6, %v3110_v33, %v3109_v50  ;;  %v3405_v51 = vrot.slane %v7042_v35, %v7381_v56  ;;  %v3119_v52 = vrot.slane %v6683_v21, 2 }
 0x2d5   : > { %v3186_v25 = vsel %vm3117_vm9, %v3185_v19, %v3184_v8  ;;  %v3115_v58 = vsel %vm3114_vm7, %v3113_v31, %v3112_v14  ;;  %v3116_v49 = vrot.slane %v6680_v45, 3  ;;  %v3445_v39 = vrot.slane %v7042_v35, %v7382_v29 }
 0x2d6   : > { %v3188_v34 = vsel %vm3120_vm11, %v3187_v48, %v3186_v25  ;;  %v3122_v43 = vrot.slane %v6686_v5, 1  ;;  %v3425_v63 = vrot.slane %v3405_v51, %v7383_v1  ;;  %v3401_v21 = vrot.slane %v7042_v35, %v7383_v1  ;;  %v7384_v5 = vld [vmem:[#allocation9_spill] sm:$0xff] }
 0x2d7   : > { %v3190_v18 = vsel %vm3123_vm10, %v3189_v27, %v3188_v34  ;;  %v3118_v61 = vsel %vm3117_vm9, %v3116_v49, %v3115_v58  ;;  %v3465_v24 = vrot.slane %v3445_v39, %v7384_v5  ;;  %v3441_v7 = vrot.slane %v7042_v35, %v7384_v5 }
 0x2d8   : > { %v3121_v45 = vsel %vm3120_vm11, %v3119_v52, %v3118_v61  ;;  %v3421_v12 = vrot.slane %v3401_v21, %v7383_v1  ;;  %v3412_v54 = vsub.s32 6, %v7385_v55  ;;  %v3452_v37 = vsub.s32 7, %v7385_v55 }
 0x2d9   : > { %v3124_v53 = vsel %vm3123_vm10, %v3122_v43, %v3121_v45  ;;  %v3461_v47 = vrot.slane %v3441_v7, %v7384_v5  ;;  %v3448_v10 = vsub.s32 5, %v7385_v55  ;;  %v3409_v6 = vrot.slane %v7042_v35, %v7386_v20 }
 0x2da   : > { %v3413_v15 = vrot.slane %v7042_v35, %v3412_v54  ;;  %v3453_v22 = vrot.slane %v7042_v35, %v3452_v37 }
 0x2db   : > { %v3449_v8 = vrot.slane %v7042_v35, %v3448_v10  ;;  %v3429_v19 = vrot.slane %v3409_v6, %v7383_v1 }
 0x2dc   : > { %v3433_v17 = vrot.slane %v3413_v15, %v7383_v1  ;;  %v3473_v50 = vrot.slane %v3453_v22, %v7384_v5 }
 0x2dd   : > { %v3469_v25 = vrot.slane %v3449_v8, %v7384_v5 }
 0x300   : > { %v3207_v23 = vpop.permute.xlu1 %3206 }
 0x301   : > { %v3175_v32 = vpop.permute.xlu0 %3174  ;;  %v3387_v44 = vsel %vm1374_vm4, %v3190_v18, %v3207_v23 }
 0x304   : > { %v3224_v57 = vpop.permute.xlu1 %3223 }
 0x305   : > { %v3388_v38 = vsel %vm1474_vm8, %v3387_v44, %v3224_v57 }
 0x309   : > { %v3141_v16 = vpop.permute.xlu0 %3140 }
 0x30a   : > { %v3383_v0 = vsel %vm1374_vm4, %v3124_v53, %v3141_v16 }
 0x30c   : > { %v3241_v36 = vpop.permute.xlu1 %3240 }
 0x30d   : > { %v3389_v3 = vsel %vm3385_vm12, %v3388_v38, %v3241_v36 }
 0x30e   : > { %v3435_v60 = vmul.f32 %v3425_v63, %v3389_v3 }
 0x30f   : > { %v3158_v26 = vpop.permute.xlu0 %3157 }
 0x310   : > { %v3475_v2 = vadd.f32 %v3465_v24, %v3435_v60  ;;  %v3384_v9 = vsel %vm1474_vm8, %v3383_v0, %v3158_v26 }
 0x311   : > { %v3386_v59 = vsel %vm3385_vm12, %v3384_v9, %v3175_v32 }
 0x312   : > { %v3479_v40 = vmax.f32 %v3475_v2, 0.0  ;;  %v3434_v41 = vmul.f32 %v3421_v12, %v3386_v59 }
 0x314   : > { %3483 = vst [vmem:[%s7078_s17 + $0x8] sm:$0xff] %v3479_v40  ;;  %v3474_v30 = vadd.f32 %v3461_v47, %v3434_v41 }
 0x316   : > { %v3478_v46 = vmax.f32 %v3474_v30, 0.0 }
 0x318   : > { %3482 = vst [vmem:[%s7078_s17] sm:$0xff] %v3478_v46 }
 0x32f   : > { %v3347_v11 = vpop.permute.xlu1 %3346 }
 0x330   : > { %v3281_v42 = vpop.permute.xlu0 %3280  ;;  %v3393_v23 = vsel %vm1374_vm4, %v7014_v13, %v3347_v11 }
 0x331   : > { %v3390_v14 = vsel %vm1374_vm4, %v7020_v62, %v3281_v42 }
 0x334   : > { %v3364_v28 = vpop.permute.xlu1 %3363 }
 0x335   : > { %v3394_v33 = vsel %vm1474_vm8, %v3393_v23, %v3364_v28 }
 0x338   : > { %v3298_v4 = vpop.permute.xlu0 %3297 }
 0x339   : > { %v3391_v13 = vsel %vm1474_vm8, %v3390_v14, %v3298_v4 }
 0x33b   : > { %v3381_v48 = vpop.permute.xlu1 %3380 }
 0x33c   : > { %v3395_v32 = vsel %vm3385_vm12, %v3394_v33, %v3381_v48 }
 0x33d   : > { %v3437_v31 = vmul.f32 %v3433_v17, %v3395_v32 }
 0x33f   : > { %v3477_v27 = vadd.f32 %v3473_v50, %v3437_v31  ;;  %v3315_v35 = vpop.permute.xlu0 %3314 }
 0x340   : > { %v3392_v57 = vsel %vm3385_vm12, %v3391_v13, %v3315_v35 }
 0x341   : > { %v3481_v56 = vmax.f32 %v3477_v27, 0.0  ;;  %v3436_v51 = vmul.f32 %v3429_v19, %v3392_v57 }
 0x343   : > { %3485 = vst [vmem:[%s7078_s17 + $0x18] sm:$0xff] %v3481_v56  ;;  %v3476_v34 = vadd.f32 %v3469_v25, %v3436_v51 }
 0x345   : > { %v3480_v52 = vmax.f32 %v3476_v34, 0.0 }
 0x347   : > { %3484 = vst [vmem:[%s7078_s17 + $0x10] sm:$0xff] %v3480_v52 }
 0x348   : > { %4412 = shalt.err (!%p4409_p6)
}
 0x349   : > { %s4413_s19 = scalar_lea.hbm %s7109_s29, 512  ;;  %s4417_s24 = scalar_lea.hbm %s7171_s6, 2048 }
 0x34a   : > { %p4414_p7 = scmp.ne.s32.totalorder %s7109_s29, %s4413_s19  ;;  %p4418_p11 = scmp.lt.u32.totalorder %s7109_s29, %s7171_s6 }
 0x34b   : > { %p4419_p12 = scmp.lt.u32.totalorder %s4417_s24, %s4413_s19  ;;  %p4421_p0 = scmp.lt.u32.totalorder %s4413_s19, %s7109_s29 }
 0x34c   : > { %p4415_p9 = pnand %p4414_p7, %p4592_p3 }
 0x34d   : > { %p4420_p13 = por %p4419_p12, %p4418_p11 }
 0x34e   : > { %p4416_p10 = pneg %p4415_p9 }
 0x34f   : > { %p4422_p1 = por %p4421_p0, %p4420_p13 }
 0x351   : > { %p4423_p2 = pnand %p4422_p1, %p4416_p10 }
 0x353   : > { %4426 = shalt.err (!%p4423_p2)
}
 0x354   : > { %3831 = dma.vmem_to_hbm [thread:$0]  (%p4592_p3), %s7111_s25, 512, %s7109_s29, %s3487_s14  }
 0x355 PF: > { %p3837_p4 = scmp.ge.s32.totalorder %s4493_s28, 2  ;;  %s3515_s18 = sand.u32 1, %s4465_s21  }
 0x356   : > { %s3516_s20 = scalar_lea.sflag [#allocation5], %s3515_s18 }
 0x357   : > { %p3834_p5 = pnand %p3837_p4, %p4601_p8 }
 0x359   : > { %4460 = dma.done.wait (!%p3834_p5), %s3516_s20, 512  }
 0x35a   : > { %4462 = vsyncadd (!%p3834_p5), %s3516_s20, 4294966784  ;;  %s19_s28 = sadd.s32 1, %s4493_s28   ;;  %s7387_s21 = smov %s4469_s22 }
 0x35b   : > { %p16_p6 = scmp.ge.s32.totalorder %s19_s28, 6   ;;  %s7388_s22 = smov %s4473_s23 }
 0x35c   : > { %s7389_s23 = smov %s4610_s15  ;;  %s7390_s24 = smov %s4485_s26 }
 0x35d   : > { %s7391_s25 = smov %s4489_s27  ;;  %s7392_s26 = smov %s7395_s7 }
 0x35e   : > { %s7393_s27 = smov %s7399_s8  ;;  %18 = sbr.rel (!%p16_p6) target bundleno = 5 (0x5), region = 86 }
 0x365   :  { %3521 = vsyncpa [#allocation5], 1 }
 0x366   :  { %3523 = vsyncpa [#allocation5 + $0x1], 1 }

</bundles_post_ra>
